<compile_context>
chip_gen: v6e
topology: v6e:2x2x1
jax: 0.10.0
libtpu: 0.0.40
codegen_flags: <defaults>
</compile_context>

<pallas_src>
import jax
import jax.numpy as jnp
from jax.experimental import pallas as pl
from jax.experimental.pallas import tpu as pltpu

_PREC = jax.lax.Precision.HIGHEST


# ----------------------------------------------------------------------------
# Pallas kernel: full T-step GRU recurrence (the sequential hot path).
# ----------------------------------------------------------------------------
def gru_seq_kernel(
    x_ref,       # (T*B, I) f32, time-major: row = t*B + b
    h0_ref,      # (B, H)   f32
    wih_ref,     # (I, 3H)  f32, gate order [r | z | n]
    whh_r_ref,   # (H, H)   f32
    whh_z_ref,   # (H, H)   f32
    whh_n_ref,   # (H, H)   f32
    bin_ref,     # (1, 3H)  f32 : b_ih + [b_hh_r, b_hh_z, 0]
    bhhn_ref,    # (1, H)   f32 : b_hh_n
    out_ref,     # (B, 4H)  f32 : last step's cat([r, z, n, new_h], axis=1)
):
    B, H = h0_ref.shape
    T = x_ref.shape[0] // B

    # ---- hoisted, loop-invariant work --------------------------------------
    ip = jnp.dot(x_ref[...], wih_ref[...],
                 precision=_PREC, preferred_element_type=jnp.float32)
    ip = ip + bin_ref[...]                        # (T*B, 3H); biases prefolded
    # Per-gate, time-major slabs: the in-loop [t] index is a whole-tile pick.
    ip_r = ip[:, :H].reshape(T, B, H)
    ip_z = ip[:, H:2 * H].reshape(T, B, H)
    ip_n = ip[:, 2 * H:].reshape(T, B, H)

    whh_r = whh_r_ref[...]
    whh_z = whh_z_ref[...]
    whh_n = whh_n_ref[...]
    bhh_n = jnp.broadcast_to(bhhn_ref[...], (B, H))   # hoisted broadcast

    # ---- serial recurrence: h in vregs, lane-aligned per-gate math ----------
    h = h0_ref[...]                               # (B, H)
    r = z = n = h                                 # placeholders (T >= 1 required)
    for t in range(T):                            # static unroll; chain is serial
        hp_r = jnp.dot(h, whh_r, precision=_PREC, preferred_element_type=jnp.float32)
        hp_z = jnp.dot(h, whh_z, precision=_PREC, preferred_element_type=jnp.float32)
        hp_n = jnp.dot(h, whh_n, precision=_PREC, preferred_element_type=jnp.float32)
        r = jax.nn.sigmoid(ip_r[t] + hp_r)
        z = jax.nn.sigmoid(ip_z[t] + hp_z)
        n = jnp.tanh(ip_n[t] + r * (hp_n + bhh_n))
        h = (1.0 - z) * n + z * h                 # new hidden state, kept in vregs

    # Single lane-dense (B, 4H) = (B, 128) unmasked store, written once.
    out_ref[...] = jnp.concatenate([r, z, n, h], axis=1)


# ----------------------------------------------------------------------------
# Wrapper (glue): parameter plumbing + pallas_call + output reshapes.
# ----------------------------------------------------------------------------
@jax.jit
def rnn_wrapper_forward(x, h, params):
    """x: (B, T, I) f32, h: (1, B, H) f32. Returns ((B,1,4H), (1,B,4H))."""
    B, T, I = x.shape
    H = h.shape[-1]
    if T < 1:
        raise ValueError("forward_cell requires T >= 1")

    # Time-major so the kernel's per-step slab is a contiguous leading index.
    x_tm = jnp.transpose(x, (1, 0, 2)).reshape(T * B, I).astype(jnp.float32)
    h0 = h[0].astype(jnp.float32)                  # (B, H)

    vmem = pl.BlockSpec(memory_space=pltpu.MemorySpace.VMEM)
    out = pl.pallas_call(
        gru_seq_kernel,
        out_shape=jax.ShapeDtypeStruct((B, 4 * H), jnp.float32),
        in_specs=[vmem] * 8,
        out_specs=vmem,
    )(
        x_tm, h0,
        params["wih_rzn"],
        params["whh_r"], params["whh_z"], params["whh_n"],
        params["bias_in"], params["bhh_n"],
    )
    return out.reshape(B, 1, 4 * H), out.reshape(1, B, 4 * H)


# ----------------------------------------------------------------------------
# Deterministic parameter construction (mirrors GRUCellWithGates.__init__).
# ----------------------------------------------------------------------------
def make_params(key, input_size, hidden_size):
    I, H = input_size, hidden_size
    kih, khh, kbih, kbhh = jax.random.split(key, 4)
    bound_ih = 1.0 / jnp.sqrt(jnp.float32(I))
    bound_hh = 1.0 / jnp.sqrt(jnp.float32(H))
    # PyTorch layout: weight_ih (3H, I), weight_hh (3H, H); gate order r, z, n.
    w_ih = jax.random.uniform(kih, (3 * H, I), jnp.float32, -bound_ih, bound_ih)
    w_hh = jax.random.uniform(khh, (3 * H, H), jnp.float32, -bound_hh, bound_hh)
    b_ih = jax.random.normal(kbih, (3 * H,), jnp.float32)
    b_hh = jax.random.normal(kbhh, (3 * H,), jnp.float32)

    # Fold the r/z components of b_hh into the loop-invariant input-side bias;
    # b_hh_n must stay separate (it lives inside r * (n_h + n_bh)).
    bias_in = b_ih + jnp.concatenate(
        [b_hh[:H], b_hh[H:2 * H], jnp.zeros((H,), jnp.float32)])

    params = {
        # Linear computes x @ W^T -> pass W^T so the kernel does plain dots.
        "wih_rzn": w_ih.T,                              # (I, 3H)
        "whh_r": w_hh[:H, :].T,                         # (H, H)
        "whh_z": w_hh[H:2 * H, :].T,                    # (H, H)
        "whh_n": w_hh[2 * H:, :].T,                     # (H, H)
        "bias_in": bias_in.reshape(1, 3 * H),           # (1, 3H)
        "bhh_n": b_hh[2 * H:].reshape(1, H),            # (1, H)
    }
    raw = {"w_ih": w_ih, "w_hh": w_hh, "b_ih": b_ih, "b_hh": b_hh}
    return params, raw


# Pure-JAX reference of the (intended) PyTorch forward, for correctness check.
def reference_forward(x, h, raw, hidden_size):
    B, T, _ = x.shape
    H = hidden_size
    bi, bh = raw["b_ih"], raw["b_hh"]
    h_cur = h[0]
    out = None
    for t in range(T):
        xt = x[:, t, :]
        ip = jnp.dot(xt, raw["w_ih"].T, precision=_PREC)
        hp = jnp.dot(h_cur, raw["w_hh"].T, precision=_PREC)
        r = jax.nn.sigmoid(ip[:, :H] + bi[:H] + hp[:, :H] + bh[:H])
        z = jax.nn.sigmoid(ip[:, H:2 * H] + bi[H:2 * H] + hp[:, H:2 * H] + bh[H:2 * H])
        n = jnp.tanh(ip[:, 2 * H:] + bi[2 * H:] + r * (hp[:, 2 * H:] + bh[2 * H:]))
        new_h = (1.0 - z) * n + z * h_cur
        out = jnp.concatenate([r, z, n, new_h], axis=1)
        h_cur = new_h
    return out.reshape(B, 1, -1), out.reshape(1, B, -1)


if __name__ == "__main__":
    B, T, I, H = 2, 8, 16, 32

    key = jax.random.PRNGKey(0)
    kp, kx, kh = jax.random.split(key, 3)
    params, raw = make_params(kp, I, H)

    x = jax.random.normal(kx, (B, T, I), jnp.float32)
    h = jax.random.normal(kh, (1, B, H), jnp.float32)

    out_a, out_b = rnn_wrapper_forward(x, h, params)
    out_a, out_b = jax.block_until_ready((out_a, out_b))

    ref_a, ref_b = reference_forward(x, h, raw, H)
    assert out_a.shape == (B, 1, 4 * H) and out_b.shape == (1, B, 4 * H)
    assert jnp.allclose(out_a, ref_a, atol=1e-5, rtol=1e-5)
    assert jnp.allclose(out_b, ref_b, atol=1e-5, rtol=1e-5)

    print("KERNEL_OK")
</pallas_src>

<mosaic_0001>
module attributes {stable_mosaic.version = 11 : i64} {
  func.func @gru_seq_kernel(%arg0: memref<16x16xf32, #tpu.memory_space<vmem>>, %arg1: memref<2x32xf32, #tpu.memory_space<vmem>>, %arg2: memref<16x96xf32, #tpu.memory_space<vmem>>, %arg3: memref<32x32xf32, #tpu.memory_space<vmem>>, %arg4: memref<32x32xf32, #tpu.memory_space<vmem>>, %arg5: memref<32x32xf32, #tpu.memory_space<vmem>>, %arg6: memref<1x96xf32, #tpu.memory_space<vmem>>, %arg7: memref<1x32xf32, #tpu.memory_space<vmem>>, %arg8: memref<2x128xf32, #tpu.memory_space<vmem>>) attributes {dimension_semantics = [], scalar_prefetch = 0 : i64, scratch_operands = 0 : i64, tpu.core_type = #tpu.core_type<tc>} {
    %c0 = arith.constant 0 : index
    %c0_0 = arith.constant 0 : index
    %0 = vector.load %arg0[%c0, %c0_0] : memref<16x16xf32, #tpu.memory_space<vmem>>, vector<16x16xf32>
    %c0_1 = arith.constant 0 : index
    %c0_2 = arith.constant 0 : index
    %1 = vector.load %arg2[%c0_1, %c0_2] : memref<16x96xf32, #tpu.memory_space<vmem>>, vector<16x96xf32>
    %cst = arith.constant dense<0.000000e+00> : vector<16x96xf32>
    %2 = tpu.matmul %0, %1, %cst {dimension_numbers = #tpu.dot_dimension_numbers<[1], [0], [0], [1], [0, 0, 1, 1], [], []>, precision = #tpu.contract_precision<fp32>} : vector<16x16xf32>, vector<16x96xf32>, vector<16x96xf32> -> vector<16x96xf32>
    %c0_3 = arith.constant 0 : index
    %c0_4 = arith.constant 0 : index
    %3 = vector.load %arg6[%c0_3, %c0_4] : memref<1x96xf32, #tpu.memory_space<vmem>>, vector<1x96xf32>
    %4 = vector.broadcast %3 : vector<1x96xf32> to vector<16x96xf32>
    %5 = arith.addf %2, %4 : vector<16x96xf32>
    %6 = vector.extract_strided_slice %5 {offsets = [0, 0], sizes = [16, 32], strides = [1, 1]} : vector<16x96xf32> to vector<16x32xf32>
    %7 = vector.shape_cast %6 : vector<16x32xf32> to vector<8x2x32xf32>
    %8 = vector.extract_strided_slice %5 {offsets = [0, 32], sizes = [16, 32], strides = [1, 1]} : vector<16x96xf32> to vector<16x32xf32>
    %9 = vector.shape_cast %8 : vector<16x32xf32> to vector<8x2x32xf32>
    %10 = vector.extract_strided_slice %5 {offsets = [0, 64], sizes = [16, 32], strides = [1, 1]} : vector<16x96xf32> to vector<16x32xf32>
    %11 = vector.shape_cast %10 : vector<16x32xf32> to vector<8x2x32xf32>
    %c0_5 = arith.constant 0 : index
    %c0_6 = arith.constant 0 : index
    %12 = vector.load %arg3[%c0_5, %c0_6] : memref<32x32xf32, #tpu.memory_space<vmem>>, vector<32x32xf32>
    %c0_7 = arith.constant 0 : index
    %c0_8 = arith.constant 0 : index
    %13 = vector.load %arg4[%c0_7, %c0_8] : memref<32x32xf32, #tpu.memory_space<vmem>>, vector<32x32xf32>
    %c0_9 = arith.constant 0 : index
    %c0_10 = arith.constant 0 : index
    %14 = vector.load %arg5[%c0_9, %c0_10] : memref<32x32xf32, #tpu.memory_space<vmem>>, vector<32x32xf32>
    %c0_11 = arith.constant 0 : index
    %c0_12 = arith.constant 0 : index
    %15 = vector.load %arg7[%c0_11, %c0_12] : memref<1x32xf32, #tpu.memory_space<vmem>>, vector<1x32xf32>
    %16 = vector.shape_cast %15 : vector<1x32xf32> to vector<1x32xf32>
    %17 = vector.broadcast %16 : vector<1x32xf32> to vector<2x32xf32>
    %c0_13 = arith.constant 0 : index
    %c0_14 = arith.constant 0 : index
    %18 = vector.load %arg1[%c0_13, %c0_14] : memref<2x32xf32, #tpu.memory_space<vmem>>, vector<2x32xf32>
    %cst_15 = arith.constant dense<0.000000e+00> : vector<2x32xf32>
    %19 = tpu.matmul %18, %12, %cst_15 {dimension_numbers = #tpu.dot_dimension_numbers<[1], [0], [0], [1], [0, 0, 1, 1], [], []>, precision = #tpu.contract_precision<fp32>} : vector<2x32xf32>, vector<32x32xf32>, vector<2x32xf32> -> vector<2x32xf32>
    %cst_16 = arith.constant dense<0.000000e+00> : vector<2x32xf32>
    %20 = tpu.matmul %18, %13, %cst_16 {dimension_numbers = #tpu.dot_dimension_numbers<[1], [0], [0], [1], [0, 0, 1, 1], [], []>, precision = #tpu.contract_precision<fp32>} : vector<2x32xf32>, vector<32x32xf32>, vector<2x32xf32> -> vector<2x32xf32>
    %cst_17 = arith.constant dense<0.000000e+00> : vector<2x32xf32>
    %21 = tpu.matmul %18, %14, %cst_17 {dimension_numbers = #tpu.dot_dimension_numbers<[1], [0], [0], [1], [0, 0, 1, 1], [], []>, precision = #tpu.contract_precision<fp32>} : vector<2x32xf32>, vector<32x32xf32>, vector<2x32xf32> -> vector<2x32xf32>
    %22 = vector.extract_strided_slice %7 {offsets = [0, 0, 0], sizes = [1, 2, 32], strides = [1, 1, 1]} : vector<8x2x32xf32> to vector<1x2x32xf32>
    %23 = vector.shape_cast %22 : vector<1x2x32xf32> to vector<2x32xf32>
    %24 = arith.addf %23, %19 : vector<2x32xf32>
    %25 = arith.negf %24 : vector<2x32xf32>
    %26 = math.exp %25 : vector<2x32xf32>
    %cst_18 = arith.constant 1.000000e+00 : f32
    %27 = vector.broadcast %cst_18 : f32 to vector<2x32xf32>
    %28 = arith.addf %27, %26 : vector<2x32xf32>
    %29 = arith.divf %27, %28 : vector<2x32xf32>
    %30 = vector.extract_strided_slice %9 {offsets = [0, 0, 0], sizes = [1, 2, 32], strides = [1, 1, 1]} : vector<8x2x32xf32> to vector<1x2x32xf32>
    %31 = vector.shape_cast %30 : vector<1x2x32xf32> to vector<2x32xf32>
    %32 = arith.addf %31, %20 : vector<2x32xf32>
    %33 = arith.negf %32 : vector<2x32xf32>
    %34 = math.exp %33 : vector<2x32xf32>
    %cst_19 = arith.constant 1.000000e+00 : f32
    %35 = vector.broadcast %cst_19 : f32 to vector<2x32xf32>
    %36 = arith.addf %35, %34 : vector<2x32xf32>
    %37 = arith.divf %35, %36 : vector<2x32xf32>
    %38 = vector.extract_strided_slice %11 {offsets = [0, 0, 0], sizes = [1, 2, 32], strides = [1, 1, 1]} : vector<8x2x32xf32> to vector<1x2x32xf32>
    %39 = vector.shape_cast %38 : vector<1x2x32xf32> to vector<2x32xf32>
    %40 = arith.addf %21, %17 : vector<2x32xf32>
    %41 = arith.mulf %29, %40 : vector<2x32xf32>
    %42 = arith.addf %39, %41 : vector<2x32xf32>
    %43 = math.tanh %42 : vector<2x32xf32>
    %cst_20 = arith.constant 1.000000e+00 : f32
    %44 = vector.broadcast %cst_20 : f32 to vector<2x32xf32>
    %45 = arith.subf %44, %37 : vector<2x32xf32>
    %46 = arith.mulf %45, %43 : vector<2x32xf32>
    %47 = arith.mulf %37, %18 : vector<2x32xf32>
    %48 = arith.addf %46, %47 : vector<2x32xf32>
    %cst_21 = arith.constant dense<0.000000e+00> : vector<2x32xf32>
    %49 = tpu.matmul %48, %12, %cst_21 {dimension_numbers = #tpu.dot_dimension_numbers<[1], [0], [0], [1], [0, 0, 1, 1], [], []>, precision = #tpu.contract_precision<fp32>} : vector<2x32xf32>, vector<32x32xf32>, vector<2x32xf32> -> vector<2x32xf32>
    %cst_22 = arith.constant dense<0.000000e+00> : vector<2x32xf32>
    %50 = tpu.matmul %48, %13, %cst_22 {dimension_numbers = #tpu.dot_dimension_numbers<[1], [0], [0], [1], [0, 0, 1, 1], [], []>, precision = #tpu.contract_precision<fp32>} : vector<2x32xf32>, vector<32x32xf32>, vector<2x32xf32> -> vector<2x32xf32>
    %cst_23 = arith.constant dense<0.000000e+00> : vector<2x32xf32>
    %51 = tpu.matmul %48, %14, %cst_23 {dimension_numbers = #tpu.dot_dimension_numbers<[1], [0], [0], [1], [0, 0, 1, 1], [], []>, precision = #tpu.contract_precision<fp32>} : vector<2x32xf32>, vector<32x32xf32>, vector<2x32xf32> -> vector<2x32xf32>
    %52 = vector.extract_strided_slice %7 {offsets = [1, 0, 0], sizes = [1, 2, 32], strides = [1, 1, 1]} : vector<8x2x32xf32> to vector<1x2x32xf32>
    %53 = vector.shape_cast %52 : vector<1x2x32xf32> to vector<2x32xf32>
    %54 = arith.addf %53, %49 : vector<2x32xf32>
    %55 = arith.negf %54 : vector<2x32xf32>
    %56 = math.exp %55 : vector<2x32xf32>
    %cst_24 = arith.constant 1.000000e+00 : f32
    %57 = vector.broadcast %cst_24 : f32 to vector<2x32xf32>
    %58 = arith.addf %57, %56 : vector<2x32xf32>
    %59 = arith.divf %57, %58 : vector<2x32xf32>
    %60 = vector.extract_strided_slice %9 {offsets = [1, 0, 0], sizes = [1, 2, 32], strides = [1, 1, 1]} : vector<8x2x32xf32> to vector<1x2x32xf32>
    %61 = vector.shape_cast %60 : vector<1x2x32xf32> to vector<2x32xf32>
    %62 = arith.addf %61, %50 : vector<2x32xf32>
    %63 = arith.negf %62 : vector<2x32xf32>
    %64 = math.exp %63 : vector<2x32xf32>
    %cst_25 = arith.constant 1.000000e+00 : f32
    %65 = vector.broadcast %cst_25 : f32 to vector<2x32xf32>
    %66 = arith.addf %65, %64 : vector<2x32xf32>
    %67 = arith.divf %65, %66 : vector<2x32xf32>
    %68 = vector.extract_strided_slice %11 {offsets = [1, 0, 0], sizes = [1, 2, 32], strides = [1, 1, 1]} : vector<8x2x32xf32> to vector<1x2x32xf32>
    %69 = vector.shape_cast %68 : vector<1x2x32xf32> to vector<2x32xf32>
    %70 = arith.addf %51, %17 : vector<2x32xf32>
    %71 = arith.mulf %59, %70 : vector<2x32xf32>
    %72 = arith.addf %69, %71 : vector<2x32xf32>
    %73 = math.tanh %72 : vector<2x32xf32>
    %cst_26 = arith.constant 1.000000e+00 : f32
    %74 = vector.broadcast %cst_26 : f32 to vector<2x32xf32>
    %75 = arith.subf %74, %67 : vector<2x32xf32>
    %76 = arith.mulf %75, %73 : vector<2x32xf32>
    %77 = arith.mulf %67, %48 : vector<2x32xf32>
    %78 = arith.addf %76, %77 : vector<2x32xf32>
    %cst_27 = arith.constant dense<0.000000e+00> : vector<2x32xf32>
    %79 = tpu.matmul %78, %12, %cst_27 {dimension_numbers = #tpu.dot_dimension_numbers<[1], [0], [0], [1], [0, 0, 1, 1], [], []>, precision = #tpu.contract_precision<fp32>} : vector<2x32xf32>, vector<32x32xf32>, vector<2x32xf32> -> vector<2x32xf32>
    %cst_28 = arith.constant dense<0.000000e+00> : vector<2x32xf32>
    %80 = tpu.matmul %78, %13, %cst_28 {dimension_numbers = #tpu.dot_dimension_numbers<[1], [0], [0], [1], [0, 0, 1, 1], [], []>, precision = #tpu.contract_precision<fp32>} : vector<2x32xf32>, vector<32x32xf32>, vector<2x32xf32> -> vector<2x32xf32>
    %cst_29 = arith.constant dense<0.000000e+00> : vector<2x32xf32>
    %81 = tpu.matmul %78, %14, %cst_29 {dimension_numbers = #tpu.dot_dimension_numbers<[1], [0], [0], [1], [0, 0, 1, 1], [], []>, precision = #tpu.contract_precision<fp32>} : vector<2x32xf32>, vector<32x32xf32>, vector<2x32xf32> -> vector<2x32xf32>
    %82 = vector.extract_strided_slice %7 {offsets = [2, 0, 0], sizes = [1, 2, 32], strides = [1, 1, 1]} : vector<8x2x32xf32> to vector<1x2x32xf32>
    %83 = vector.shape_cast %82 : vector<1x2x32xf32> to vector<2x32xf32>
    %84 = arith.addf %83, %79 : vector<2x32xf32>
    %85 = arith.negf %84 : vector<2x32xf32>
    %86 = math.exp %85 : vector<2x32xf32>
    %cst_30 = arith.constant 1.000000e+00 : f32
    %87 = vector.broadcast %cst_30 : f32 to vector<2x32xf32>
    %88 = arith.addf %87, %86 : vector<2x32xf32>
    %89 = arith.divf %87, %88 : vector<2x32xf32>
    %90 = vector.extract_strided_slice %9 {offsets = [2, 0, 0], sizes = [1, 2, 32], strides = [1, 1, 1]} : vector<8x2x32xf32> to vector<1x2x32xf32>
    %91 = vector.shape_cast %90 : vector<1x2x32xf32> to vector<2x32xf32>
    %92 = arith.addf %91, %80 : vector<2x32xf32>
    %93 = arith.negf %92 : vector<2x32xf32>
    %94 = math.exp %93 : vector<2x32xf32>
    %cst_31 = arith.constant 1.000000e+00 : f32
    %95 = vector.broadcast %cst_31 : f32 to vector<2x32xf32>
    %96 = arith.addf %95, %94 : vector<2x32xf32>
    %97 = arith.divf %95, %96 : vector<2x32xf32>
    %98 = vector.extract_strided_slice %11 {offsets = [2, 0, 0], sizes = [1, 2, 32], strides = [1, 1, 1]} : vector<8x2x32xf32> to vector<1x2x32xf32>
    %99 = vector.shape_cast %98 : vector<1x2x32xf32> to vector<2x32xf32>
    %100 = arith.addf %81, %17 : vector<2x32xf32>
    %101 = arith.mulf %89, %100 : vector<2x32xf32>
    %102 = arith.addf %99, %101 : vector<2x32xf32>
    %103 = math.tanh %102 : vector<2x32xf32>
    %cst_32 = arith.constant 1.000000e+00 : f32
    %104 = vector.broadcast %cst_32 : f32 to vector<2x32xf32>
    %105 = arith.subf %104, %97 : vector<2x32xf32>
    %106 = arith.mulf %105, %103 : vector<2x32xf32>
    %107 = arith.mulf %97, %78 : vector<2x32xf32>
    %108 = arith.addf %106, %107 : vector<2x32xf32>
    %cst_33 = arith.constant dense<0.000000e+00> : vector<2x32xf32>
    %109 = tpu.matmul %108, %12, %cst_33 {dimension_numbers = #tpu.dot_dimension_numbers<[1], [0], [0], [1], [0, 0, 1, 1], [], []>, precision = #tpu.contract_precision<fp32>} : vector<2x32xf32>, vector<32x32xf32>, vector<2x32xf32> -> vector<2x32xf32>
    %cst_34 = arith.constant dense<0.000000e+00> : vector<2x32xf32>
    %110 = tpu.matmul %108, %13, %cst_34 {dimension_numbers = #tpu.dot_dimension_numbers<[1], [0], [0], [1], [0, 0, 1, 1], [], []>, precision = #tpu.contract_precision<fp32>} : vector<2x32xf32>, vector<32x32xf32>, vector<2x32xf32> -> vector<2x32xf32>
    %cst_35 = arith.constant dense<0.000000e+00> : vector<2x32xf32>
    %111 = tpu.matmul %108, %14, %cst_35 {dimension_numbers = #tpu.dot_dimension_numbers<[1], [0], [0], [1], [0, 0, 1, 1], [], []>, precision = #tpu.contract_precision<fp32>} : vector<2x32xf32>, vector<32x32xf32>, vector<2x32xf32> -> vector<2x32xf32>
    %112 = vector.extract_strided_slice %7 {offsets = [3, 0, 0], sizes = [1, 2, 32], strides = [1, 1, 1]} : vector<8x2x32xf32> to vector<1x2x32xf32>
    %113 = vector.shape_cast %112 : vector<1x2x32xf32> to vector<2x32xf32>
    %114 = arith.addf %113, %109 : vector<2x32xf32>
    %115 = arith.negf %114 : vector<2x32xf32>
    %116 = math.exp %115 : vector<2x32xf32>
    %cst_36 = arith.constant 1.000000e+00 : f32
    %117 = vector.broadcast %cst_36 : f32 to vector<2x32xf32>
    %118 = arith.addf %117, %116 : vector<2x32xf32>
    %119 = arith.divf %117, %118 : vector<2x32xf32>
    %120 = vector.extract_strided_slice %9 {offsets = [3, 0, 0], sizes = [1, 2, 32], strides = [1, 1, 1]} : vector<8x2x32xf32> to vector<1x2x32xf32>
    %121 = vector.shape_cast %120 : vector<1x2x32xf32> to vector<2x32xf32>
    %122 = arith.addf %121, %110 : vector<2x32xf32>
    %123 = arith.negf %122 : vector<2x32xf32>
    %124 = math.exp %123 : vector<2x32xf32>
    %cst_37 = arith.constant 1.000000e+00 : f32
    %125 = vector.broadcast %cst_37 : f32 to vector<2x32xf32>
    %126 = arith.addf %125, %124 : vector<2x32xf32>
    %127 = arith.divf %125, %126 : vector<2x32xf32>
    %128 = vector.extract_strided_slice %11 {offsets = [3, 0, 0], sizes = [1, 2, 32], strides = [1, 1, 1]} : vector<8x2x32xf32> to vector<1x2x32xf32>
    %129 = vector.shape_cast %128 : vector<1x2x32xf32> to vector<2x32xf32>
    %130 = arith.addf %111, %17 : vector<2x32xf32>
    %131 = arith.mulf %119, %130 : vector<2x32xf32>
    %132 = arith.addf %129, %131 : vector<2x32xf32>
    %133 = math.tanh %132 : vector<2x32xf32>
    %cst_38 = arith.constant 1.000000e+00 : f32
    %134 = vector.broadcast %cst_38 : f32 to vector<2x32xf32>
    %135 = arith.subf %134, %127 : vector<2x32xf32>
    %136 = arith.mulf %135, %133 : vector<2x32xf32>
    %137 = arith.mulf %127, %108 : vector<2x32xf32>
    %138 = arith.addf %136, %137 : vector<2x32xf32>
    %cst_39 = arith.constant dense<0.000000e+00> : vector<2x32xf32>
    %139 = tpu.matmul %138, %12, %cst_39 {dimension_numbers = #tpu.dot_dimension_numbers<[1], [0], [0], [1], [0, 0, 1, 1], [], []>, precision = #tpu.contract_precision<fp32>} : vector<2x32xf32>, vector<32x32xf32>, vector<2x32xf32> -> vector<2x32xf32>
    %cst_40 = arith.constant dense<0.000000e+00> : vector<2x32xf32>
    %140 = tpu.matmul %138, %13, %cst_40 {dimension_numbers = #tpu.dot_dimension_numbers<[1], [0], [0], [1], [0, 0, 1, 1], [], []>, precision = #tpu.contract_precision<fp32>} : vector<2x32xf32>, vector<32x32xf32>, vector<2x32xf32> -> vector<2x32xf32>
    %cst_41 = arith.constant dense<0.000000e+00> : vector<2x32xf32>
    %141 = tpu.matmul %138, %14, %cst_41 {dimension_numbers = #tpu.dot_dimension_numbers<[1], [0], [0], [1], [0, 0, 1, 1], [], []>, precision = #tpu.contract_precision<fp32>} : vector<2x32xf32>, vector<32x32xf32>, vector<2x32xf32> -> vector<2x32xf32>
    %142 = vector.extract_strided_slice %7 {offsets = [4, 0, 0], sizes = [1, 2, 32], strides = [1, 1, 1]} : vector<8x2x32xf32> to vector<1x2x32xf32>
    %143 = vector.shape_cast %142 : vector<1x2x32xf32> to vector<2x32xf32>
    %144 = arith.addf %143, %139 : vector<2x32xf32>
    %145 = arith.negf %144 : vector<2x32xf32>
    %146 = math.exp %145 : vector<2x32xf32>
    %cst_42 = arith.constant 1.000000e+00 : f32
    %147 = vector.broadcast %cst_42 : f32 to vector<2x32xf32>
    %148 = arith.addf %147, %146 : vector<2x32xf32>
    %149 = arith.divf %147, %148 : vector<2x32xf32>
    %150 = vector.extract_strided_slice %9 {offsets = [4, 0, 0], sizes = [1, 2, 32], strides = [1, 1, 1]} : vector<8x2x32xf32> to vector<1x2x32xf32>
    %151 = vector.shape_cast %150 : vector<1x2x32xf32> to vector<2x32xf32>
    %152 = arith.addf %151, %140 : vector<2x32xf32>
    %153 = arith.negf %152 : vector<2x32xf32>
    %154 = math.exp %153 : vector<2x32xf32>
    %cst_43 = arith.constant 1.000000e+00 : f32
    %155 = vector.broadcast %cst_43 : f32 to vector<2x32xf32>
    %156 = arith.addf %155, %154 : vector<2x32xf32>
    %157 = arith.divf %155, %156 : vector<2x32xf32>
    %158 = vector.extract_strided_slice %11 {offsets = [4, 0, 0], sizes = [1, 2, 32], strides = [1, 1, 1]} : vector<8x2x32xf32> to vector<1x2x32xf32>
    %159 = vector.shape_cast %158 : vector<1x2x32xf32> to vector<2x32xf32>
    %160 = arith.addf %141, %17 : vector<2x32xf32>
    %161 = arith.mulf %149, %160 : vector<2x32xf32>
    %162 = arith.addf %159, %161 : vector<2x32xf32>
    %163 = math.tanh %162 : vector<2x32xf32>
    %cst_44 = arith.constant 1.000000e+00 : f32
    %164 = vector.broadcast %cst_44 : f32 to vector<2x32xf32>
    %165 = arith.subf %164, %157 : vector<2x32xf32>
    %166 = arith.mulf %165, %163 : vector<2x32xf32>
    %167 = arith.mulf %157, %138 : vector<2x32xf32>
    %168 = arith.addf %166, %167 : vector<2x32xf32>
    %cst_45 = arith.constant dense<0.000000e+00> : vector<2x32xf32>
    %169 = tpu.matmul %168, %12, %cst_45 {dimension_numbers = #tpu.dot_dimension_numbers<[1], [0], [0], [1], [0, 0, 1, 1], [], []>, precision = #tpu.contract_precision<fp32>} : vector<2x32xf32>, vector<32x32xf32>, vector<2x32xf32> -> vector<2x32xf32>
    %cst_46 = arith.constant dense<0.000000e+00> : vector<2x32xf32>
    %170 = tpu.matmul %168, %13, %cst_46 {dimension_numbers = #tpu.dot_dimension_numbers<[1], [0], [0], [1], [0, 0, 1, 1], [], []>, precision = #tpu.contract_precision<fp32>} : vector<2x32xf32>, vector<32x32xf32>, vector<2x32xf32> -> vector<2x32xf32>
    %cst_47 = arith.constant dense<0.000000e+00> : vector<2x32xf32>
    %171 = tpu.matmul %168, %14, %cst_47 {dimension_numbers = #tpu.dot_dimension_numbers<[1], [0], [0], [1], [0, 0, 1, 1], [], []>, precision = #tpu.contract_precision<fp32>} : vector<2x32xf32>, vector<32x32xf32>, vector<2x32xf32> -> vector<2x32xf32>
    %172 = vector.extract_strided_slice %7 {offsets = [5, 0, 0], sizes = [1, 2, 32], strides = [1, 1, 1]} : vector<8x2x32xf32> to vector<1x2x32xf32>
    %173 = vector.shape_cast %172 : vector<1x2x32xf32> to vector<2x32xf32>
    %174 = arith.addf %173, %169 : vector<2x32xf32>
    %175 = arith.negf %174 : vector<2x32xf32>
    %176 = math.exp %175 : vector<2x32xf32>
    %cst_48 = arith.constant 1.000000e+00 : f32
    %177 = vector.broadcast %cst_48 : f32 to vector<2x32xf32>
    %178 = arith.addf %177, %176 : vector<2x32xf32>
    %179 = arith.divf %177, %178 : vector<2x32xf32>
    %180 = vector.extract_strided_slice %9 {offsets = [5, 0, 0], sizes = [1, 2, 32], strides = [1, 1, 1]} : vector<8x2x32xf32> to vector<1x2x32xf32>
    %181 = vector.shape_cast %180 : vector<1x2x32xf32> to vector<2x32xf32>
    %182 = arith.addf %181, %170 : vector<2x32xf32>
    %183 = arith.negf %182 : vector<2x32xf32>
    %184 = math.exp %183 : vector<2x32xf32>
    %cst_49 = arith.constant 1.000000e+00 : f32
    %185 = vector.broadcast %cst_49 : f32 to vector<2x32xf32>
    %186 = arith.addf %185, %184 : vector<2x32xf32>
    %187 = arith.divf %185, %186 : vector<2x32xf32>
    %188 = vector.extract_strided_slice %11 {offsets = [5, 0, 0], sizes = [1, 2, 32], strides = [1, 1, 1]} : vector<8x2x32xf32> to vector<1x2x32xf32>
    %189 = vector.shape_cast %188 : vector<1x2x32xf32> to vector<2x32xf32>
    %190 = arith.addf %171, %17 : vector<2x32xf32>
    %191 = arith.mulf %179, %190 : vector<2x32xf32>
    %192 = arith.addf %189, %191 : vector<2x32xf32>
    %193 = math.tanh %192 : vector<2x32xf32>
    %cst_50 = arith.constant 1.000000e+00 : f32
    %194 = vector.broadcast %cst_50 : f32 to vector<2x32xf32>
    %195 = arith.subf %194, %187 : vector<2x32xf32>
    %196 = arith.mulf %195, %193 : vector<2x32xf32>
    %197 = arith.mulf %187, %168 : vector<2x32xf32>
    %198 = arith.addf %196, %197 : vector<2x32xf32>
    %cst_51 = arith.constant dense<0.000000e+00> : vector<2x32xf32>
    %199 = tpu.matmul %198, %12, %cst_51 {dimension_numbers = #tpu.dot_dimension_numbers<[1], [0], [0], [1], [0, 0, 1, 1], [], []>, precision = #tpu.contract_precision<fp32>} : vector<2x32xf32>, vector<32x32xf32>, vector<2x32xf32> -> vector<2x32xf32>
    %cst_52 = arith.constant dense<0.000000e+00> : vector<2x32xf32>
    %200 = tpu.matmul %198, %13, %cst_52 {dimension_numbers = #tpu.dot_dimension_numbers<[1], [0], [0], [1], [0, 0, 1, 1], [], []>, precision = #tpu.contract_precision<fp32>} : vector<2x32xf32>, vector<32x32xf32>, vector<2x32xf32> -> vector<2x32xf32>
    %cst_53 = arith.constant dense<0.000000e+00> : vector<2x32xf32>
    %201 = tpu.matmul %198, %14, %cst_53 {dimension_numbers = #tpu.dot_dimension_numbers<[1], [0], [0], [1], [0, 0, 1, 1], [], []>, precision = #tpu.contract_precision<fp32>} : vector<2x32xf32>, vector<32x32xf32>, vector<2x32xf32> -> vector<2x32xf32>
    %202 = vector.extract_strided_slice %7 {offsets = [6, 0, 0], sizes = [1, 2, 32], strides = [1, 1, 1]} : vector<8x2x32xf32> to vector<1x2x32xf32>
    %203 = vector.shape_cast %202 : vector<1x2x32xf32> to vector<2x32xf32>
    %204 = arith.addf %203, %199 : vector<2x32xf32>
    %205 = arith.negf %204 : vector<2x32xf32>
    %206 = math.exp %205 : vector<2x32xf32>
    %cst_54 = arith.constant 1.000000e+00 : f32
    %207 = vector.broadcast %cst_54 : f32 to vector<2x32xf32>
    %208 = arith.addf %207, %206 : vector<2x32xf32>
    %209 = arith.divf %207, %208 : vector<2x32xf32>
    %210 = vector.extract_strided_slice %9 {offsets = [6, 0, 0], sizes = [1, 2, 32], strides = [1, 1, 1]} : vector<8x2x32xf32> to vector<1x2x32xf32>
    %211 = vector.shape_cast %210 : vector<1x2x32xf32> to vector<2x32xf32>
    %212 = arith.addf %211, %200 : vector<2x32xf32>
    %213 = arith.negf %212 : vector<2x32xf32>
    %214 = math.exp %213 : vector<2x32xf32>
    %cst_55 = arith.constant 1.000000e+00 : f32
    %215 = vector.broadcast %cst_55 : f32 to vector<2x32xf32>
    %216 = arith.addf %215, %214 : vector<2x32xf32>
    %217 = arith.divf %215, %216 : vector<2x32xf32>
    %218 = vector.extract_strided_slice %11 {offsets = [6, 0, 0], sizes = [1, 2, 32], strides = [1, 1, 1]} : vector<8x2x32xf32> to vector<1x2x32xf32>
    %219 = vector.shape_cast %218 : vector<1x2x32xf32> to vector<2x32xf32>
    %220 = arith.addf %201, %17 : vector<2x32xf32>
    %221 = arith.mulf %209, %220 : vector<2x32xf32>
    %222 = arith.addf %219, %221 : vector<2x32xf32>
    %223 = math.tanh %222 : vector<2x32xf32>
    %cst_56 = arith.constant 1.000000e+00 : f32
    %224 = vector.broadcast %cst_56 : f32 to vector<2x32xf32>
    %225 = arith.subf %224, %217 : vector<2x32xf32>
    %226 = arith.mulf %225, %223 : vector<2x32xf32>
    %227 = arith.mulf %217, %198 : vector<2x32xf32>
    %228 = arith.addf %226, %227 : vector<2x32xf32>
    %cst_57 = arith.constant dense<0.000000e+00> : vector<2x32xf32>
    %229 = tpu.matmul %228, %12, %cst_57 {dimension_numbers = #tpu.dot_dimension_numbers<[1], [0], [0], [1], [0, 0, 1, 1], [], []>, precision = #tpu.contract_precision<fp32>} : vector<2x32xf32>, vector<32x32xf32>, vector<2x32xf32> -> vector<2x32xf32>
    %cst_58 = arith.constant dense<0.000000e+00> : vector<2x32xf32>
    %230 = tpu.matmul %228, %13, %cst_58 {dimension_numbers = #tpu.dot_dimension_numbers<[1], [0], [0], [1], [0, 0, 1, 1], [], []>, precision = #tpu.contract_precision<fp32>} : vector<2x32xf32>, vector<32x32xf32>, vector<2x32xf32> -> vector<2x32xf32>
    %cst_59 = arith.constant dense<0.000000e+00> : vector<2x32xf32>
    %231 = tpu.matmul %228, %14, %cst_59 {dimension_numbers = #tpu.dot_dimension_numbers<[1], [0], [0], [1], [0, 0, 1, 1], [], []>, precision = #tpu.contract_precision<fp32>} : vector<2x32xf32>, vector<32x32xf32>, vector<2x32xf32> -> vector<2x32xf32>
    %232 = vector.extract_strided_slice %7 {offsets = [7, 0, 0], sizes = [1, 2, 32], strides = [1, 1, 1]} : vector<8x2x32xf32> to vector<1x2x32xf32>
    %233 = vector.shape_cast %232 : vector<1x2x32xf32> to vector<2x32xf32>
    %234 = arith.addf %233, %229 : vector<2x32xf32>
    %235 = arith.negf %234 : vector<2x32xf32>
    %236 = math.exp %235 : vector<2x32xf32>
    %cst_60 = arith.constant 1.000000e+00 : f32
    %237 = vector.broadcast %cst_60 : f32 to vector<2x32xf32>
    %238 = arith.addf %237, %236 : vector<2x32xf32>
    %239 = arith.divf %237, %238 : vector<2x32xf32>
    %240 = vector.extract_strided_slice %9 {offsets = [7, 0, 0], sizes = [1, 2, 32], strides = [1, 1, 1]} : vector<8x2x32xf32> to vector<1x2x32xf32>
    %241 = vector.shape_cast %240 : vector<1x2x32xf32> to vector<2x32xf32>
    %242 = arith.addf %241, %230 : vector<2x32xf32>
    %243 = arith.negf %242 : vector<2x32xf32>
    %244 = math.exp %243 : vector<2x32xf32>
    %cst_61 = arith.constant 1.000000e+00 : f32
    %245 = vector.broadcast %cst_61 : f32 to vector<2x32xf32>
    %246 = arith.addf %245, %244 : vector<2x32xf32>
    %247 = arith.divf %245, %246 : vector<2x32xf32>
    %248 = vector.extract_strided_slice %11 {offsets = [7, 0, 0], sizes = [1, 2, 32], strides = [1, 1, 1]} : vector<8x2x32xf32> to vector<1x2x32xf32>
    %249 = vector.shape_cast %248 : vector<1x2x32xf32> to vector<2x32xf32>
    %250 = arith.addf %231, %17 : vector<2x32xf32>
    %251 = arith.mulf %239, %250 : vector<2x32xf32>
    %252 = arith.addf %249, %251 : vector<2x32xf32>
    %253 = math.tanh %252 : vector<2x32xf32>
    %cst_62 = arith.constant 1.000000e+00 : f32
    %254 = vector.broadcast %cst_62 : f32 to vector<2x32xf32>
    %255 = arith.subf %254, %247 : vector<2x32xf32>
    %256 = arith.mulf %255, %253 : vector<2x32xf32>
    %257 = arith.mulf %247, %228 : vector<2x32xf32>
    %258 = arith.addf %256, %257 : vector<2x32xf32>
    %259 = tpu.concatenate %239, %247, %253, %258 in 1 : vector<2x32xf32>, vector<2x32xf32>, vector<2x32xf32>, vector<2x32xf32> -> vector<2x128xf32>
    %c0_63 = arith.constant 0 : index
    %c0_64 = arith.constant 0 : index
    %260 = vector.load %arg8[%c0_63, %c0_64] : memref<2x128xf32, #tpu.memory_space<vmem>>, vector<2x128xf32>
    tpu.vector_store %arg8[%c0_63, %c0_64], %259 {strides = array<i32>} : memref<2x128xf32, #tpu.memory_space<vmem>>, vector<2x128xf32>,
    return
  }
}

</mosaic_0001>

<bundles_post_ra>
// kernel: rnn_wrapper_forward.1
= control target key start
LH: loop header
LB: loop body
LE: loop exit
PB: predicated region body
PF: predicated region fallthrough
CT: control target
= control target key end

     0   :  { %13 = vsyncpa [#allocation3], 0  ;;  %s17458_s0 = inlined_call_operand.vmem [shape: f32[16,16], index: 0, kind: input, shape index: {}]   ;;  %s17459_s1 = inlined_call_operand.hbm [shape: f32[2,32], index: 1, kind: input, shape index: {}]   ;;  %s17460_s2 = inlined_call_operand.vmem [shape: f32[16,96], index: 2, kind: input, shape index: {}]   ;;  %s17461_s3 = inlined_call_operand.vmem [shape: f32[32,32], index: 3, kind: input, shape index: {}]   ;;  %s17462_s4 = inlined_call_operand.hbm [shape: f32[32,32], index: 4, kind: input, shape index: {}]   ;;  %s17463_s5 = inlined_call_operand.hbm [shape: f32[32,32], index: 5, kind: input, shape index: {}]   ;;  %s17464_s6 = inlined_call_operand.hbm [shape: f32[1,96], index: 6, kind: input, shape index: {}]   ;;  %s17465_s7 = inlined_call_operand.hbm [shape: f32[1,32], index: 7, kind: input, shape index: {}]   ;;  %s17466_s8 = inlined_call_operand.vmem [shape: f32[2,128], index: 8, kind: output, shape index: {}]  }
   0x1   :  { %14 = vsyncpa [#allocation5], 0 }
   0x2   :  { %15 = vsyncpa [#allocation8], 0  ;;  %s15347_s27 = smov [#allocation4]  }
   0x3   :  { %s37_s28 = sshll.u32 %s15347_s27, 4  ;;  %s38_s28 = int_to_ptr.vmem [resolvable:$true] %s37_s28 }
   0x4   :  { %s15249_s29 = scalar_lea.vmem %s38_s28, 512  ;;  %p15254_p1 = scmp.lt.s32.totalorder %s38_s28, %s38_s28 }
   0x5   :  { %p15250_p0 = scmp.ne.s32.totalorder %s38_s28, %s15249_s29  ;;  %p15255_p2 = scmp.lt.s32.totalorder %s15249_s29, %s15249_s29 }
   0x7   :  { %p15256_p3 = por %p15255_p2, %p15254_p1 }
   0x9   :  { %p15257_p4 = pnand %p15256_p3, %p15250_p0 }
   0xb   :  { %15260 = shalt.err (!%p15257_p4)
}
   0xc   :  { %s15348_s30 = smov 128   ;;  %s15349_s9 = smov 8  }
   0xd   :  { %43 = dma.hbm_to_vmem [thread:$0]  %s17462_s4, 512, %s38_s28, [#allocation5], %s15348_s30, %s15348_s30, %s15349_s9  }
   0xe   :  { %s15350_s12 = smov [#allocation7]   ;;  %s15351_s14 = smov [#allocation2]  }
   0xf   :  { %s62_s13 = sshll.u32 %s15350_s12, 4  ;;  %s24_s15 = sshll.u32 %s15351_s14, 4  ;;  %s63_s13 = int_to_ptr.vmem [resolvable:$true] %s62_s13  ;;  %s25_s15 = int_to_ptr.vmem [resolvable:$true] %s24_s15 }
  0x10   :  { %s15269_s16 = scalar_lea.vmem %s63_s13, 16  ;;  %s15273_s17 = scalar_lea.vmem %s63_s13, 32 }
  0x11   :  { %p15270_p5 = scmp.ne.s32.totalorder %s63_s13, %s15269_s16  ;;  %p15274_p6 = scmp.lt.s32.totalorder %s63_s13, %s63_s13 }
  0x12   :  { %p15275_p7 = scmp.lt.s32.totalorder %s15273_s17, %s15269_s16 }
  0x14   :  { %p15276_p8 = por %p15275_p7, %p15274_p6 }
  0x16   :  { %p15277_p9 = pnand %p15276_p8, %p15270_p5 }
  0x18   :  { %15280 = shalt.err (!%p15277_p9)
}
  0x19   :  { %65 = dma.hbm_to_vmem [thread:$0]  %s17464_s6, 16, %s63_s13, [#allocation8]  }
  0x1a   :  { %s15289_s20 = scalar_lea.vmem %s25_s15, 32  ;;  %p15294_p11 = scmp.lt.s32.totalorder %s25_s15, %s25_s15 }
  0x1b   :  { %p15290_p10 = scmp.ne.s32.totalorder %s25_s15, %s15289_s20  ;;  %p15295_p12 = scmp.lt.s32.totalorder %s15289_s20, %s15289_s20 }
  0x1d   :  { %p15296_p13 = por %p15295_p12, %p15294_p11 }
  0x1f   :  { %p15297_p0 = pnand %p15296_p13, %p15290_p10 }
  0x21   :  { %15300 = shalt.err (!%p15297_p0)
}
  0x22   :  { %27 = dma.hbm_to_vmem [thread:$0]  %s17459_s1, 32, %s25_s15, [#allocation3]  }
  0x23   :  { %s15352_s22 = smov [#allocation6]   ;;  %s15353_s24 = smov [#allocation9]  }
  0x24   :  { %s49_s23 = sshll.u32 %s15352_s22, 4  ;;  %s72_s25 = sshll.u32 %s15353_s24, 4  ;;  %s50_s23 = int_to_ptr.vmem [resolvable:$true] %s49_s23  ;;  %s73_s25 = int_to_ptr.vmem [resolvable:$true] %s72_s25 }
  0x25   :  { %s15309_s26 = scalar_lea.vmem %s50_s23, 512  ;;  %p15314_p2 = scmp.lt.s32.totalorder %s50_s23, %s50_s23 }
  0x26   :  { %p15310_p1 = scmp.ne.s32.totalorder %s50_s23, %s15309_s26  ;;  %p15315_p3 = scmp.lt.s32.totalorder %s15309_s26, %s15309_s26 }
  0x28   :  { %p15316_p4 = por %p15315_p3, %p15314_p2 }
  0x2a   :  { %p15317_p5 = pnand %p15316_p4, %p15310_p1 }
  0x2c   :  { %15320 = shalt.err (!%p15317_p5)
}
  0x2d   :  { %55 = dma.hbm_to_vmem [thread:$0]  %s17463_s5, 512, %s50_s23, [#allocation5], %s15348_s30, %s15348_s30, %s15349_s9  }
  0x2e   :  { %s15329_s1 = scalar_lea.vmem %s73_s25, 16  ;;  %s15333_s28 = scalar_lea.vmem %s73_s25, 32 }
  0x2f   :  { %p15330_p6 = scmp.ne.s32.totalorder %s73_s25, %s15329_s1  ;;  %p15334_p7 = scmp.lt.s32.totalorder %s73_s25, %s73_s25 }
  0x30   :  { %p15335_p8 = scmp.lt.s32.totalorder %s15333_s28, %s15329_s1 }
  0x32   :  { %p15336_p9 = por %p15335_p8, %p15334_p7 }
  0x34   :  { %p15337_p10 = pnand %p15336_p9, %p15330_p6 }
  0x36   :  { %15340 = shalt.err (!%p15337_p10)
}
  0x37   :  { %75 = dma.hbm_to_vmem [thread:$0]  %s17465_s7, 16, %s73_s25, [#allocation8]  }
  0x38   :  { %15341 = dma.done.wait [#allocation3], 32  }
  0x39   :  { %15342 = vsyncadd [#allocation3], 4294967264 }
  0x3a   :  { %15343 = dma.done.wait [#allocation5], 1024  }
  0x3b   :  { %15344 = vsyncadd [#allocation5], 4294966272 }
  0x3c   :  { %15345 = dma.done.wait [#allocation8], 32  }
  0x3d   :  { %15346 = vsyncadd [#allocation8], 4294967264  ;;  %vm102_vm0 = vcmask 130048   ;;  %v94_v0 = vld [vmem:[%s17460_s2 + $0x8] sm:$0xff]  ;;  %v93_v1 = vld [vmem:[%s17460_s2] sm:$0xff]  ;;  %vm675_vm1 = vcmask 261120  }
  0x3e   :  { %v91_v2 = vld [vmem:[%s17458_s0] sm:$0xff]  ;;  %v15435_v3 = vand.u32 4294901760, %v94_v0  ;;  %v15437_v4 = vand.u32 4294901760, %v93_v1  ;;  %v92_v5 = vld [vmem:[%s17458_s0 + $0x8] sm:$0xff]  ;;  %v658_v17 = vld [vmem:[%s17461_s3 + $0x18] sm:$0xff]  ;;  %v17475_v48 = vmov 0.0  }
  0x3f   :  { %v104_v6 = vsel %vm102_vm0, %v91_v2, 0  ;;  %v107_v7 = vsel %vm102_vm0, %v92_v5, 0  ;;  %v15458_v21 = vld [vmem:[#allocation2] sm:$0x3]  ;;  %v657_v23 = vld [vmem:[%s17461_s3 + $0x10] sm:$0xff]  ;;  %v15463_v27 = vand.u32 4294901760, %v658_v17 }
  0x40   :  { %v15442_v8 = vand.u32 4294901760, %v104_v6  ;;  %13519 = vmatprep.subr.mxu0 %v15435_v3  ;;  %v226_v9 = vsub.f32 %v94_v0, %v15435_v3  ;;  %v15446_v10 = vand.u32 4294901760, %v107_v7  ;;  %v233_v11 = vsub.f32 %v93_v1, %v15437_v4  ;;  %v656_v32 = vld [vmem:[%s17461_s3 + $0x8] sm:$0xff]  ;;  %v655_v34 = vld [vmem:[%s17461_s3] sm:$0xff]  ;;  %v661_v59 = vld [vmem:[#allocation4 + $0x10] sm:$0xff]  ;;  %s15357_s3 = smov 64  }
  0x41   :  { %13520 = vmatpush3.msra.mxu0 %v15435_v3  ;;  %v677_v29 = vsel %vm675_vm1, %v15458_v21, 0  ;;  %v15467_v31 = vand.u32 4294901760, %v657_v23  ;;  %v15473_v33 = vsub.f32 %v658_v17, %v15463_v27  ;;  %v15480_v36 = vand.u32 4294901760, %v656_v32  ;;  %v662_v58 = vld [vmem:[#allocation4 + $0x18] sm:$0xff]  ;;  %v660_v62 = vld [vmem:[#allocation4 + $0x8] sm:$0xff]  ;;  %v659_v0 = vld [vmem:[#allocation4] sm:$0xff] }
  0x42   :  { %v177_v12 = vsub.f32 %v104_v6, %v15442_v8  ;;  %13530 = vmatprep.mubr.f32.mxu1 %v15442_v8  ;;  %13521 = vmatprep.subr.mxu0 %v15437_v4  ;;  %v227_v13 = vand.u32 4294901760, %v226_v9  ;;  %v187_v14 = vsub.f32 %v107_v7, %v15446_v10  ;;  %v234_v15 = vand.u32 4294901760, %v233_v11  ;;  %s15358_s4 = smov 32   ;;  %s15359_s21 = smov 96  }
  0x43   :  { %13522 = vmatpush3.msra.mxu0 %v15437_v4  ;;  %v15478_v35 = vand.u32 4294901760, %v677_v29  ;;  %v15484_v37 = vsub.f32 %v657_v23, %v15467_v31  ;;  %v15487_v38 = vand.u32 4294901760, %v655_v34  ;;  %v15491_v39 = vand.u32 4294901760, %v15473_v33  ;;  %v664_v23 = vld [vmem:[#allocation6 + $0x8] sm:$0xff] }
  0x44   :  { %v178_v16 = vand.u32 4294901760, %v177_v12  ;;  %v228_v18 = vsub.f32 %v226_v9, %v227_v13  ;;  %13533 = vmatprep.subr.mxu0 %v226_v9  ;;  %v188_v19 = vand.u32 4294901760, %v187_v14  ;;  %v235_v20 = vsub.f32 %v233_v11, %v234_v15 }
  0x45   :  { %v15494_v40 = vsub.f32 %v677_v29, %v15478_v35  ;;  %v15497_v41 = vsub.f32 %v656_v32, %v15480_v36  ;;  %v15501_v42 = vand.u32 4294901760, %v15484_v37  ;;  %v15505_v43 = vsub.f32 %v655_v34, %v15487_v38 }
  0x46   :  { %v179_v22 = vsub.f32 %v177_v12, %v178_v16  ;;  %v229_v24 = vand.u32 4294901760, %v228_v18  ;;  %v189_v25 = vsub.f32 %v187_v14, %v188_v19  ;;  %v236_v26 = vand.u32 4294901760, %v235_v20  ;;  %v666_v18 = vld [vmem:[#allocation6 + $0x18] sm:$0xff] }
  0x47   :  { %v786_v44 = vsub.f32 %v15473_v33, %v15491_v39  ;;  %v15510_v45 = vand.u32 4294901760, %v15494_v40  ;;  %v15514_v46 = vand.u32 4294901760, %v15497_v41  ;;  %v793_v47 = vsub.f32 %v15484_v37, %v15501_v42 }
  0x48   :  { %v180_v28 = vand.u32 4294901760, %v179_v22  ;;  %13526 = vmatprep.subr.mxu1 %v229_v24  ;;  %v190_v30 = vand.u32 4294901760, %v189_v25  ;;  %v15523_v49 = vand.u32 4294901760, %v15505_v43  ;;  %vm15355_vm2 = vmmov 0   ;;  %v663_v25 = vld [vmem:[#allocation6] sm:$0xff] }
  0x49   :  { %13527 = vmatpush3.msra.mxu1 %v229_v24  ;;  %v15527_v50 = vand.u32 4294901760, %v786_v44  ;;  %v751_v51 = vsub.f32 %v15494_v40, %v15510_v45  ;;  %v800_v52 = vsub.f32 %v15497_v41, %v15514_v46  ;;  %v15537_v53 = vand.u32 4294901760, %v793_v47 }
  0x4a   :  { %13523 = vmatprep.mubr.f32.mxu0 %v180_v28  ;;  %13528 = vmatprep.subr.mxu1 %v236_v26  ;;  %v807_v54 = vsub.f32 %v15505_v43, %v15523_v49  ;;  %v15573_v60 = vand.u32 4294901760, %v662_v58  ;;  %v15579_v61 = vand.u32 4294901760, %v661_v59  ;;  %v15591_v1 = vand.u32 4294901760, %v660_v62 }
  0x4b   :  { %13524 = vmatmul.mubr.f32.vlgmr.msra.gmra.mxu0 %v190_v30  ;;  %13529 = vmatpush3.msra.mxu1 %v236_v26  ;;  %17512 = vst [vmem:[#allocation13_spill] sm:$0xff] %v15527_v50  ;;  %17513 = vst [vmem:[#allocation14_spill] sm:$0xff] %v15537_v53  ;;  %v15545_v55 = vand.u32 4294901760, %v751_v51  ;;  %v15549_v56 = vand.u32 4294901760, %v800_v52  ;;  %v15687_v20 = vand.u32 4294901760, %v666_v18  ;;  %v15705_v26 = vand.u32 4294901760, %v664_v23 }
  0x4c   :  { %13534 = vmatpush3.msra.mxu0 %v226_v9  ;;  %13531 = vmatmul.mubr.f32.vlgmr.msra.gmra.mxu1 %v15446_v10  ;;  %v15556_v57 = vand.u32 4294901760, %v807_v54  ;;  %v15587_v63 = vsub.f32 %v662_v58, %v15573_v60  ;;  %v15596_v2 = vsub.f32 %v661_v59, %v15579_v61  ;;  %v15611_v5 = vsub.f32 %v660_v62, %v15591_v1 }
  0x4d   :  { %13535 = vmatprep.subr.mxu0 %v233_v11  ;;  %13540 = vmatprep.subr.mxu1 %v15435_v3  ;;  %17514 = vst [vmem:[#allocation15_spill] sm:$0xff] %v15549_v56  ;;  %17516 = vst [vmem:[#allocation17_spill] sm:$0xff] %v15687_v20  ;;  %v15701_v24 = vsub.f32 %v666_v18, %v15687_v20  ;;  %v15715_v29 = vand.u32 4294901760, %v663_v25  ;;  %v15725_v32 = vsub.f32 %v664_v23, %v15705_v26  ;;  %vm12745_vm3 = vcmask 523264  }
  0x4e   :  { %13536 = vmatpush3.msra.mxu0 %v233_v11  ;;  %13537 = vmatprep.mubr.f32.mxu0 %v177_v12  ;;  %17515 = vst [vmem:[#allocation16_spill] sm:$0xff] %v15556_v57  ;;  %v15616_v6 = vand.u32 4294901760, %v15596_v2  ;;  %v15631_v9 = vand.u32 4294901760, %v15611_v5  ;;  %17519 = vst [vmem:[#allocation20_spill] sm:$0xff] %v15705_v26  ;;  %vm12747_vm4 = vcmask 785408  }
  0x4f   :  { %13541 = vmatpush3.msra.mxu1 %v15435_v3  ;;  %13547 = vmatprep.subr.mxu0 %v227_v13  ;;  %17518 = vst [vmem:[#allocation19_spill] sm:$0xff] %v15701_v24  ;;  %17521 = vst [vmem:[#allocation22_spill] sm:$0xff] %v15715_v29  ;;  %v15720_v30 = vand.u32 4294901760, %v15701_v24  ;;  %v15735_v44 = vsub.f32 %v663_v25, %v15715_v29  ;;  %v15745_v51 = vand.u32 4294901760, %v15725_v32 }
  0x50   :  { %13538 = vmatmul.mubr.f32.vlgmr.msra.gmra.mxu0 %v187_v14  ;;  %13542 = vmatprep.subr.mxu1 %v15437_v4  ;;  %17523 = vst [vmem:[#allocation24_spill] sm:$0xff] %v15725_v32 }
  0x51   :  { %13548 = vmatpush3.msra.mxu0 %v227_v13  ;;  %13543 = vmatpush3.msra.mxu1 %v15437_v4  ;;  %v1285_v13 = vsub.f32 %v15611_v5, %v15631_v9  ;;  %17522 = vst [vmem:[#allocation23_spill] sm:$0xff] %v15720_v30  ;;  %17525 = vst [vmem:[#allocation26_spill] sm:$0xff] %v15735_v44  ;;  %v1781_v47 = vsub.f32 %v15701_v24, %v15720_v30  ;;  %v15754_v54 = vand.u32 4294901760, %v15735_v44 }
  0x52   :  { %13544 = vmatprep.mubr.f32.mxu1 %v178_v16  ;;  %13549 = vmatprep.subr.mxu0 %v234_v15  ;;  %17526 = vst [vmem:[#allocation27_spill] sm:$0xff] %v15745_v51  ;;  %v1795_v59 = vsub.f32 %v15725_v32, %v15745_v51 }
  0x53   :  { %13545 = vmatmul.mubr.f32.vlgmr.msra.gmra.mxu1 %v188_v19  ;;  %13550 = vmatpush3.msra.mxu0 %v234_v15  ;;  %v15663_v16 = vand.u32 4294901760, %v1285_v13  ;;  %v665_v19 = vld [vmem:[#allocation6 + $0x10] sm:$0xff]  ;;  %17527 = vst [vmem:[#allocation28_spill] sm:$0xff] %v15754_v54  ;;  %v15758_v58 = vand.u32 4294901760, %v1781_v47 }
  0x54   :  { %13554 = vmatprep.subr.mxu1 %v15435_v3  ;;  %13551 = vmatprep.mubr.f32.mxu0 %v15442_v8  ;;  %v15693_v22 = vand.u32 4294901760, %v665_v19 }
  0x55   :  { %13555 = vmatpush3.msra.mxu1 %v15435_v3  ;;  %13561 = vmatprep.subr.mxu0 %v17475_v48  ;;  %v15601_v3 = vand.u32 4294901760, %v659_v0 }
  0x56   :  { %13552 = vmatmul.mubr.f32.vlgmr.msra.gmra.mxu0 %v15446_v10  ;;  %13556 = vmatprep.subr.mxu1 %v15437_v4  ;;  %17517 = vst [vmem:[#allocation18_spill] sm:$0xff] %v15693_v22  ;;  %v15710_v28 = vsub.f32 %v665_v19, %v15693_v22 }
  0x57   :  { %13562 = vmatpush3.msra.mxu0 %v15463_v27  ;;  %13557 = vmatpush3.msra.mxu1 %v15437_v4  ;;  %v15606_v4 = vand.u32 4294901760, %v15587_v63  ;;  %v15621_v7 = vsub.f32 %v659_v0, %v15601_v3  ;;  %v1802_v0 = vsub.f32 %v15735_v44, %v15754_v54 }
  0x58   :  { %13558 = vmatprep.mubr.f32.mxu1 %v15442_v8  ;;  %13563 = vmatprep.subr.mxu0 %v17475_v48  ;;  %17520 = vst [vmem:[#allocation21_spill] sm:$0xff] %v15710_v28  ;;  %v15730_v34 = vand.u32 4294901760, %v15710_v28 }
  0x59   :  { %13559 = vmatmul.mubr.f32.vlgmr.msra.gmra.mxu1 %v15446_v10  ;;  %13564 = vmatpush3.msra.mxu0 %v15467_v31  ;;  %v1271_v8 = vsub.f32 %v15587_v63, %v15606_v4  ;;  %v1278_v10 = vsub.f32 %v15596_v2, %v15616_v6  ;;  %v15640_v11 = vand.u32 4294901760, %v15621_v7 }
  0x5a   :  { %13572 = vmatprep.subr.mxu1 %v17475_v48  ;;  %13565 = vmatprep.subr.mxu0 %v17475_v48  ;;  %17524 = vst [vmem:[#allocation25_spill] sm:$0xff] %v15730_v34  ;;  %v1788_v52 = vsub.f32 %v15710_v28, %v15730_v34 }
  0x5b   :  { %13573 = vmatpush3.msra.mxu1 %v15527_v50  ;;  %13566 = vmatpush3.msra.mxu0 %v15480_v36  ;;  %v15644_v12 = vand.u32 4294901760, %v1271_v8  ;;  %v15653_v14 = vand.u32 4294901760, %v1278_v10  ;;  %v1292_v15 = vsub.f32 %v15621_v7, %v15640_v11  ;;  %v15777_v8 = vand.u32 4294901760, %v1795_v59 }
  0x5c   :  { %13574 = vmatprep.subr.mxu1 %v17475_v48  ;;  %13567 = vmatprep.subr.mxu0 %v17475_v48  ;;  %v15767_v62 = vand.u32 4294901760, %v1788_v52  ;;  %v15784_v10 = vand.u32 4294901760, %v1802_v0 }
  0x5d   :  { %13575 = vmatpush3.msra.mxu1 %v15537_v53  ;;  %13568 = vmatpush3.msra.mxu0 %v15487_v38  ;;  %v15670_v17 = vand.u32 4294901760, %v1292_v15 }
  0x5e   :  { %13569 = vmatprep.mubr.msk.f32.mxu0 %vm15355_vm2, %v17475_v48  ;;  %13576 = vmatprep.subr.mxu1 %v17475_v48 }
  0x5f   :  { %13570 = vmatmul.mubr.f32.vlgmr.msra.gmra.mxu0 %v15545_v55  ;;  %13577 = vmatpush3.msra.mxu1 %v15549_v56 }
  0x60   :  { %13583 = vmatprep.subr.mxu0 %v17475_v48  ;;  %13578 = vmatprep.subr.mxu1 %v17475_v48 }
  0x61   :  { %13584 = vmatpush3.msra.mxu0 %v15473_v33  ;;  %13579 = vmatpush3.msra.mxu1 %v15556_v57 }
  0x62   :  { %13580 = vmatprep.mubr.msk.f32.mxu1 %vm15355_vm2, %v17475_v48  ;;  %13585 = vmatprep.subr.mxu0 %v17475_v48 }
  0x63   :  { %13581 = vmatmul.mubr.f32.vlgmr.msra.gmra.mxu1 %v15478_v35  ;;  %13586 = vmatpush3.msra.mxu0 %v15484_v37 }
  0x64   :  { %13594 = vmatprep.subr.mxu1 %v17475_v48  ;;  %13587 = vmatprep.subr.mxu0 %v17475_v48 }
  0x65   :  { %13595 = vmatpush3.msra.mxu1 %v15463_v27  ;;  %13588 = vmatpush3.msra.mxu0 %v15497_v41 }
  0x66   :  { %13596 = vmatprep.subr.mxu1 %v17475_v48  ;;  %13589 = vmatprep.subr.mxu0 %v17475_v48 }
  0x67   :  { %13597 = vmatpush3.msra.mxu1 %v15467_v31  ;;  %13590 = vmatpush3.msra.mxu0 %v15505_v43 }
  0x68   :  { %13591 = vmatprep.mubr.msk.f32.mxu0 %vm15355_vm2, %v17475_v48  ;;  %13598 = vmatprep.subr.mxu1 %v17475_v48 }
  0x69   :  { %13592 = vmatmul.mubr.f32.vlgmr.msra.gmra.mxu0 %v15494_v40  ;;  %13599 = vmatpush3.msra.mxu1 %v15480_v36 }
  0x6a   :  { %13605 = vmatprep.subr.mxu0 %v17475_v48  ;;  %13600 = vmatprep.subr.mxu1 %v17475_v48 }
  0x6b   :  { %13606 = vmatpush3.msra.mxu0 %v15491_v39  ;;  %13601 = vmatpush3.msra.mxu1 %v15487_v38 }
  0x6c   :  { %13602 = vmatprep.mubr.msk.f32.mxu1 %vm15355_vm2, %v17475_v48  ;;  %13607 = vmatprep.subr.mxu0 %v17475_v48 }
  0x6d   :  { %13603 = vmatmul.mubr.f32.vlgmr.msra.gmra.mxu1 %v15510_v45  ;;  %13608 = vmatpush3.msra.mxu0 %v15501_v42 }
  0x6e   :  { %13616 = vmatprep.subr.mxu1 %v17475_v48  ;;  %13609 = vmatprep.subr.mxu0 %v17475_v48 }
  0x6f   :  { %13617 = vmatpush3.msra.mxu1 %v15463_v27  ;;  %13610 = vmatpush3.msra.mxu0 %v15514_v46 }
  0x70   :  { %13618 = vmatprep.subr.mxu1 %v17475_v48  ;;  %13611 = vmatprep.subr.mxu0 %v17475_v48 }
  0x71   :  { %13619 = vmatpush3.msra.mxu1 %v15467_v31  ;;  %13612 = vmatpush3.msra.mxu0 %v15523_v49 }
  0x72   :  { %13613 = vmatprep.mubr.msk.f32.mxu0 %vm15355_vm2, %v17475_v48  ;;  %13620 = vmatprep.subr.mxu1 %v17475_v48 }
  0x73   :  { %13614 = vmatmul.mubr.f32.vlgmr.msra.gmra.mxu0 %v15478_v35  ;;  %13621 = vmatpush3.msra.mxu1 %v15480_v36 }
  0x74   :  { %13627 = vmatprep.subr.mxu0 %v17475_v48  ;;  %13622 = vmatprep.subr.mxu1 %v17475_v48 }
  0x75   :  { %13628 = vmatpush3.msra.mxu0 %v15573_v60  ;;  %13623 = vmatpush3.msra.mxu1 %v15487_v38 }
  0x76   :  { %13624 = vmatprep.mubr.msk.f32.mxu1 %vm15355_vm2, %v17475_v48  ;;  %13629 = vmatprep.subr.mxu0 %v17475_v48 }
  0x77   :  { %13625 = vmatmul.mubr.f32.vlgmr.msra.gmra.mxu1 %v15478_v35  ;;  %13630 = vmatpush3.msra.mxu0 %v15579_v61 }
  0x78   :  { %13638 = vmatprep.subr.mxu1 %v17475_v48  ;;  %13631 = vmatprep.subr.mxu0 %v17475_v48 }
  0x79   :  { %13639 = vmatpush3.msra.mxu1 %v15644_v12  ;;  %13632 = vmatpush3.msra.mxu0 %v15591_v1 }
  0x7a   :  { %13640 = vmatprep.subr.mxu1 %v17475_v48  ;;  %13633 = vmatprep.subr.mxu0 %v17475_v48 }
  0x7b   :  { %13641 = vmatpush3.msra.mxu1 %v15653_v14  ;;  %13634 = vmatpush3.msra.mxu0 %v15601_v3 }
  0x7c   :  { %13635 = vmatprep.mubr.msk.f32.mxu0 %vm15355_vm2, %v17475_v48  ;;  %13642 = vmatprep.subr.mxu1 %v17475_v48 }
  0x7d   :  { %13636 = vmatmul.mubr.f32.vlgmr.msra.gmra.mxu0 %v15545_v55  ;;  %13643 = vmatpush3.msra.mxu1 %v15663_v16 }
  0x7e   :  { %13649 = vmatprep.subr.mxu0 %v17475_v48  ;;  %13644 = vmatprep.subr.mxu1 %v17475_v48 }
  0x7f   :  { %13650 = vmatpush3.msra.mxu0 %v15587_v63  ;;  %13645 = vmatpush3.msra.mxu1 %v15670_v17 }
  0x80   :  { %13646 = vmatprep.mubr.msk.f32.mxu1 %vm15355_vm2, %v17475_v48  ;;  %13651 = vmatprep.subr.mxu0 %v17475_v48 }
  0x81   :  { %13647 = vmatmul.mubr.f32.vlgmr.msra.gmra.mxu1 %v15478_v35  ;;  %13652 = vmatpush3.msra.mxu0 %v15596_v2 }
  0x82   :  { %13660 = vmatprep.subr.mxu1 %v17475_v48  ;;  %13653 = vmatprep.subr.mxu0 %v17475_v48 }
  0x83   :  { %13661 = vmatpush3.msra.mxu1 %v15573_v60  ;;  %13654 = vmatpush3.msra.mxu0 %v15611_v5 }
  0x84   :  { %13662 = vmatprep.subr.mxu1 %v17475_v48  ;;  %13655 = vmatprep.subr.mxu0 %v17475_v48 }
  0x85   :  { %13663 = vmatpush3.msra.mxu1 %v15579_v61  ;;  %13656 = vmatpush3.msra.mxu0 %v15621_v7 }
  0x86   :  { %13657 = vmatprep.mubr.msk.f32.mxu0 %vm15355_vm2, %v17475_v48  ;;  %13664 = vmatprep.subr.mxu1 %v17475_v48 }
  0x87   :  { %13658 = vmatmul.mubr.f32.vlgmr.msra.gmra.mxu0 %v15494_v40  ;;  %13665 = vmatpush3.msra.mxu1 %v15591_v1 }
  0x88   :  { %13671 = vmatprep.subr.mxu0 %v17475_v48  ;;  %13666 = vmatprep.subr.mxu1 %v17475_v48 }
  0x89   :  { %13672 = vmatpush3.msra.mxu0 %v15606_v4  ;;  %13667 = vmatpush3.msra.mxu1 %v15601_v3 }
  0x8a   :  { %13668 = vmatprep.mubr.msk.f32.mxu1 %vm15355_vm2, %v17475_v48  ;;  %13673 = vmatprep.subr.mxu0 %v17475_v48 }
  0x8b   :  { %13669 = vmatmul.mubr.f32.vlgmr.msra.gmra.mxu1 %v15510_v45  ;;  %13674 = vmatpush3.msra.mxu0 %v15616_v6 }
  0x8c   :  { %13682 = vmatprep.subr.mxu1 %v17475_v48  ;;  %13675 = vmatprep.subr.mxu0 %v17475_v48 }
  0x8d   :  { %13683 = vmatpush3.msra.mxu1 %v15573_v60  ;;  %13676 = vmatpush3.msra.mxu0 %v15631_v9 }
  0x8e   :  { %13684 = vmatprep.subr.mxu1 %v17475_v48  ;;  %13677 = vmatprep.subr.mxu0 %v17475_v48 }
  0x8f   :  { %13685 = vmatpush3.msra.mxu1 %v15579_v61  ;;  %13678 = vmatpush3.msra.mxu0 %v15640_v11 }
  0x90   :  { %13679 = vmatprep.mubr.msk.f32.mxu0 %vm15355_vm2, %v17475_v48  ;;  %13686 = vmatprep.subr.mxu1 %v17475_v48 }
  0x91   :  { %13680 = vmatmul.mubr.f32.vlgmr.msra.gmra.mxu0 %v15478_v35  ;;  %13687 = vmatpush3.msra.mxu1 %v15591_v1 }
  0x92   :  { %13693 = vmatprep.subr.mxu0 %v17475_v48  ;;  %13688 = vmatprep.subr.mxu1 %v17475_v48 }
  0x93   :  { %13694 = vmatpush3.msra.mxu0 %v15687_v20  ;;  %13689 = vmatpush3.msra.mxu1 %v15601_v3 }
  0x94   :  { %13690 = vmatprep.mubr.msk.f32.mxu1 %vm15355_vm2, %v17475_v48  ;;  %13695 = vmatprep.subr.mxu0 %v17475_v48 }
  0x95   :  { %13691 = vmatmul.mubr.f32.vlgmr.msra.gmra.mxu1 %v15478_v35  ;;  %13696 = vmatpush3.msra.mxu0 %v15693_v22 }
  0x96   :  { %13704 = vmatprep.subr.mxu1 %v17475_v48  ;;  %13697 = vmatprep.subr.mxu0 %v17475_v48 }
  0x97   :  { %13705 = vmatpush3.msra.mxu1 %v15758_v58  ;;  %13698 = vmatpush3.msra.mxu0 %v15705_v26 }
  0x98   :  { %13706 = vmatprep.subr.mxu1 %v17475_v48  ;;  %13699 = vmatprep.subr.mxu0 %v17475_v48 }
  0x99   :  { %13707 = vmatpush3.msra.mxu1 %v15767_v62  ;;  %13700 = vmatpush3.msra.mxu0 %v15715_v29 }
  0x9a   :  { %13701 = vmatprep.mubr.msk.f32.mxu0 %vm15355_vm2, %v17475_v48  ;;  %13708 = vmatprep.subr.mxu1 %v17475_v48 }
  0x9b   :  { %13702 = vmatmul.mubr.f32.vlgmr.msra.gmra.mxu0 %v15545_v55  ;;  %13709 = vmatpush3.msra.mxu1 %v15777_v8 }
  0x9c   :  { %13715 = vmatprep.subr.mxu0 %v17475_v48  ;;  %13710 = vmatprep.subr.mxu1 %v17475_v48 }
  0x9d   :  { %13716 = vmatpush3.msra.mxu0 %v15701_v24  ;;  %13711 = vmatpush3.msra.mxu1 %v15784_v10 }
  0x9e   :  { %13712 = vmatprep.mubr.msk.f32.mxu1 %vm15355_vm2, %v17475_v48  ;;  %13717 = vmatprep.subr.mxu0 %v17475_v48 }
  0x9f   :  { %13713 = vmatmul.mubr.f32.vlgmr.msra.gmra.mxu1 %v15478_v35  ;;  %13718 = vmatpush3.msra.mxu0 %v15710_v28 }
  0xa0   :  { %13726 = vmatprep.subr.mxu1 %v17475_v48  ;;  %13719 = vmatprep.subr.mxu0 %v17475_v48 }
  0xa1   :  { %13727 = vmatpush3.msra.mxu1 %v15687_v20  ;;  %13720 = vmatpush3.msra.mxu0 %v15725_v32 }
  0xa2   :  { %13728 = vmatprep.subr.mxu1 %v17475_v48  ;;  %13721 = vmatprep.subr.mxu0 %v17475_v48 }
  0xa3   :  { %13729 = vmatpush3.msra.mxu1 %v15693_v22  ;;  %13722 = vmatpush3.msra.mxu0 %v15735_v44 }
  0xa4   :  { %13723 = vmatprep.mubr.msk.f32.mxu0 %vm15355_vm2, %v17475_v48  ;;  %13730 = vmatprep.subr.mxu1 %v17475_v48 }
  0xa5   :  { %13724 = vmatmul.mubr.f32.vlgmr.msra.gmra.mxu0 %v15494_v40  ;;  %13731 = vmatpush3.msra.mxu1 %v15705_v26 }
  0xa6   :  { %13737 = vmatprep.subr.mxu0 %v17475_v48  ;;  %13732 = vmatprep.subr.mxu1 %v17475_v48 }
  0xa7   :  { %13738 = vmatpush3.msra.mxu0 %v15720_v30  ;;  %13733 = vmatpush3.msra.mxu1 %v15715_v29 }
  0xa8   :  { %13734 = vmatprep.mubr.msk.f32.mxu1 %vm15355_vm2, %v17475_v48  ;;  %13739 = vmatprep.subr.mxu0 %v17475_v48 }
  0xa9   :  { %13735 = vmatmul.mubr.f32.vlgmr.msra.gmra.mxu1 %v15510_v45  ;;  %13740 = vmatpush3.msra.mxu0 %v15730_v34 }
  0xaa   :  { %13748 = vmatprep.subr.mxu1 %v17475_v48  ;;  %13741 = vmatprep.subr.mxu0 %v17475_v48 }
  0xab   :  { %13749 = vmatpush3.msra.mxu1 %v15687_v20  ;;  %13742 = vmatpush3.msra.mxu0 %v15745_v51 }
  0xac   :  { %13750 = vmatprep.subr.mxu1 %v17475_v48  ;;  %13743 = vmatprep.subr.mxu0 %v17475_v48 }
  0xad   :  { %13751 = vmatpush3.msra.mxu1 %v15693_v22  ;;  %13744 = vmatpush3.msra.mxu0 %v15754_v54 }
  0xae   :  { %13745 = vmatprep.mubr.msk.f32.mxu0 %vm15355_vm2, %v17475_v48  ;;  %13752 = vmatprep.subr.mxu1 %v17475_v48 }
  0xaf   :  { %13746 = vmatmul.mubr.f32.vlgmr.msra.gmra.mxu0 %v15478_v35  ;;  %13753 = vmatpush3.msra.mxu1 %v15705_v26 }
  0xb0   :  { %13756 = vmatprep.mubr.msk.f32.mxu1 %vm15355_vm2, %v17475_v48  ;;  %13754 = vmatprep.subr.mxu1 %v17475_v48 }
  0xb1   :  { %13759 = vmatprep.subr.mxu0 %v17475_v48  ;;  %13755 = vmatpush3.msra.mxu1 %v15715_v29  ;;  %v617_v29 = vlaneseq }
  0xb2   :  { %13760 = vmatpush3.msra.mxu0 %v15463_v27  ;;  %13757 = vmatmul.mubr.f32.vlgmr.msra.gmra.mxu1 %v15478_v35  ;;  %v12757_v35 = vld [vmem:[#allocation7] ss:$0 sm:$0xff] }
  0xb3   :  { %13770 = vmatprep.subr.mxu1 %v17475_v48  ;;  %13778 = vmatprep.mubr.msk.f32.mxu1 %vm15355_vm2, %v17475_v48  ;;  %v618_v20 = vshrl.u32 %v617_v29, 7 }
  0xb4   :  { %13771 = vmatpush3.msra.mxu1 %v15527_v50  ;;  %13761 = vmatprep.subr.mxu0 %v17475_v48 }
  0xb5   :  { %13772 = vmatprep.subr.mxu1 %v17475_v48  ;;  %13762 = vmatpush3.msra.mxu0 %v15467_v31 }
  0xb6   :  { %13773 = vmatpush3.msra.mxu1 %v15537_v53  ;;  %13763 = vmatprep.subr.mxu0 %v17475_v48 }
  0xb7   :  { %13774 = vmatprep.subr.mxu1 %v17475_v48  ;;  %13764 = vmatpush3.msra.mxu0 %v15480_v36 }
  0xb8   :  { %13775 = vmatpush3.msra.mxu1 %v15549_v56  ;;  %13765 = vmatprep.subr.mxu0 %v17475_v48 }
  0xb9   :  { %13776 = vmatprep.subr.mxu1 %v17475_v48  ;;  %13766 = vmatpush3.msra.mxu0 %v15487_v38 }
  0xba   :  { %13777 = vmatpush3.msra.mxu1 %v15556_v57  ;;  %13767 = vmatprep.mubr.msk.f32.mxu0 %vm15355_vm2, %v17475_v48 }
  0xbb   :  { %13792 = vmatprep.subr.mxu1 %v17475_v48  ;;  %13781 = vmatprep.subr.mxu0 %v17475_v48 }
 0x10b   :  { %v13525_v40 = vpop.f32.mrf.mxu0 }
 0x10c   :  { %v193_v45 = vadd.f32 %v13525_v40, %v12757_v35  ;;  %v13532_v13 = vpop.f32.mrf.mxu1 }
 0x10d   :  { %v182_v55 = vpop.f32.mrf.mxu0 }
 0x10e   :  { %v280_v15 = vadd.f32 %v13532_v13, %v193_v45  ;;  %v273_v18 = vpop.f32.mrf.mxu1 }
 0x110   :  { %v13539_v19 = vpop.f32.mrf.mxu0 }
 0x111   :  { %v363_v23 = vadd.f32 %v13539_v19, %v280_v15  ;;  %v183_v15 = vadd.f32 %v12757_v35, %v182_v55 }
 0x112   :  { %v355_v25 = vpop.f32.mrf.mxu0 }
 0x113   :  { %v13546_v47 = vpop.f32.mrf.mxu1 }
 0x114   :  { %v446_v52 = vadd.f32 %v13546_v47, %v363_v23  ;;  %v274_v23 = vadd.f32 %v273_v18, %v183_v15 }
 0x115   :  { %v437_v59 = vpop.f32.mrf.mxu1 }
 0x116   :  { %v13553_v0 = vpop.f32.mrf.mxu0 }
 0x117   :  { %v529_v57 = vadd.f32 %v13553_v0, %v446_v52  ;;  %v356_v52 = vadd.f32 %v355_v25, %v274_v23 }
 0x118   :  { %v522_v53 = vpop.f32.mrf.mxu0 }
 0x119   :  { %v13560_v56 = vpop.f32.mrf.mxu1 }
 0x11a   :  { %v15860_v54 = vadd.f32 %v13560_v56, %v529_v57  ;;  %v438_v57 = vadd.f32 %v437_v59, %v356_v52 }
 0x11b   :  { %v601_v51 = vpop.f32.mrf.mxu1 }
 0x11c   :  { %17528 = vst [vmem:[#allocation29_spill] sm:$0xff] %v15860_v54  ;;  %v15356_v54 = vmov 1983009808   ;;  %v523_v22 = vadd.f32 %v522_v53, %v438_v57 }
 0x11d   :  { %v615_v24 = vunpack.c.l.s4 %v15356_v54 }
 0x11e   :  { %v15864_v18 = vadd.f32 %v601_v51, %v523_v22 }
 0x11f   :  { %v754_v48 = vpop.f32.mrf.mxu0 }
 0x120   :  { %17529 = vst [vmem:[#allocation30_spill] sm:$0xff] %v15864_v18 }
 0x121   :  { %v13571_v50 = vpop.f32.mrf.mxu0 }
 0x123   :  { %v845_v40 = vpop.f32.mrf.mxu1 }
 0x124   :  { %v846_v0 = vadd.f32 %v845_v40, %v754_v48 }
 0x125   :  { %v13582_v34 = vpop.f32.mrf.mxu1 }
 0x129   :  { %v925_v30 = vpop.f32.mrf.mxu0 }
 0x12a   :  { %v926_v50 = vadd.f32 %v925_v30, %v846_v0 }
 0x12b   :  { %v13593_v45 = vpop.f32.mrf.mxu0 }
 0x12c   :  { %v616_v45 = vunpack.c.0.s8 %v615_v24 }
 0x12d   :  { %v1002_v13 = vpop.f32.mrf.mxu1 }
 0x12f   :  { %v13604_v44 = vpop.f32.mrf.mxu1 }
 0x130   :  { %v1003_v44 = vadd.f32 %v1002_v13, %v926_v50 }
 0x133   :  { %v1085_v19 = vpop.f32.mrf.mxu0 }
 0x134   :  { %v1086_v55 = vadd.f32 %v1085_v19, %v1003_v44  ;;  %v15871_v19 = vld [vmem:[#allocation9] ss:$0 sm:$0xff] }
 0x135   :  { %v13615_v32 = vpop.f32.mrf.mxu0  ;;  %17530 = vst [vmem:[#allocation31_spill] sm:$0xff] %v15871_v19 }
 0x136   :  { %v15862_v32 = vsub.s32 %v616_v45, %v618_v20 }
 0x137   :  { %v1160_v47 = vpop.f32.mrf.mxu1 }
 0x138   :  { %v1161_v48 = vadd.f32 %v1160_v47, %v1086_v55  ;;  %v15868_v54 = vrot.slane %v15864_v18, %v15862_v32 }
 0x139   :  { %v13626_v28 = vpop.f32.mrf.mxu1 }
 0x13d   :  { %v1239_v56 = vpop.f32.mrf.mxu0 }
 0x13f   :  { %v13637_v26 = vpop.f32.mrf.mxu0 }
 0x140   :  { %v1649_v26 = vadd.f32 %v1161_v48, %v15868_v54 }
 0x141   :  { %v1330_v34 = vpop.f32.mrf.mxu1 }
 0x142   :  { %v12759_v24 = vmul.f32 -1.442695, %v1649_v26  ;;  %v1331_v44 = vadd.f32 %v1330_v34, %v1239_v56 }
 0x143   :  { %v13648_v35 = vpop.f32.mrf.mxu1 }
 0x144   :  { %15158 = vpow2.f32 %v12759_v24 }
 0x147   :  { %v1410_v28 = vpop.f32.mrf.mxu0 }
 0x148   :  { %v1411_v48 = vadd.f32 %v1410_v28, %v1331_v44 }
 0x149   :  { %v13659_v25 = vpop.f32.mrf.mxu0 }
 0x14b   :  { %v1487_v30 = vpop.f32.mrf.mxu1 }
 0x14d   :  { %v13670_v53 = vpop.f32.mrf.mxu1 }
 0x14e   :  { %v1488_v53 = vadd.f32 %v1487_v30, %v1411_v48 }
 0x151   :  { %v1570_v29 = vpop.f32.mrf.mxu0  ;;  %v15159_v15 = vpop.eup %15158 }
 0x152   :  { %v1653_v47 = vadd.f32 1.0, %v15159_v15 }
 0x153   :  { %v13681_v59 = vpop.f32.mrf.mxu0 }
 0x154   :  { %15160 = vrcp.f32 %v1653_v47 }
 0x155   :  { %v1645_v40 = vpop.f32.mrf.mxu1 }
 0x157   :  { %v13692_v20 = vpop.f32.mrf.mxu1 }
 0x158   :  { %v1571_v20 = vadd.f32 %v1570_v29, %v1488_v53  ;;  %v17531_v53 = vmov 0.0  }
 0x15b   :  { %v1749_v13 = vpop.f32.mrf.mxu0 }
 0x15c   :  { %v1750_v52 = vadd.f32 %v15871_v19, %v1749_v13  ;;  %v1646_v13 = vadd.f32 %v1645_v40, %v1571_v20 }
 0x15d   :  { %v13703_v22 = vpop.f32.mrf.mxu0 }
 0x15e   :  { %v1663_v56 = vrot.slane %v1646_v13, %v15862_v32  ;;  %v17535_v13 = vld [vmem:[#allocation22_spill] sm:$0xff] }
 0x15f   :  { %v1840_v51 = vpop.f32.mrf.mxu1 }
 0x160   :  { %v1841_v50 = vadd.f32 %v1840_v51, %v1750_v52 }
 0x161   :  { %v13714_v23 = vpop.f32.mrf.mxu1  ;;  %v15161_v15 = vpop.eup %15160 }
 0x165   :  { %v1920_v0 = vpop.f32.mrf.mxu0 }
 0x166   :  { %v1921_v35 = vadd.f32 %v1920_v0, %v1841_v50 }
 0x167   :  { %v13725_v57 = vpop.f32.mrf.mxu0 }
 0x169   :  { %v1997_v45 = vpop.f32.mrf.mxu1 }
 0x16a   :  { %v1998_v25 = vadd.f32 %v1997_v45, %v1921_v35 }
 0x16b   :  { %v13736_v55 = vpop.f32.mrf.mxu1 }
 0x16f   :  { %v2080_v26 = vpop.f32.mrf.mxu0 }
 0x170   :  { %v2081_v24 = vadd.f32 %v2080_v26, %v1998_v25 }
 0x171   :  { %v13747_v59 = vpop.f32.mrf.mxu0 }
 0x172   :  { %v2155_v22 = vpop.f32.mrf.mxu1 }
 0x173   :  { %v2156_v23 = vadd.f32 %v2155_v22, %v2081_v24  ;;  %v17532_v22 = vld [vmem:[#allocation17_spill] sm:$0xff] }
 0x174   :  { %v13758_v18 = vpop.f32.mrf.mxu1 }
 0x175   :  { %v2159_v19 = vmul.f32 %v15161_v15, %v2156_v23  ;;  %v2178_v18 = vrot.slane %v15458_v21, %v15862_v32  ;;  %v17533_v23 = vld [vmem:[#allocation18_spill] sm:$0xff]  ;;  %v17534_v15 = vld [vmem:[#allocation20_spill] sm:$0xff] }
 0x177   :  { %2161 = vrot.lane.b32.xlu0 %v2159_v19, %s15357_s3 }
 0x17b   :  { %1664 = vrot.lane.b32.xlu0 %v1663_v56, %s15358_s4  ;;  %v17536_v56 = vld [vmem:[#allocation19_spill] sm:$0xff] }
 0x1e9   :  { %v2162_v34 = vpop.permute.xlu0 %2161 }
 0x1ea   :  { %v2164_v28 = vadd.f32 %v2162_v34, %v15868_v54  ;;  %v17537_v34 = vld [vmem:[#allocation21_spill] sm:$0xff] }
 0x1ec   :  { %15162 = vtanh.f32 %v2164_v28  ;;  %v17538_v28 = vld [vmem:[#allocation24_spill] sm:$0xff] }
 0x1ed   :  { %v1665_v29 = vpop.permute.xlu0 %1664 }
 0x1ee   :  { %v1667_v40 = vadd.f32 %v1665_v29, %v15868_v54  ;;  %v17541_v29 = vld [vmem:[#allocation25_spill] sm:$0xff] }
 0x1f0   :  { %v12760_v51 = vmul.f32 -1.442695, %v1667_v40  ;;  %v17542_v40 = vld [vmem:[#allocation13_spill] sm:$0xff] }
 0x1f2   :  { %15164 = vpow2.f32 %v12760_v51  ;;  %v17543_v51 = vld [vmem:[#allocation27_spill] sm:$0xff] }
 0x1f9   :  { %v15163_v30 = vpop.eup %15162 }
 0x1fa   :  { %2168 = vrot.lane.b32.xlu1 %v15163_v30, %s15359_s21  ;;  %v17539_v30 = vld [vmem:[#allocation26_spill] sm:$0xff] }
 0x1fe   :  { %2179 = vrot.lane.b32.xlu1 %v2178_v18, %s15358_s4  ;;  %v17540_v18 = vld [vmem:[#allocation23_spill] sm:$0xff] }
 0x1ff   :  { %v15165_v19 = vpop.eup %15164 }
 0x200   :  { %v1671_v47 = vadd.f32 1.0, %v15165_v19  ;;  %v17544_v19 = vld [vmem:[#allocation14_spill] sm:$0xff] }
 0x202   :  { %15166 = vrcp.f32 %v1671_v47  ;;  %v17545_v47 = vld [vmem:[#allocation28_spill] sm:$0xff] }
 0x20f   :  { %v15167_v52 = vpop.eup %15166 }
 0x210   :  { %v2166_v57 = vsub.f32 1.0, %v15167_v52 }
 0x26c   :  { %v2169_v0 = vpop.permute.xlu1 %2168 }
 0x26d   :  { %v2171_v45 = vmul.f32 %v2169_v0, %v2166_v57  ;;  %v17547_v0 = vld [vmem:[#allocation16_spill] sm:$0xff] }
 0x270   :  { %v2180_v50 = vpop.permute.xlu1 %2179 }
 0x271   :  { %v2182_v44 = vmul.f32 %v15167_v52, %v2180_v50  ;;  %v17546_v52 = vld [vmem:[#allocation15_spill] sm:$0xff] }
 0x273   :  { %v15883_v35 = vadd.f32 %v2182_v44, %v2171_v45 }
 0x275   :  { %v2191_v21 = vrot.slane %v15883_v35, %v15862_v32 }
 0x277   :  { %2192 = vrot.lane.b32.xlu0 %v2191_v21, %s15359_s21 }
 0x2e9   :  { %v2193_v55 = vpop.permute.xlu0 %2192 }
 0x2ea   :  { %v2194_v48 = vsel %vm675_vm1, %v2193_v55, 0 }
 0x2eb   :  { %v15889_v25 = vand.u32 4294901760, %v2194_v48 }
 0x2ed   :  { %v15892_v26 = vsub.f32 %v2194_v48, %v15889_v25  ;;  %13779 = vmatmul.mubr.f32.vlgmr.msra.gmra.mxu1 %v15889_v25 }
 0x2ee   :  { %13793 = vmatpush3.msra.mxu1 %v15463_v27  ;;  %13800 = vmatprep.mubr.msk.f32.mxu1 %vm15355_vm2, %v17531_v53 }
 0x2ef   :  { %13794 = vmatprep.subr.mxu1 %v17531_v53  ;;  %v15900_v24 = vand.u32 4294901760, %v15892_v26 }
 0x2f0   :  { %13795 = vmatpush3.msra.mxu1 %v15467_v31 }
 0x2f1   :  { %13796 = vmatprep.subr.mxu1 %v17531_v53  ;;  %v2268_v59 = vsub.f32 %v15892_v26, %v15900_v24 }
 0x2f2   :  { %13797 = vmatpush3.msra.mxu1 %v15480_v36 }
 0x2f3   :  { %13798 = vmatprep.subr.mxu1 %v17531_v53  ;;  %v15908_v20 = vand.u32 4294901760, %v2268_v59 }
 0x2f4   :  { %13799 = vmatpush3.msra.mxu1 %v15487_v38 }
 0x2f5   :  { %13801 = vmatmul.mubr.f32.vlgmr.msra.gmra.mxu1 %v15900_v24  ;;  %13814 = vmatprep.subr.mxu1 %v17531_v53 }
 0x2f6   :  { %13768 = vmatmul.mubr.f32.vlgmr.msra.gmra.mxu0 %v15908_v20  ;;  %13815 = vmatpush3.msra.mxu1 %v15463_v27 }
 0x2f7   :  { %13782 = vmatpush3.msra.mxu0 %v15473_v33  ;;  %13816 = vmatprep.subr.mxu1 %v17531_v53 }
 0x2f8   :  { %13783 = vmatprep.subr.mxu0 %v17531_v53  ;;  %13817 = vmatpush3.msra.mxu1 %v15467_v31 }
 0x2f9   :  { %13784 = vmatpush3.msra.mxu0 %v15484_v37  ;;  %13818 = vmatprep.subr.mxu1 %v17531_v53 }
 0x2fa   :  { %13785 = vmatprep.subr.mxu0 %v17531_v53  ;;  %13819 = vmatpush3.msra.mxu1 %v15480_v36 }
 0x2fb   :  { %13786 = vmatpush3.msra.mxu0 %v15497_v41  ;;  %13820 = vmatprep.subr.mxu1 %v17531_v53 }
 0x2fc   :  { %13787 = vmatprep.subr.mxu0 %v17531_v53  ;;  %13789 = vmatprep.mubr.msk.f32.mxu0 %vm15355_vm2, %v17531_v53 }
 0x2fd   :  { %13788 = vmatpush3.msra.mxu0 %v15505_v43  ;;  %13821 = vmatpush3.msra.mxu1 %v15487_v38 }
 0x2fe   :  { %13822 = vmatprep.mubr.msk.f32.mxu1 %vm15355_vm2, %v17531_v53  ;;  %13790 = vmatmul.mubr.f32.vlgmr.msra.gmra.mxu0 %v15892_v26 }
 0x2ff   :  { %13803 = vmatprep.subr.mxu0 %v17531_v53  ;;  %13823 = vmatmul.mubr.f32.vlgmr.msra.gmra.mxu1 %v15889_v25 }
 0x300   :  { %13836 = vmatprep.subr.mxu1 %v17531_v53  ;;  %13804 = vmatpush3.msra.mxu0 %v15491_v39 }
 0x301   :  { %13837 = vmatpush3.msra.mxu1 %v15644_v12  ;;  %13805 = vmatprep.subr.mxu0 %v17531_v53 }
 0x302   :  { %13838 = vmatprep.subr.mxu1 %v17531_v53  ;;  %13806 = vmatpush3.msra.mxu0 %v15501_v42 }
 0x303   :  { %13839 = vmatpush3.msra.mxu1 %v15653_v14  ;;  %13807 = vmatprep.subr.mxu0 %v17531_v53 }
 0x304   :  { %13840 = vmatprep.subr.mxu1 %v17531_v53  ;;  %13808 = vmatpush3.msra.mxu0 %v15514_v46 }
 0x305   :  { %13841 = vmatpush3.msra.mxu1 %v15663_v16  ;;  %13809 = vmatprep.subr.mxu0 %v17531_v53 }
 0x306   :  { %13842 = vmatprep.subr.mxu1 %v17531_v53  ;;  %13810 = vmatpush3.msra.mxu0 %v15523_v49 }
 0x307   :  { %13811 = vmatprep.mubr.msk.f32.mxu0 %vm15355_vm2, %v17531_v53  ;;  %13843 = vmatpush3.msra.mxu1 %v15670_v17 }
 0x308   :  { %13844 = vmatprep.mubr.msk.f32.mxu1 %vm15355_vm2, %v17531_v53  ;;  %13812 = vmatmul.mubr.f32.vlgmr.msra.gmra.mxu0 %v15889_v25 }
 0x309   :  { %13825 = vmatprep.subr.mxu0 %v17531_v53  ;;  %13845 = vmatmul.mubr.f32.vlgmr.msra.gmra.mxu1 %v15889_v25 }
 0x30a   :  { %13858 = vmatprep.subr.mxu1 %v17531_v53  ;;  %13826 = vmatpush3.msra.mxu0 %v15573_v60 }
 0x30b   :  { %13859 = vmatpush3.msra.mxu1 %v15573_v60  ;;  %13827 = vmatprep.subr.mxu0 %v17531_v53 }
 0x30c   :  { %13860 = vmatprep.subr.mxu1 %v17531_v53  ;;  %13828 = vmatpush3.msra.mxu0 %v15579_v61 }
 0x30d   :  { %13861 = vmatpush3.msra.mxu1 %v15579_v61  ;;  %13829 = vmatprep.subr.mxu0 %v17531_v53 }
 0x30e   :  { %13862 = vmatprep.subr.mxu1 %v17531_v53  ;;  %13830 = vmatpush3.msra.mxu0 %v15591_v1 }
 0x30f   :  { %13863 = vmatpush3.msra.mxu1 %v15591_v1  ;;  %13831 = vmatprep.subr.mxu0 %v17531_v53 }
 0x310   :  { %13864 = vmatprep.subr.mxu1 %v17531_v53  ;;  %13832 = vmatpush3.msra.mxu0 %v15601_v3 }
 0x311   :  { %13833 = vmatprep.mubr.msk.f32.mxu0 %vm15355_vm2, %v17531_v53  ;;  %13865 = vmatpush3.msra.mxu1 %v15601_v3 }
 0x312   :  { %13866 = vmatprep.mubr.msk.f32.mxu1 %vm15355_vm2, %v17531_v53  ;;  %13834 = vmatmul.mubr.f32.vlgmr.msra.gmra.mxu0 %v15908_v20 }
 0x313   :  { %13847 = vmatprep.subr.mxu0 %v17531_v53  ;;  %13867 = vmatmul.mubr.f32.vlgmr.msra.gmra.mxu1 %v15900_v24 }
 0x314   :  { %13880 = vmatprep.subr.mxu1 %v17531_v53  ;;  %13848 = vmatpush3.msra.mxu0 %v15587_v63 }
 0x315   :  { %13881 = vmatpush3.msra.mxu1 %v15573_v60  ;;  %13849 = vmatprep.subr.mxu0 %v17531_v53 }
 0x316   :  { %13882 = vmatprep.subr.mxu1 %v17531_v53  ;;  %13850 = vmatpush3.msra.mxu0 %v15596_v2 }
 0x317   :  { %13883 = vmatpush3.msra.mxu1 %v15579_v61  ;;  %13851 = vmatprep.subr.mxu0 %v17531_v53 }
 0x318   :  { %13884 = vmatprep.subr.mxu1 %v17531_v53  ;;  %13852 = vmatpush3.msra.mxu0 %v15611_v5 }
 0x319   :  { %13885 = vmatpush3.msra.mxu1 %v15591_v1  ;;  %13853 = vmatprep.subr.mxu0 %v17531_v53 }
 0x31a   :  { %13886 = vmatprep.subr.mxu1 %v17531_v53  ;;  %13854 = vmatpush3.msra.mxu0 %v15621_v7 }
 0x31b   :  { %13855 = vmatprep.mubr.msk.f32.mxu0 %vm15355_vm2, %v17531_v53  ;;  %13887 = vmatpush3.msra.mxu1 %v15601_v3 }
 0x31c   :  { %13888 = vmatprep.mubr.msk.f32.mxu1 %vm15355_vm2, %v17531_v53  ;;  %13856 = vmatmul.mubr.f32.vlgmr.msra.gmra.mxu0 %v15892_v26 }
 0x31d   :  { %13869 = vmatprep.subr.mxu0 %v17531_v53  ;;  %13889 = vmatmul.mubr.f32.vlgmr.msra.gmra.mxu1 %v15889_v25 }
 0x31e   :  { %13902 = vmatprep.subr.mxu1 %v17531_v53  ;;  %13870 = vmatpush3.msra.mxu0 %v15606_v4 }
 0x31f   :  { %13903 = vmatpush3.msra.mxu1 %v15758_v58  ;;  %13871 = vmatprep.subr.mxu0 %v17531_v53 }
 0x320   :  { %13904 = vmatprep.subr.mxu1 %v17531_v53  ;;  %13872 = vmatpush3.msra.mxu0 %v15616_v6 }
 0x321   :  { %13905 = vmatpush3.msra.mxu1 %v15767_v62  ;;  %13873 = vmatprep.subr.mxu0 %v17531_v53 }
 0x322   :  { %13906 = vmatprep.subr.mxu1 %v17531_v53  ;;  %13874 = vmatpush3.msra.mxu0 %v15631_v9 }
 0x323   :  { %13907 = vmatpush3.msra.mxu1 %v15777_v8  ;;  %13875 = vmatprep.subr.mxu0 %v17531_v53 }
 0x324   :  { %13908 = vmatprep.subr.mxu1 %v17531_v53  ;;  %13876 = vmatpush3.msra.mxu0 %v15640_v11 }
 0x325   :  { %13877 = vmatprep.mubr.msk.f32.mxu0 %vm15355_vm2, %v17531_v53  ;;  %13909 = vmatpush3.msra.mxu1 %v15784_v10 }
 0x326   :  { %13910 = vmatprep.mubr.msk.f32.mxu1 %vm15355_vm2, %v17531_v53  ;;  %13878 = vmatmul.mubr.f32.vlgmr.msra.gmra.mxu0 %v15889_v25 }
 0x327   :  { %13891 = vmatprep.subr.mxu0 %v17531_v53  ;;  %13911 = vmatmul.mubr.f32.vlgmr.msra.gmra.mxu1 %v15889_v25 }
 0x328   :  { %13924 = vmatprep.subr.mxu1 %v17531_v53  ;;  %13892 = vmatpush3.msra.mxu0 %v17532_v22 }
 0x329   :  { %13925 = vmatpush3.msra.mxu1 %v17532_v22  ;;  %13893 = vmatprep.subr.mxu0 %v17531_v53 }
 0x32a   :  { %13926 = vmatprep.subr.mxu1 %v17531_v53  ;;  %13894 = vmatpush3.msra.mxu0 %v17533_v23 }
 0x32b   :  { %13927 = vmatpush3.msra.mxu1 %v17533_v23  ;;  %13895 = vmatprep.subr.mxu0 %v17531_v53 }
 0x32c   :  { %13928 = vmatprep.subr.mxu1 %v17531_v53  ;;  %13896 = vmatpush3.msra.mxu0 %v17534_v15 }
 0x32d   :  { %13929 = vmatpush3.msra.mxu1 %v17534_v15  ;;  %13897 = vmatprep.subr.mxu0 %v17531_v53 }
 0x32e   :  { %13930 = vmatprep.subr.mxu1 %v17531_v53  ;;  %13898 = vmatpush3.msra.mxu0 %v17535_v13 }
 0x32f   :  { %13899 = vmatprep.mubr.msk.f32.mxu0 %vm15355_vm2, %v17531_v53  ;;  %13931 = vmatpush3.msra.mxu1 %v17535_v13 }
 0x330   :  { %13932 = vmatprep.mubr.msk.f32.mxu1 %vm15355_vm2, %v17531_v53  ;;  %13900 = vmatmul.mubr.f32.vlgmr.msra.gmra.mxu0 %v15908_v20 }
 0x331   :  { %13913 = vmatprep.subr.mxu0 %v17531_v53  ;;  %13933 = vmatmul.mubr.f32.vlgmr.msra.gmra.mxu1 %v15900_v24 }
 0x332   :  { %13946 = vmatprep.subr.mxu1 %v17531_v53  ;;  %13914 = vmatpush3.msra.mxu0 %v17536_v56 }
 0x333   :  { %13947 = vmatpush3.msra.mxu1 %v17532_v22  ;;  %13915 = vmatprep.subr.mxu0 %v17531_v53 }
 0x334   :  { %13948 = vmatprep.subr.mxu1 %v17531_v53  ;;  %13916 = vmatpush3.msra.mxu0 %v17537_v34 }
 0x335   :  { %13949 = vmatpush3.msra.mxu1 %v17533_v23  ;;  %13917 = vmatprep.subr.mxu0 %v17531_v53 }
 0x336   :  { %13950 = vmatprep.subr.mxu1 %v17531_v53  ;;  %13918 = vmatpush3.msra.mxu0 %v17538_v28 }
 0x337   :  { %13951 = vmatpush3.msra.mxu1 %v17534_v15  ;;  %13919 = vmatprep.subr.mxu0 %v17531_v53 }
 0x338   :  { %13952 = vmatprep.subr.mxu1 %v17531_v53  ;;  %13920 = vmatpush3.msra.mxu0 %v17539_v30 }
 0x339   :  { %13921 = vmatprep.mubr.msk.f32.mxu0 %vm15355_vm2, %v17531_v53  ;;  %13953 = vmatpush3.msra.mxu1 %v17535_v13 }
 0x33a   :  { %13954 = vmatprep.mubr.msk.f32.mxu1 %vm15355_vm2, %v17531_v53  ;;  %13922 = vmatmul.mubr.f32.vlgmr.msra.gmra.mxu0 %v15892_v26 }
 0x33b   :  { %13935 = vmatprep.subr.mxu0 %v17531_v53  ;;  %13955 = vmatmul.mubr.f32.vlgmr.msra.gmra.mxu1 %v15889_v25 }
 0x33c   :  { %13936 = vmatpush3.msra.mxu0 %v17540_v18  ;;  %13943 = vmatprep.mubr.msk.f32.mxu0 %vm15355_vm2, %v17531_v53 }
 0x33d   :  { %13937 = vmatprep.subr.mxu0 %v17531_v53  ;;  %13968 = vmatprep.subr.mxu1 %v17531_v53 }
 0x33e   :  { %13938 = vmatpush3.msra.mxu0 %v17541_v29  ;;  %13969 = vmatpush3.msra.mxu1 %v17542_v40 }
 0x33f   :  { %13939 = vmatprep.subr.mxu0 %v17531_v53  ;;  %13970 = vmatprep.subr.mxu1 %v17531_v53 }
 0x340   :  { %13940 = vmatpush3.msra.mxu0 %v17543_v51  ;;  %13971 = vmatpush3.msra.mxu1 %v17544_v19 }
 0x341   :  { %13941 = vmatprep.subr.mxu0 %v17531_v53  ;;  %13972 = vmatprep.subr.mxu1 %v17531_v53 }
 0x342   :  { %13942 = vmatpush3.msra.mxu0 %v17545_v47  ;;  %13973 = vmatpush3.msra.mxu1 %v17546_v52 }
 0x343   :  { %13944 = vmatmul.mubr.f32.vlgmr.msra.gmra.mxu0 %v15889_v25  ;;  %13974 = vmatprep.subr.mxu1 %v17531_v53 }
 0x344   :  { %13975 = vmatpush3.msra.mxu1 %v17547_v0  ;;  %13957 = vmatprep.subr.mxu0 %v17531_v53 }
 0x345   :  { %13976 = vmatprep.mubr.msk.f32.mxu1 %vm15355_vm2, %v17531_v53  ;;  %13990 = vmatprep.subr.mxu1 %v17531_v53 }
 0x346   :  { %13958 = vmatpush3.msra.mxu0 %v15463_v27  ;;  %13965 = vmatprep.mubr.msk.f32.mxu0 %vm15355_vm2, %v17531_v53 }
 0x347   :  { %13959 = vmatprep.subr.mxu0 %v17531_v53 }
 0x348   :  { %13960 = vmatpush3.msra.mxu0 %v15467_v31 }
 0x349   :  { %13961 = vmatprep.subr.mxu0 %v17531_v53 }
 0x34a   :  { %13962 = vmatpush3.msra.mxu0 %v15480_v36 }
 0x34b   :  { %13963 = vmatprep.subr.mxu0 %v17531_v53 }
 0x34c   :  { %13964 = vmatpush3.msra.mxu0 %v15487_v38 }
 0x34d   :  { %13979 = vmatprep.subr.mxu0 %v17531_v53 }
 0x3ad   :  { %v2362_v57 = vpop.f32.mrf.mxu1 }
 0x3af   :  { %v13780_v50 = vpop.f32.mrf.mxu1 }
 0x3b5   :  { %v2519_v45 = vpop.f32.mrf.mxu1 }
 0x3b6   :  { %v2271_v44 = vpop.f32.mrf.mxu0 }
 0x3b7   :  { %v13802_v21 = vpop.f32.mrf.mxu1  ;;  %v2363_v47 = vadd.f32 %v2362_v57, %v2271_v44 }
 0x3b8   :  { %v13769_v55 = vpop.f32.mrf.mxu0  ;;  %v628_v21 = vcombine.high %v15868_v54, %v15868_v54 }
 0x3be   :  { %v2442_v48 = vpop.f32.mrf.mxu0 }
 0x3bf   :  { %v2677_v25 = vpop.f32.mrf.mxu1  ;;  %v2443_v19 = vadd.f32 %v2442_v48, %v2363_v47 }
 0x3c0   :  { %v13791_v26 = vpop.f32.mrf.mxu0 }
 0x3c1   :  { %v13824_v24 = vpop.f32.mrf.mxu1  ;;  %v2520_v29 = vadd.f32 %v2519_v45, %v2443_v19 }
 0x3c8   :  { %v2602_v59 = vpop.f32.mrf.mxu0 }
 0x3c9   :  { %v2847_v20 = vpop.f32.mrf.mxu1  ;;  %v2603_v50 = vadd.f32 %v2602_v59, %v2520_v29 }
 0x3ca   :  { %v13813_v0 = vpop.f32.mrf.mxu0 }
 0x3cb   :  { %v13846_v52 = vpop.f32.mrf.mxu1  ;;  %v2678_v28 = vadd.f32 %v2677_v25, %v2603_v50 }
 0x3cd   :  { %v3166_v26 = vadd.f32 %v2678_v28, %v628_v21 }
 0x3cf   :  { %v12761_v52 = vmul.f32 -1.442695, %v3166_v26 }
 0x3d1   :  { %15168 = vpow2.f32 %v12761_v52 }
 0x3d2   :  { %v2756_v51 = vpop.f32.mrf.mxu0 }
 0x3d3   :  { %v3004_v40 = vpop.f32.mrf.mxu1  ;;  %v2848_v56 = vadd.f32 %v2847_v20, %v2756_v51 }
 0x3d4   :  { %v13835_v18 = vpop.f32.mrf.mxu0 }
 0x3d5   :  { %v13868_v30 = vpop.f32.mrf.mxu1 }
 0x3dc   :  { %v2927_v55 = vpop.f32.mrf.mxu0 }
 0x3dd   :  { %v3162_v34 = vpop.f32.mrf.mxu1  ;;  %v2928_v0 = vadd.f32 %v2927_v55, %v2848_v56  ;;  %v17548_v56 = vld [vmem:[#allocation31_spill] sm:$0xff] }
 0x3de   :  { %v13857_v24 = vpop.f32.mrf.mxu0  ;;  %v15169_v25 = vpop.eup %15168 }
 0x3df   :  { %v13890_v13 = vpop.f32.mrf.mxu1  ;;  %v3005_v57 = vadd.f32 %v3004_v40, %v2928_v0 }
 0x3e0   :  { %v3170_v13 = vadd.f32 1.0, %v15169_v25 }
 0x3e2   :  { %15170 = vrcp.f32 %v3170_v13 }
 0x3e6   :  { %v3087_v47 = vpop.f32.mrf.mxu0 }
 0x3e7   :  { %v3088_v44 = vadd.f32 %v3087_v47, %v3005_v57  ;;  %v3357_v19 = vpop.f32.mrf.mxu1 }
 0x3e8   :  { %v13879_v18 = vpop.f32.mrf.mxu0 }
 0x3e9   :  { %v3163_v30 = vadd.f32 %v3162_v34, %v3088_v44  ;;  %v13912_v29 = vpop.f32.mrf.mxu1 }
 0x3eb   :  { %v3180_v45 = vrot.slane %v3163_v30, %v15862_v32 }
 0x3ed   :  { %3181 = vrot.lane.b32.xlu0 %v3180_v45, %s15358_s4 }
 0x3ef   :  { %v15171_v44 = vpop.eup %15170 }
 0x3f0   :  { %v3266_v54 = vpop.f32.mrf.mxu0 }
 0x3f1   :  { %v3514_v48 = vpop.f32.mrf.mxu1  ;;  %v3267_v59 = vadd.f32 %v17548_v56, %v3266_v54 }
 0x3f2   :  { %v13901_v28 = vpop.f32.mrf.mxu0 }
 0x3f3   :  { %v13934_v51 = vpop.f32.mrf.mxu1  ;;  %v3358_v50 = vadd.f32 %v3357_v19, %v3267_v59 }
 0x3fa   :  { %v3437_v40 = vpop.f32.mrf.mxu0 }
 0x3fb   :  { %v3672_v20 = vpop.f32.mrf.mxu1  ;;  %v3438_v34 = vadd.f32 %v3437_v40, %v3358_v50 }
 0x3fc   :  { %v13923_v55 = vpop.f32.mrf.mxu0 }
 0x3fd   :  { %v13956_v26 = vpop.f32.mrf.mxu1  ;;  %v3515_v24 = vadd.f32 %v3514_v48, %v3438_v34 }
 0x403   :  { %v3597_v0 = vpop.f32.mrf.mxu0 }
 0x404   :  { %v3598_v52 = vadd.f32 %v3597_v0, %v3515_v24 }
 0x405   :  { %v13945_v57 = vpop.f32.mrf.mxu0 }
 0x406   :  { %v3673_v47 = vadd.f32 %v3672_v20, %v3598_v52  ;;  %v17549_v52 = vld [vmem:[#allocation22_spill] sm:$0xff]  ;;  %v17550_v57 = vld [vmem:[#allocation19_spill] sm:$0xff] }
 0x408   :  { %v3676_v18 = vmul.f32 %v15171_v44, %v3673_v47  ;;  %v17551_v47 = vld [vmem:[#allocation21_spill] sm:$0xff]  ;;  %v17552_v44 = vld [vmem:[#allocation24_spill] sm:$0xff] }
 0x40a   :  { %3678 = vrot.lane.b32.xlu1 %v3676_v18, %s15357_s3  ;;  %v17553_v18 = vld [vmem:[#allocation26_spill] sm:$0xff] }
 0x45f   :  { %v3182_v54 = vpop.permute.xlu0 %3181 }
 0x460   :  { %v3184_v19 = vadd.f32 %v3182_v54, %v628_v21  ;;  %v17557_v54 = vld [vmem:[#allocation27_spill] sm:$0xff] }
 0x462   :  { %v12762_v28 = vmul.f32 -1.442695, %v3184_v19  ;;  %v17558_v19 = vld [vmem:[#allocation14_spill] sm:$0xff] }
 0x47c   :  { %v3679_v30 = vpop.permute.xlu1 %3678 }
 0x47d   :  { %v3681_v29 = vadd.f32 %v3679_v30, %v628_v21  ;;  %v17554_v30 = vld [vmem:[#allocation23_spill] sm:$0xff] }
 0x47f   :  { %15172 = vtanh.f32 %v3681_v29  ;;  %v17555_v29 = vld [vmem:[#allocation25_spill] sm:$0xff] }
 0x480   :  { %15174 = vpow2.f32 %v12762_v28  ;;  %v17559_v28 = vld [vmem:[#allocation28_spill] sm:$0xff] }
 0x48c   :  { %v15173_v45 = vpop.eup %15172 }
 0x48d   :  { %3685 = vrot.lane.b32.xlu1 %v15173_v45, %s15359_s21  ;;  %v15175_v25 = vpop.eup %15174  ;;  %v17556_v45 = vld [vmem:[#allocation13_spill] sm:$0xff] }
 0x48e   :  { %v3188_v48 = vadd.f32 1.0, %v15175_v25  ;;  %v17560_v25 = vld [vmem:[#allocation15_spill] sm:$0xff] }
 0x490   :  { %15176 = vrcp.f32 %v3188_v48  ;;  %v17561_v48 = vld [vmem:[#allocation16_spill] sm:$0xff] }
 0x49d   :  { %v15177_v51 = vpop.eup %15176 }
 0x49e   :  { %v3683_v13 = vsub.f32 1.0, %v15177_v51  ;;  %v3689_v59 = vmul.f32 %v15177_v51, %v15883_v35 }
 0x4ff   :  { %v3686_v56 = vpop.permute.xlu1 %3685 }
 0x500   :  { %v3688_v40 = vmul.f32 %v3686_v56, %v3683_v13 }
 0x502   :  { %v16107_v20 = vadd.f32 %v3689_v59, %v3688_v40 }
 0x504   :  { %v3698_v50 = vrot.slane %v16107_v20, %v15862_v32 }
 0x506   :  { %3699 = vrot.lane.b32.xlu0 %v3698_v50, %s15359_s21 }
 0x578   :  { %v3700_v55 = vpop.permute.xlu0 %3699 }
 0x579   :  { %v3701_v21 = vsel %vm675_vm1, %v3700_v55, 0 }
 0x57a   :  { %v16113_v26 = vand.u32 4294901760, %v3701_v21 }
 0x57c   :  { %v16116_v34 = vsub.f32 %v3701_v21, %v16113_v26  ;;  %13977 = vmatmul.mubr.f32.vlgmr.msra.gmra.mxu1 %v16113_v26 }
 0x57d   :  { %13991 = vmatpush3.msra.mxu1 %v15463_v27  ;;  %13998 = vmatprep.mubr.msk.f32.mxu1 %vm15355_vm2, %v17531_v53 }
 0x57e   :  { %13992 = vmatprep.subr.mxu1 %v17531_v53  ;;  %v16124_v35 = vand.u32 4294901760, %v16116_v34 }
 0x57f   :  { %13993 = vmatpush3.msra.mxu1 %v15467_v31 }
 0x580   :  { %13994 = vmatprep.subr.mxu1 %v17531_v53  ;;  %v3775_v24 = vsub.f32 %v16116_v34, %v16124_v35 }
 0x581   :  { %13995 = vmatpush3.msra.mxu1 %v15480_v36 }
 0x582   :  { %13996 = vmatprep.subr.mxu1 %v17531_v53  ;;  %v16132_v0 = vand.u32 4294901760, %v3775_v24 }
 0x583   :  { %13997 = vmatpush3.msra.mxu1 %v15487_v38 }
 0x584   :  { %13999 = vmatmul.mubr.f32.vlgmr.msra.gmra.mxu1 %v16124_v35  ;;  %14012 = vmatprep.subr.mxu1 %v17531_v53 }
 0x585   :  { %13966 = vmatmul.mubr.f32.vlgmr.msra.gmra.mxu0 %v16132_v0  ;;  %14013 = vmatpush3.msra.mxu1 %v15463_v27 }
 0x586   :  { %13980 = vmatpush3.msra.mxu0 %v15473_v33  ;;  %14014 = vmatprep.subr.mxu1 %v17531_v53 }
 0x587   :  { %13981 = vmatprep.subr.mxu0 %v17531_v53  ;;  %14015 = vmatpush3.msra.mxu1 %v15467_v31 }
 0x588   :  { %13982 = vmatpush3.msra.mxu0 %v15484_v37  ;;  %14016 = vmatprep.subr.mxu1 %v17531_v53 }
 0x589   :  { %13983 = vmatprep.subr.mxu0 %v17531_v53  ;;  %14017 = vmatpush3.msra.mxu1 %v15480_v36 }
 0x58a   :  { %13984 = vmatpush3.msra.mxu0 %v15497_v41  ;;  %14018 = vmatprep.subr.mxu1 %v17531_v53 }
 0x58b   :  { %13985 = vmatprep.subr.mxu0 %v17531_v53  ;;  %13987 = vmatprep.mubr.msk.f32.mxu0 %vm15355_vm2, %v17531_v53 }
 0x58c   :  { %13986 = vmatpush3.msra.mxu0 %v15505_v43  ;;  %14019 = vmatpush3.msra.mxu1 %v15487_v38 }
 0x58d   :  { %14020 = vmatprep.mubr.msk.f32.mxu1 %vm15355_vm2, %v17531_v53  ;;  %13988 = vmatmul.mubr.f32.vlgmr.msra.gmra.mxu0 %v16116_v34 }
 0x58e   :  { %14001 = vmatprep.subr.mxu0 %v17531_v53  ;;  %14021 = vmatmul.mubr.f32.vlgmr.msra.gmra.mxu1 %v16113_v26 }
 0x58f   :  { %14034 = vmatprep.subr.mxu1 %v17531_v53  ;;  %14002 = vmatpush3.msra.mxu0 %v15491_v39 }
 0x590   :  { %14035 = vmatpush3.msra.mxu1 %v15644_v12  ;;  %14003 = vmatprep.subr.mxu0 %v17531_v53 }
 0x591   :  { %14036 = vmatprep.subr.mxu1 %v17531_v53  ;;  %14004 = vmatpush3.msra.mxu0 %v15501_v42 }
 0x592   :  { %14037 = vmatpush3.msra.mxu1 %v15653_v14  ;;  %14005 = vmatprep.subr.mxu0 %v17531_v53 }
 0x593   :  { %14038 = vmatprep.subr.mxu1 %v17531_v53  ;;  %14006 = vmatpush3.msra.mxu0 %v15514_v46 }
 0x594   :  { %14039 = vmatpush3.msra.mxu1 %v15663_v16  ;;  %14007 = vmatprep.subr.mxu0 %v17531_v53 }
 0x595   :  { %14040 = vmatprep.subr.mxu1 %v17531_v53  ;;  %14008 = vmatpush3.msra.mxu0 %v15523_v49 }
 0x596   :  { %14009 = vmatprep.mubr.msk.f32.mxu0 %vm15355_vm2, %v17531_v53  ;;  %14041 = vmatpush3.msra.mxu1 %v15670_v17 }
 0x597   :  { %14042 = vmatprep.mubr.msk.f32.mxu1 %vm15355_vm2, %v17531_v53  ;;  %14010 = vmatmul.mubr.f32.vlgmr.msra.gmra.mxu0 %v16113_v26 }
 0x598   :  { %14023 = vmatprep.subr.mxu0 %v17531_v53  ;;  %14043 = vmatmul.mubr.f32.vlgmr.msra.gmra.mxu1 %v16113_v26 }
 0x599   :  { %14056 = vmatprep.subr.mxu1 %v17531_v53  ;;  %14024 = vmatpush3.msra.mxu0 %v15573_v60 }
 0x59a   :  { %14057 = vmatpush3.msra.mxu1 %v15573_v60  ;;  %14025 = vmatprep.subr.mxu0 %v17531_v53 }
 0x59b   :  { %14058 = vmatprep.subr.mxu1 %v17531_v53  ;;  %14026 = vmatpush3.msra.mxu0 %v15579_v61 }
 0x59c   :  { %14059 = vmatpush3.msra.mxu1 %v15579_v61  ;;  %14027 = vmatprep.subr.mxu0 %v17531_v53 }
 0x59d   :  { %14060 = vmatprep.subr.mxu1 %v17531_v53  ;;  %14028 = vmatpush3.msra.mxu0 %v15591_v1 }
 0x59e   :  { %14061 = vmatpush3.msra.mxu1 %v15591_v1  ;;  %14029 = vmatprep.subr.mxu0 %v17531_v53 }
 0x59f   :  { %14062 = vmatprep.subr.mxu1 %v17531_v53  ;;  %14030 = vmatpush3.msra.mxu0 %v15601_v3 }
 0x5a0   :  { %14031 = vmatprep.mubr.msk.f32.mxu0 %vm15355_vm2, %v17531_v53  ;;  %14063 = vmatpush3.msra.mxu1 %v15601_v3 }
 0x5a1   :  { %14064 = vmatprep.mubr.msk.f32.mxu1 %vm15355_vm2, %v17531_v53  ;;  %14032 = vmatmul.mubr.f32.vlgmr.msra.gmra.mxu0 %v16132_v0 }
 0x5a2   :  { %14045 = vmatprep.subr.mxu0 %v17531_v53  ;;  %14065 = vmatmul.mubr.f32.vlgmr.msra.gmra.mxu1 %v16124_v35 }
 0x5a3   :  { %14078 = vmatprep.subr.mxu1 %v17531_v53  ;;  %14046 = vmatpush3.msra.mxu0 %v15587_v63 }
 0x5a4   :  { %14079 = vmatpush3.msra.mxu1 %v15573_v60  ;;  %14047 = vmatprep.subr.mxu0 %v17531_v53 }
 0x5a5   :  { %14080 = vmatprep.subr.mxu1 %v17531_v53  ;;  %14048 = vmatpush3.msra.mxu0 %v15596_v2 }
 0x5a6   :  { %14081 = vmatpush3.msra.mxu1 %v15579_v61  ;;  %14049 = vmatprep.subr.mxu0 %v17531_v53 }
 0x5a7   :  { %14082 = vmatprep.subr.mxu1 %v17531_v53  ;;  %14050 = vmatpush3.msra.mxu0 %v15611_v5 }
 0x5a8   :  { %14083 = vmatpush3.msra.mxu1 %v15591_v1  ;;  %14051 = vmatprep.subr.mxu0 %v17531_v53 }
 0x5a9   :  { %14084 = vmatprep.subr.mxu1 %v17531_v53  ;;  %14052 = vmatpush3.msra.mxu0 %v15621_v7 }
 0x5aa   :  { %14053 = vmatprep.mubr.msk.f32.mxu0 %vm15355_vm2, %v17531_v53  ;;  %14085 = vmatpush3.msra.mxu1 %v15601_v3 }
 0x5ab   :  { %14086 = vmatprep.mubr.msk.f32.mxu1 %vm15355_vm2, %v17531_v53  ;;  %14054 = vmatmul.mubr.f32.vlgmr.msra.gmra.mxu0 %v16116_v34 }
 0x5ac   :  { %14067 = vmatprep.subr.mxu0 %v17531_v53  ;;  %14087 = vmatmul.mubr.f32.vlgmr.msra.gmra.mxu1 %v16113_v26 }
 0x5ad   :  { %14100 = vmatprep.subr.mxu1 %v17531_v53  ;;  %14068 = vmatpush3.msra.mxu0 %v15606_v4 }
 0x5ae   :  { %14101 = vmatpush3.msra.mxu1 %v15758_v58  ;;  %14069 = vmatprep.subr.mxu0 %v17531_v53 }
 0x5af   :  { %14102 = vmatprep.subr.mxu1 %v17531_v53  ;;  %14070 = vmatpush3.msra.mxu0 %v15616_v6 }
 0x5b0   :  { %14103 = vmatpush3.msra.mxu1 %v15767_v62  ;;  %14071 = vmatprep.subr.mxu0 %v17531_v53 }
 0x5b1   :  { %14104 = vmatprep.subr.mxu1 %v17531_v53  ;;  %14072 = vmatpush3.msra.mxu0 %v15631_v9 }
 0x5b2   :  { %14105 = vmatpush3.msra.mxu1 %v15777_v8  ;;  %14073 = vmatprep.subr.mxu0 %v17531_v53 }
 0x5b3   :  { %14106 = vmatprep.subr.mxu1 %v17531_v53  ;;  %14074 = vmatpush3.msra.mxu0 %v15640_v11 }
 0x5b4   :  { %14075 = vmatprep.mubr.msk.f32.mxu0 %vm15355_vm2, %v17531_v53  ;;  %14107 = vmatpush3.msra.mxu1 %v15784_v10 }
 0x5b5   :  { %14108 = vmatprep.mubr.msk.f32.mxu1 %vm15355_vm2, %v17531_v53  ;;  %14076 = vmatmul.mubr.f32.vlgmr.msra.gmra.mxu0 %v16113_v26 }
 0x5b6   :  { %14089 = vmatprep.subr.mxu0 %v17531_v53  ;;  %14109 = vmatmul.mubr.f32.vlgmr.msra.gmra.mxu1 %v16113_v26 }
 0x5b7   :  { %14122 = vmatprep.subr.mxu1 %v17531_v53  ;;  %14090 = vmatpush3.msra.mxu0 %v17532_v22 }
 0x5b8   :  { %14123 = vmatpush3.msra.mxu1 %v17532_v22  ;;  %14091 = vmatprep.subr.mxu0 %v17531_v53 }
 0x5b9   :  { %14124 = vmatprep.subr.mxu1 %v17531_v53  ;;  %14092 = vmatpush3.msra.mxu0 %v17533_v23 }
 0x5ba   :  { %14125 = vmatpush3.msra.mxu1 %v17533_v23  ;;  %14093 = vmatprep.subr.mxu0 %v17531_v53 }
 0x5bb   :  { %14126 = vmatprep.subr.mxu1 %v17531_v53  ;;  %14094 = vmatpush3.msra.mxu0 %v17534_v15 }
 0x5bc   :  { %14127 = vmatpush3.msra.mxu1 %v17534_v15  ;;  %14095 = vmatprep.subr.mxu0 %v17531_v53 }
 0x5bd   :  { %14128 = vmatprep.subr.mxu1 %v17531_v53  ;;  %14096 = vmatpush3.msra.mxu0 %v17549_v52 }
 0x5be   :  { %14097 = vmatprep.mubr.msk.f32.mxu0 %vm15355_vm2, %v17531_v53  ;;  %14129 = vmatpush3.msra.mxu1 %v17549_v52 }
 0x5bf   :  { %14130 = vmatprep.mubr.msk.f32.mxu1 %vm15355_vm2, %v17531_v53  ;;  %14098 = vmatmul.mubr.f32.vlgmr.msra.gmra.mxu0 %v16132_v0 }
 0x5c0   :  { %14111 = vmatprep.subr.mxu0 %v17531_v53  ;;  %14131 = vmatmul.mubr.f32.vlgmr.msra.gmra.mxu1 %v16124_v35 }
 0x5c1   :  { %14144 = vmatprep.subr.mxu1 %v17531_v53  ;;  %14112 = vmatpush3.msra.mxu0 %v17550_v57 }
 0x5c2   :  { %14145 = vmatpush3.msra.mxu1 %v17532_v22  ;;  %14113 = vmatprep.subr.mxu0 %v17531_v53 }
 0x5c3   :  { %14146 = vmatprep.subr.mxu1 %v17531_v53  ;;  %14114 = vmatpush3.msra.mxu0 %v17551_v47 }
 0x5c4   :  { %14147 = vmatpush3.msra.mxu1 %v17533_v23  ;;  %14115 = vmatprep.subr.mxu0 %v17531_v53 }
 0x5c5   :  { %14148 = vmatprep.subr.mxu1 %v17531_v53  ;;  %14116 = vmatpush3.msra.mxu0 %v17552_v44 }
 0x5c6   :  { %14149 = vmatpush3.msra.mxu1 %v17534_v15  ;;  %14117 = vmatprep.subr.mxu0 %v17531_v53 }
 0x5c7   :  { %14150 = vmatprep.subr.mxu1 %v17531_v53  ;;  %14118 = vmatpush3.msra.mxu0 %v17553_v18  ;;  %v17562_v18 = vld [vmem:[#allocation30_spill] sm:$0xff] }
 0x5c8   :  { %14119 = vmatprep.mubr.msk.f32.mxu0 %vm15355_vm2, %v17531_v53  ;;  %14151 = vmatpush3.msra.mxu1 %v17549_v52 }
 0x5c9   :  { %14152 = vmatprep.mubr.msk.f32.mxu1 %vm15355_vm2, %v17531_v53  ;;  %14120 = vmatmul.mubr.f32.vlgmr.msra.gmra.mxu0 %v16116_v34 }
 0x5ca   :  { %14133 = vmatprep.subr.mxu0 %v17531_v53  ;;  %14153 = vmatmul.mubr.f32.vlgmr.msra.gmra.mxu1 %v16113_v26 }
 0x5cb   :  { %14134 = vmatpush3.msra.mxu0 %v17554_v30  ;;  %14141 = vmatprep.mubr.msk.f32.mxu0 %vm15355_vm2, %v17531_v53 }
 0x5cc   :  { %14135 = vmatprep.subr.mxu0 %v17531_v53  ;;  %14166 = vmatprep.subr.mxu1 %v17531_v53 }
 0x5cd   :  { %14136 = vmatpush3.msra.mxu0 %v17555_v29  ;;  %14167 = vmatpush3.msra.mxu1 %v17556_v45 }
 0x5ce   :  { %14137 = vmatprep.subr.mxu0 %v17531_v53  ;;  %14168 = vmatprep.subr.mxu1 %v17531_v53 }
 0x5cf   :  { %14138 = vmatpush3.msra.mxu0 %v17557_v54  ;;  %14169 = vmatpush3.msra.mxu1 %v17558_v19 }
 0x5d0   :  { %14139 = vmatprep.subr.mxu0 %v17531_v53  ;;  %14170 = vmatprep.subr.mxu1 %v17531_v53 }
 0x5d1   :  { %14140 = vmatpush3.msra.mxu0 %v17559_v28  ;;  %14171 = vmatpush3.msra.mxu1 %v17560_v25 }
 0x5d2   :  { %14142 = vmatmul.mubr.f32.vlgmr.msra.gmra.mxu0 %v16113_v26  ;;  %14172 = vmatprep.subr.mxu1 %v17531_v53 }
 0x5d3   :  { %14173 = vmatpush3.msra.mxu1 %v17561_v48  ;;  %14155 = vmatprep.subr.mxu0 %v17531_v53 }
 0x5d4   :  { %14174 = vmatprep.mubr.msk.f32.mxu1 %vm15355_vm2, %v17531_v53  ;;  %14188 = vmatprep.subr.mxu1 %v17531_v53 }
 0x5d5   :  { %14156 = vmatpush3.msra.mxu0 %v15463_v27  ;;  %14163 = vmatprep.mubr.msk.f32.mxu0 %vm15355_vm2, %v17531_v53 }
 0x5d6   :  { %14157 = vmatprep.subr.mxu0 %v17531_v53 }
 0x5d7   :  { %14158 = vmatpush3.msra.mxu0 %v15467_v31 }
 0x5d8   :  { %14159 = vmatprep.subr.mxu0 %v17531_v53 }
 0x5d9   :  { %14160 = vmatpush3.msra.mxu0 %v15480_v36 }
 0x5da   :  { %14161 = vmatprep.subr.mxu0 %v17531_v53 }
 0x5db   :  { %14162 = vmatpush3.msra.mxu0 %v15487_v38 }
 0x5dc   :  { %14177 = vmatprep.subr.mxu0 %v17531_v53 }
 0x63c   :  { %v3869_v51 = vpop.f32.mrf.mxu1 }
 0x63e   :  { %v13978_v13 = vpop.f32.mrf.mxu1 }
 0x644   :  { %v4026_v56 = vpop.f32.mrf.mxu1 }
 0x645   :  { %v3778_v59 = vpop.f32.mrf.mxu0 }
 0x646   :  { %v14000_v40 = vpop.f32.mrf.mxu1  ;;  %v3870_v25 = vadd.f32 %v3869_v51, %v3778_v59 }
 0x647   :  { %v13967_v50 = vpop.f32.mrf.mxu0  ;;  %v613_v40 = vcombine.high %v17562_v18, %v17562_v18 }
 0x649   :  { %v16326_v44 = vrot.slane %v613_v40, %v15862_v32 }
 0x64d   :  { %v3949_v55 = vpop.f32.mrf.mxu0 }
 0x64e   :  { %v4184_v21 = vpop.f32.mrf.mxu1  ;;  %v3950_v28 = vadd.f32 %v3949_v55, %v3870_v25 }
 0x64f   :  { %v13989_v26 = vpop.f32.mrf.mxu0 }
 0x650   :  { %v14022_v34 = vpop.f32.mrf.mxu1  ;;  %v4027_v45 = vadd.f32 %v4026_v56, %v3950_v28 }
 0x657   :  { %v4109_v35 = vpop.f32.mrf.mxu0 }
 0x658   :  { %v4354_v24 = vpop.f32.mrf.mxu1  ;;  %v4110_v13 = vadd.f32 %v4109_v35, %v4027_v45 }
 0x659   :  { %v14011_v0 = vpop.f32.mrf.mxu0 }
 0x65a   :  { %v14044_v48 = vpop.f32.mrf.mxu1  ;;  %v4185_v50 = vadd.f32 %v4184_v21, %v4110_v13 }
 0x65c   :  { %v4673_v0 = vadd.f32 %v4185_v50, %v16326_v44 }
 0x65e   :  { %v12763_v55 = vmul.f32 -1.442695, %v4673_v0 }
 0x660   :  { %15178 = vpow2.f32 %v12763_v55 }
 0x661   :  { %v4263_v19 = vpop.f32.mrf.mxu0 }
 0x662   :  { %v4511_v54 = vpop.f32.mrf.mxu1  ;;  %v4355_v51 = vadd.f32 %v4354_v24, %v4263_v19 }
 0x663   :  { %v14033_v29 = vpop.f32.mrf.mxu0 }
 0x664   :  { %v14066_v30 = vpop.f32.mrf.mxu1 }
 0x66b   :  { %v4434_v26 = vpop.f32.mrf.mxu0 }
 0x66c   :  { %v4669_v34 = vpop.f32.mrf.mxu1  ;;  %v4435_v59 = vadd.f32 %v4434_v26, %v4355_v51  ;;  %v16331_v26 = vld [vmem:[#allocation9] ss:$0 sm:$0xff] }
 0x66d   :  { %v14055_v48 = vpop.f32.mrf.mxu0 }
 0x66e   :  { %v14088_v25 = vpop.f32.mrf.mxu1  ;;  %v4512_v28 = vadd.f32 %v4511_v54, %v4435_v59  ;;  %v15179_v48 = vpop.eup %15178 }
 0x66f   :  { %v4677_v24 = vadd.f32 1.0, %v15179_v48 }
 0x671   :  { %15180 = vrcp.f32 %v4677_v24 }
 0x675   :  { %v4594_v30 = vpop.f32.mrf.mxu0 }
 0x676   :  { %v4595_v29 = vadd.f32 %v4594_v30, %v4512_v28  ;;  %v4864_v45 = vpop.f32.mrf.mxu1 }
 0x677   :  { %v14077_v56 = vpop.f32.mrf.mxu0 }
 0x678   :  { %v4670_v18 = vadd.f32 %v4669_v34, %v4595_v29  ;;  %v14110_v21 = vpop.f32.mrf.mxu1 }
 0x67a   :  { %v4687_v35 = vrot.slane %v4670_v18, %v15862_v32 }
 0x67c   :  { %4688 = vrot.lane.b32.xlu0 %v4687_v35, %s15358_s4 }
 0x67e   :  { %v15181_v21 = vpop.eup %15180 }
 0x67f   :  { %v4773_v13 = vpop.f32.mrf.mxu0 }
 0x680   :  { %v5021_v40 = vpop.f32.mrf.mxu1  ;;  %v4774_v54 = vadd.f32 %v16331_v26, %v4773_v13 }
 0x681   :  { %v14099_v50 = vpop.f32.mrf.mxu0 }
 0x682   :  { %v14132_v19 = vpop.f32.mrf.mxu1  ;;  %v4865_v25 = vadd.f32 %v4864_v45, %v4774_v54 }
 0x689   :  { %v4944_v0 = vpop.f32.mrf.mxu0 }
 0x68a   :  { %v5179_v51 = vpop.f32.mrf.mxu1  ;;  %v4945_v55 = vadd.f32 %v4944_v0, %v4865_v25 }
 0x68b   :  { %v14121_v34 = vpop.f32.mrf.mxu0 }
 0x68c   :  { %v14154_v59 = vpop.f32.mrf.mxu1  ;;  %v5022_v28 = vadd.f32 %v5021_v40, %v4945_v55 }
 0x692   :  { %v5104_v30 = vpop.f32.mrf.mxu0 }
 0x693   :  { %v5105_v29 = vadd.f32 %v5104_v30, %v5022_v28 }
 0x694   :  { %v14143_v56 = vpop.f32.mrf.mxu0 }
 0x695   :  { %v5180_v18 = vadd.f32 %v5179_v51, %v5105_v29 }
 0x697   :  { %v5183_v35 = vmul.f32 %v15181_v21, %v5180_v18 }
 0x699   :  { %5185 = vrot.lane.b32.xlu1 %v5183_v35, %s15357_s3 }
 0x6ee   :  { %v4689_v45 = vpop.permute.xlu0 %4688 }
 0x6ef   :  { %v4691_v19 = vadd.f32 %v4689_v45, %v16326_v44  ;;  %v17566_v45 = vld [vmem:[#allocation25_spill] sm:$0xff] }
 0x6f1   :  { %v12764_v24 = vmul.f32 -1.442695, %v4691_v19  ;;  %v17567_v19 = vld [vmem:[#allocation13_spill] sm:$0xff] }
 0x70b   :  { %v5186_v50 = vpop.permute.xlu1 %5185 }
 0x70c   :  { %v5188_v48 = vadd.f32 %v5186_v50, %v16326_v44  ;;  %v17563_v50 = vld [vmem:[#allocation24_spill] sm:$0xff] }
 0x70e   :  { %15182 = vtanh.f32 %v5188_v48  ;;  %v17564_v48 = vld [vmem:[#allocation26_spill] sm:$0xff] }
 0x70f   :  { %15184 = vpow2.f32 %v12764_v24  ;;  %v17568_v24 = vld [vmem:[#allocation27_spill] sm:$0xff] }
 0x71b   :  { %v15183_v13 = vpop.eup %15182 }
 0x71c   :  { %5192 = vrot.lane.b32.xlu1 %v15183_v13, %s15359_s21  ;;  %v15185_v40 = vpop.eup %15184  ;;  %v17565_v13 = vld [vmem:[#allocation23_spill] sm:$0xff] }
 0x71d   :  { %v4695_v54 = vadd.f32 1.0, %v15185_v40  ;;  %v17569_v40 = vld [vmem:[#allocation14_spill] sm:$0xff] }
 0x71f   :  { %15186 = vrcp.f32 %v4695_v54  ;;  %v17570_v54 = vld [vmem:[#allocation28_spill] sm:$0xff] }
 0x72c   :  { %v15187_v0 = vpop.eup %15186 }
 0x72d   :  { %v5190_v51 = vsub.f32 1.0, %v15187_v0  ;;  %v5196_v34 = vmul.f32 %v15187_v0, %v16107_v20  ;;  %v17571_v0 = vld [vmem:[#allocation15_spill] sm:$0xff] }
 0x78e   :  { %v5193_v25 = vpop.permute.xlu1 %5192 }
 0x78f   :  { %v5195_v59 = vmul.f32 %v5193_v25, %v5190_v51  ;;  %v17572_v51 = vld [vmem:[#allocation16_spill] sm:$0xff] }
 0x791   :  { %v16339_v55 = vadd.f32 %v5196_v34, %v5195_v59 }
 0x793   :  { %v5205_v28 = vrot.slane %v16339_v55, %v15862_v32 }
 0x795   :  { %5206 = vrot.lane.b32.xlu0 %v5205_v28, %s15359_s21 }
 0x807   :  { %v5207_v30 = vpop.permute.xlu0 %5206 }
 0x808   :  { %v5208_v29 = vsel %vm675_vm1, %v5207_v30, 0 }
 0x809   :  { %v16345_v56 = vand.u32 4294901760, %v5208_v29 }
 0x80b   :  { %v16348_v18 = vsub.f32 %v5208_v29, %v16345_v56  ;;  %14175 = vmatmul.mubr.f32.vlgmr.msra.gmra.mxu1 %v16345_v56 }
 0x80c   :  { %14189 = vmatpush3.msra.mxu1 %v15463_v27  ;;  %14196 = vmatprep.mubr.msk.f32.mxu1 %vm15355_vm2, %v17531_v53 }
 0x80d   :  { %14190 = vmatprep.subr.mxu1 %v17531_v53  ;;  %v16356_v20 = vand.u32 4294901760, %v16348_v18 }
 0x80e   :  { %14191 = vmatpush3.msra.mxu1 %v15467_v31 }
 0x80f   :  { %14192 = vmatprep.subr.mxu1 %v17531_v53  ;;  %v5282_v21 = vsub.f32 %v16348_v18, %v16356_v20 }
 0x810   :  { %14193 = vmatpush3.msra.mxu1 %v15480_v36 }
 0x811   :  { %14194 = vmatprep.subr.mxu1 %v17531_v53  ;;  %v16364_v35 = vand.u32 4294901760, %v5282_v21 }
 0x812   :  { %14195 = vmatpush3.msra.mxu1 %v15487_v38 }
 0x813   :  { %14197 = vmatmul.mubr.f32.vlgmr.msra.gmra.mxu1 %v16356_v20  ;;  %14210 = vmatprep.subr.mxu1 %v17531_v53 }
 0x814   :  { %14164 = vmatmul.mubr.f32.vlgmr.msra.gmra.mxu0 %v16364_v35  ;;  %14211 = vmatpush3.msra.mxu1 %v15463_v27 }
 0x815   :  { %14178 = vmatpush3.msra.mxu0 %v15473_v33  ;;  %14212 = vmatprep.subr.mxu1 %v17531_v53 }
 0x816   :  { %14179 = vmatprep.subr.mxu0 %v17531_v53  ;;  %14213 = vmatpush3.msra.mxu1 %v15467_v31 }
 0x817   :  { %14180 = vmatpush3.msra.mxu0 %v15484_v37  ;;  %14214 = vmatprep.subr.mxu1 %v17531_v53 }
 0x818   :  { %14181 = vmatprep.subr.mxu0 %v17531_v53  ;;  %14215 = vmatpush3.msra.mxu1 %v15480_v36 }
 0x819   :  { %14182 = vmatpush3.msra.mxu0 %v15497_v41  ;;  %14216 = vmatprep.subr.mxu1 %v17531_v53 }
 0x81a   :  { %14183 = vmatprep.subr.mxu0 %v17531_v53  ;;  %14185 = vmatprep.mubr.msk.f32.mxu0 %vm15355_vm2, %v17531_v53 }
 0x81b   :  { %14184 = vmatpush3.msra.mxu0 %v15505_v43  ;;  %14217 = vmatpush3.msra.mxu1 %v15487_v38 }
 0x81c   :  { %14218 = vmatprep.mubr.msk.f32.mxu1 %vm15355_vm2, %v17531_v53  ;;  %14186 = vmatmul.mubr.f32.vlgmr.msra.gmra.mxu0 %v16348_v18 }
 0x81d   :  { %14199 = vmatprep.subr.mxu0 %v17531_v53  ;;  %14219 = vmatmul.mubr.f32.vlgmr.msra.gmra.mxu1 %v16345_v56 }
 0x81e   :  { %14232 = vmatprep.subr.mxu1 %v17531_v53  ;;  %14200 = vmatpush3.msra.mxu0 %v15491_v39 }
 0x81f   :  { %14233 = vmatpush3.msra.mxu1 %v15644_v12  ;;  %14201 = vmatprep.subr.mxu0 %v17531_v53 }
 0x820   :  { %14234 = vmatprep.subr.mxu1 %v17531_v53  ;;  %14202 = vmatpush3.msra.mxu0 %v15501_v42 }
 0x821   :  { %14235 = vmatpush3.msra.mxu1 %v15653_v14  ;;  %14203 = vmatprep.subr.mxu0 %v17531_v53 }
 0x822   :  { %14236 = vmatprep.subr.mxu1 %v17531_v53  ;;  %14204 = vmatpush3.msra.mxu0 %v15514_v46 }
 0x823   :  { %14237 = vmatpush3.msra.mxu1 %v15663_v16  ;;  %14205 = vmatprep.subr.mxu0 %v17531_v53 }
 0x824   :  { %14238 = vmatprep.subr.mxu1 %v17531_v53  ;;  %14206 = vmatpush3.msra.mxu0 %v15523_v49 }
 0x825   :  { %14207 = vmatprep.mubr.msk.f32.mxu0 %vm15355_vm2, %v17531_v53  ;;  %14239 = vmatpush3.msra.mxu1 %v15670_v17 }
 0x826   :  { %14240 = vmatprep.mubr.msk.f32.mxu1 %vm15355_vm2, %v17531_v53  ;;  %14208 = vmatmul.mubr.f32.vlgmr.msra.gmra.mxu0 %v16345_v56 }
 0x827   :  { %14221 = vmatprep.subr.mxu0 %v17531_v53  ;;  %14241 = vmatmul.mubr.f32.vlgmr.msra.gmra.mxu1 %v16345_v56 }
 0x828   :  { %14254 = vmatprep.subr.mxu1 %v17531_v53  ;;  %14222 = vmatpush3.msra.mxu0 %v15573_v60 }
 0x829   :  { %14255 = vmatpush3.msra.mxu1 %v15573_v60  ;;  %14223 = vmatprep.subr.mxu0 %v17531_v53 }
 0x82a   :  { %14256 = vmatprep.subr.mxu1 %v17531_v53  ;;  %14224 = vmatpush3.msra.mxu0 %v15579_v61 }
 0x82b   :  { %14257 = vmatpush3.msra.mxu1 %v15579_v61  ;;  %14225 = vmatprep.subr.mxu0 %v17531_v53 }
 0x82c   :  { %14258 = vmatprep.subr.mxu1 %v17531_v53  ;;  %14226 = vmatpush3.msra.mxu0 %v15591_v1 }
 0x82d   :  { %14259 = vmatpush3.msra.mxu1 %v15591_v1  ;;  %14227 = vmatprep.subr.mxu0 %v17531_v53 }
 0x82e   :  { %14260 = vmatprep.subr.mxu1 %v17531_v53  ;;  %14228 = vmatpush3.msra.mxu0 %v15601_v3 }
 0x82f   :  { %14229 = vmatprep.mubr.msk.f32.mxu0 %vm15355_vm2, %v17531_v53  ;;  %14261 = vmatpush3.msra.mxu1 %v15601_v3 }
 0x830   :  { %14262 = vmatprep.mubr.msk.f32.mxu1 %vm15355_vm2, %v17531_v53  ;;  %14230 = vmatmul.mubr.f32.vlgmr.msra.gmra.mxu0 %v16364_v35 }
 0x831   :  { %14243 = vmatprep.subr.mxu0 %v17531_v53  ;;  %14263 = vmatmul.mubr.f32.vlgmr.msra.gmra.mxu1 %v16356_v20 }
 0x832   :  { %14276 = vmatprep.subr.mxu1 %v17531_v53  ;;  %14244 = vmatpush3.msra.mxu0 %v15587_v63 }
 0x833   :  { %14277 = vmatpush3.msra.mxu1 %v15573_v60  ;;  %14245 = vmatprep.subr.mxu0 %v17531_v53 }
 0x834   :  { %14278 = vmatprep.subr.mxu1 %v17531_v53  ;;  %14246 = vmatpush3.msra.mxu0 %v15596_v2 }
 0x835   :  { %14279 = vmatpush3.msra.mxu1 %v15579_v61  ;;  %14247 = vmatprep.subr.mxu0 %v17531_v53 }
 0x836   :  { %14280 = vmatprep.subr.mxu1 %v17531_v53  ;;  %14248 = vmatpush3.msra.mxu0 %v15611_v5 }
 0x837   :  { %14281 = vmatpush3.msra.mxu1 %v15591_v1  ;;  %14249 = vmatprep.subr.mxu0 %v17531_v53 }
 0x838   :  { %14282 = vmatprep.subr.mxu1 %v17531_v53  ;;  %14250 = vmatpush3.msra.mxu0 %v15621_v7 }
 0x839   :  { %14251 = vmatprep.mubr.msk.f32.mxu0 %vm15355_vm2, %v17531_v53  ;;  %14283 = vmatpush3.msra.mxu1 %v15601_v3 }
 0x83a   :  { %14284 = vmatprep.mubr.msk.f32.mxu1 %vm15355_vm2, %v17531_v53  ;;  %14252 = vmatmul.mubr.f32.vlgmr.msra.gmra.mxu0 %v16348_v18 }
 0x83b   :  { %14265 = vmatprep.subr.mxu0 %v17531_v53  ;;  %14285 = vmatmul.mubr.f32.vlgmr.msra.gmra.mxu1 %v16345_v56 }
 0x83c   :  { %14298 = vmatprep.subr.mxu1 %v17531_v53  ;;  %14266 = vmatpush3.msra.mxu0 %v15606_v4 }
 0x83d   :  { %14299 = vmatpush3.msra.mxu1 %v15758_v58  ;;  %14267 = vmatprep.subr.mxu0 %v17531_v53 }
 0x83e   :  { %14300 = vmatprep.subr.mxu1 %v17531_v53  ;;  %14268 = vmatpush3.msra.mxu0 %v15616_v6 }
 0x83f   :  { %14301 = vmatpush3.msra.mxu1 %v15767_v62  ;;  %14269 = vmatprep.subr.mxu0 %v17531_v53 }
 0x840   :  { %14302 = vmatprep.subr.mxu1 %v17531_v53  ;;  %14270 = vmatpush3.msra.mxu0 %v15631_v9 }
 0x841   :  { %14303 = vmatpush3.msra.mxu1 %v15777_v8  ;;  %14271 = vmatprep.subr.mxu0 %v17531_v53 }
 0x842   :  { %14304 = vmatprep.subr.mxu1 %v17531_v53  ;;  %14272 = vmatpush3.msra.mxu0 %v15640_v11 }
 0x843   :  { %14273 = vmatprep.mubr.msk.f32.mxu0 %vm15355_vm2, %v17531_v53  ;;  %14305 = vmatpush3.msra.mxu1 %v15784_v10 }
 0x844   :  { %14306 = vmatprep.mubr.msk.f32.mxu1 %vm15355_vm2, %v17531_v53  ;;  %14274 = vmatmul.mubr.f32.vlgmr.msra.gmra.mxu0 %v16345_v56 }
 0x845   :  { %14287 = vmatprep.subr.mxu0 %v17531_v53  ;;  %14307 = vmatmul.mubr.f32.vlgmr.msra.gmra.mxu1 %v16345_v56 }
 0x846   :  { %14320 = vmatprep.subr.mxu1 %v17531_v53  ;;  %14288 = vmatpush3.msra.mxu0 %v17532_v22 }
 0x847   :  { %14321 = vmatpush3.msra.mxu1 %v17532_v22  ;;  %14289 = vmatprep.subr.mxu0 %v17531_v53 }
 0x848   :  { %14322 = vmatprep.subr.mxu1 %v17531_v53  ;;  %14290 = vmatpush3.msra.mxu0 %v17533_v23 }
 0x849   :  { %14323 = vmatpush3.msra.mxu1 %v17533_v23  ;;  %14291 = vmatprep.subr.mxu0 %v17531_v53 }
 0x84a   :  { %14324 = vmatprep.subr.mxu1 %v17531_v53  ;;  %14292 = vmatpush3.msra.mxu0 %v17534_v15 }
 0x84b   :  { %14325 = vmatpush3.msra.mxu1 %v17534_v15  ;;  %14293 = vmatprep.subr.mxu0 %v17531_v53 }
 0x84c   :  { %14326 = vmatprep.subr.mxu1 %v17531_v53  ;;  %14294 = vmatpush3.msra.mxu0 %v17549_v52 }
 0x84d   :  { %14295 = vmatprep.mubr.msk.f32.mxu0 %vm15355_vm2, %v17531_v53  ;;  %14327 = vmatpush3.msra.mxu1 %v17549_v52 }
 0x84e   :  { %14328 = vmatprep.mubr.msk.f32.mxu1 %vm15355_vm2, %v17531_v53  ;;  %14296 = vmatmul.mubr.f32.vlgmr.msra.gmra.mxu0 %v16364_v35 }
 0x84f   :  { %14309 = vmatprep.subr.mxu0 %v17531_v53  ;;  %14329 = vmatmul.mubr.f32.vlgmr.msra.gmra.mxu1 %v16356_v20 }
 0x850   :  { %14342 = vmatprep.subr.mxu1 %v17531_v53  ;;  %14310 = vmatpush3.msra.mxu0 %v17550_v57 }
 0x851   :  { %14343 = vmatpush3.msra.mxu1 %v17532_v22  ;;  %14311 = vmatprep.subr.mxu0 %v17531_v53 }
 0x852   :  { %14344 = vmatprep.subr.mxu1 %v17531_v53  ;;  %14312 = vmatpush3.msra.mxu0 %v17551_v47 }
 0x853   :  { %14345 = vmatpush3.msra.mxu1 %v17533_v23  ;;  %14313 = vmatprep.subr.mxu0 %v17531_v53 }
 0x854   :  { %14346 = vmatprep.subr.mxu1 %v17531_v53  ;;  %14314 = vmatpush3.msra.mxu0 %v17563_v50 }
 0x855   :  { %14347 = vmatpush3.msra.mxu1 %v17534_v15  ;;  %14315 = vmatprep.subr.mxu0 %v17531_v53 }
 0x856   :  { %14348 = vmatprep.subr.mxu1 %v17531_v53  ;;  %14316 = vmatpush3.msra.mxu0 %v17564_v48 }
 0x857   :  { %14317 = vmatprep.mubr.msk.f32.mxu0 %vm15355_vm2, %v17531_v53  ;;  %14349 = vmatpush3.msra.mxu1 %v17549_v52 }
 0x858   :  { %14350 = vmatprep.mubr.msk.f32.mxu1 %vm15355_vm2, %v17531_v53  ;;  %14318 = vmatmul.mubr.f32.vlgmr.msra.gmra.mxu0 %v16348_v18 }
 0x859   :  { %14331 = vmatprep.subr.mxu0 %v17531_v53  ;;  %14351 = vmatmul.mubr.f32.vlgmr.msra.gmra.mxu1 %v16345_v56 }
 0x85a   :  { %14332 = vmatpush3.msra.mxu0 %v17565_v13  ;;  %14339 = vmatprep.mubr.msk.f32.mxu0 %vm15355_vm2, %v17531_v53 }
 0x85b   :  { %14333 = vmatprep.subr.mxu0 %v17531_v53  ;;  %14364 = vmatprep.subr.mxu1 %v17531_v53 }
 0x85c   :  { %14334 = vmatpush3.msra.mxu0 %v17566_v45  ;;  %14365 = vmatpush3.msra.mxu1 %v17567_v19 }
 0x85d   :  { %14335 = vmatprep.subr.mxu0 %v17531_v53  ;;  %14366 = vmatprep.subr.mxu1 %v17531_v53 }
 0x85e   :  { %14336 = vmatpush3.msra.mxu0 %v17568_v24  ;;  %14367 = vmatpush3.msra.mxu1 %v17569_v40 }
 0x85f   :  { %14337 = vmatprep.subr.mxu0 %v17531_v53  ;;  %14368 = vmatprep.subr.mxu1 %v17531_v53 }
 0x860   :  { %14338 = vmatpush3.msra.mxu0 %v17570_v54  ;;  %14369 = vmatpush3.msra.mxu1 %v17571_v0 }
 0x861   :  { %14340 = vmatmul.mubr.f32.vlgmr.msra.gmra.mxu0 %v16345_v56  ;;  %14370 = vmatprep.subr.mxu1 %v17531_v53 }
 0x862   :  { %14371 = vmatpush3.msra.mxu1 %v17572_v51  ;;  %14353 = vmatprep.subr.mxu0 %v17531_v53 }
 0x863   :  { %14372 = vmatprep.mubr.msk.f32.mxu1 %vm15355_vm2, %v17531_v53  ;;  %14386 = vmatprep.subr.mxu1 %v17531_v53 }
 0x864   :  { %14354 = vmatpush3.msra.mxu0 %v15463_v27  ;;  %14361 = vmatprep.mubr.msk.f32.mxu0 %vm15355_vm2, %v17531_v53 }
 0x865   :  { %14355 = vmatprep.subr.mxu0 %v17531_v53 }
 0x866   :  { %14356 = vmatpush3.msra.mxu0 %v15467_v31 }
 0x867   :  { %14357 = vmatprep.subr.mxu0 %v17531_v53 }
 0x868   :  { %14358 = vmatpush3.msra.mxu0 %v15480_v36 }
 0x869   :  { %14359 = vmatprep.subr.mxu0 %v17531_v53 }
 0x86a   :  { %14360 = vmatpush3.msra.mxu0 %v15487_v38 }
 0x86b   :  { %14375 = vmatprep.subr.mxu0 %v17531_v53 }
 0x8cb   :  { %v5376_v25 = vpop.f32.mrf.mxu1 }
 0x8cd   :  { %v14176_v34 = vpop.f32.mrf.mxu1 }
 0x8d3   :  { %v5533_v59 = vpop.f32.mrf.mxu1 }
 0x8d4   :  { %v5285_v28 = vpop.f32.mrf.mxu0 }
 0x8d5   :  { %v14198_v30 = vpop.f32.mrf.mxu1  ;;  %v5377_v40 = vadd.f32 %v5376_v25, %v5285_v28 }
 0x8d6   :  { %v14165_v29 = vpop.f32.mrf.mxu0  ;;  %v629_v30 = vcombine.high %v16326_v44, %v16326_v44 }
 0x8dc   :  { %v5456_v56 = vpop.f32.mrf.mxu0 }
 0x8dd   :  { %v5691_v18 = vpop.f32.mrf.mxu1  ;;  %v5457_v24 = vadd.f32 %v5456_v56, %v5377_v40 }
 0x8de   :  { %v14187_v20 = vpop.f32.mrf.mxu0 }
 0x8df   :  { %v14220_v21 = vpop.f32.mrf.mxu1  ;;  %v5534_v13 = vadd.f32 %v5533_v59, %v5457_v24 }
 0x8e6   :  { %v5616_v35 = vpop.f32.mrf.mxu0 }
 0x8e7   :  { %v5861_v51 = vpop.f32.mrf.mxu1  ;;  %v5617_v34 = vadd.f32 %v5616_v35, %v5534_v13 }
 0x8e8   :  { %v14209_v0 = vpop.f32.mrf.mxu0 }
 0x8e9   :  { %v14242_v54 = vpop.f32.mrf.mxu1  ;;  %v5692_v47 = vadd.f32 %v5691_v18, %v5617_v34 }
 0x8eb   :  { %v6180_v20 = vadd.f32 %v5692_v47, %v629_v30 }
 0x8ed   :  { %v12765_v54 = vmul.f32 -1.442695, %v6180_v20 }
 0x8ef   :  { %15188 = vpow2.f32 %v12765_v54 }
 0x8f0   :  { %v5770_v19 = vpop.f32.mrf.mxu0 }
 0x8f1   :  { %v6018_v45 = vpop.f32.mrf.mxu1  ;;  %v5862_v52 = vadd.f32 %v5861_v51, %v5770_v19 }
 0x8f2   :  { %v14231_v48 = vpop.f32.mrf.mxu0 }
 0x8f3   :  { %v14264_v50 = vpop.f32.mrf.mxu1 }
 0x8fa   :  { %v5941_v29 = vpop.f32.mrf.mxu0 }
 0x8fb   :  { %v6176_v57 = vpop.f32.mrf.mxu1  ;;  %v5942_v0 = vadd.f32 %v5941_v29, %v5862_v52 }
 0x8fc   :  { %v14253_v21 = vpop.f32.mrf.mxu0  ;;  %v15189_v18 = vpop.eup %15188 }
 0x8fd   :  { %v14286_v15 = vpop.f32.mrf.mxu1  ;;  %v6019_v25 = vadd.f32 %v6018_v45, %v5942_v0 }
 0x8fe   :  { %v6184_v15 = vadd.f32 1.0, %v15189_v18 }
 0x900   :  { %15190 = vrcp.f32 %v6184_v15 }
 0x904   :  { %v6101_v40 = vpop.f32.mrf.mxu0 }
 0x905   :  { %v6102_v28 = vadd.f32 %v6101_v40, %v6019_v25  ;;  %v6371_v24 = vpop.f32.mrf.mxu1 }
 0x906   :  { %v14275_v48 = vpop.f32.mrf.mxu0 }
 0x907   :  { %v6177_v50 = vadd.f32 %v6176_v57, %v6102_v28  ;;  %v14308_v13 = vpop.f32.mrf.mxu1 }
 0x909   :  { %v6194_v59 = vrot.slane %v6177_v50, %v15862_v32 }
 0x90b   :  { %6195 = vrot.lane.b32.xlu0 %v6194_v59, %s15358_s4 }
 0x90d   :  { %v15191_v40 = vpop.eup %15190 }
 0x90e   :  { %v6280_v44 = vpop.f32.mrf.mxu0 }
 0x90f   :  { %v6528_v56 = vpop.f32.mrf.mxu1  ;;  %v6281_v52 = vadd.f32 %v16331_v26, %v6280_v44 }
 0x910   :  { %v14297_v47 = vpop.f32.mrf.mxu0 }
 0x911   :  { %v14330_v19 = vpop.f32.mrf.mxu1  ;;  %v6372_v35 = vadd.f32 %v6371_v24, %v6281_v52 }
 0x918   :  { %v6451_v45 = vpop.f32.mrf.mxu0 }
 0x919   :  { %v6686_v51 = vpop.f32.mrf.mxu1  ;;  %v6452_v57 = vadd.f32 %v6451_v45, %v6372_v35 }
 0x91a   :  { %v14319_v34 = vpop.f32.mrf.mxu0 }
 0x91b   :  { %v14352_v29 = vpop.f32.mrf.mxu1  ;;  %v6529_v20 = vadd.f32 %v6528_v56, %v6452_v57 }
 0x921   :  { %v6611_v21 = vpop.f32.mrf.mxu0 }
 0x922   :  { %v6612_v0 = vadd.f32 %v6611_v21, %v6529_v20  ;;  %v17573_v21 = vld [vmem:[#allocation20_spill] sm:$0xff] }
 0x923   :  { %v14341_v54 = vpop.f32.mrf.mxu0 }
 0x924   :  { %v6687_v25 = vadd.f32 %v6686_v51, %v6612_v0  ;;  %v17574_v0 = vld [vmem:[#allocation22_spill] sm:$0xff]  ;;  %v17575_v54 = vld [vmem:[#allocation19_spill] sm:$0xff] }
 0x926   :  { %v6690_v28 = vmul.f32 %v15191_v40, %v6687_v25  ;;  %v17576_v25 = vld [vmem:[#allocation21_spill] sm:$0xff]  ;;  %v17577_v40 = vld [vmem:[#allocation24_spill] sm:$0xff] }
 0x928   :  { %6692 = vrot.lane.b32.xlu1 %v6690_v28, %s15357_s3  ;;  %v17578_v28 = vld [vmem:[#allocation26_spill] sm:$0xff] }
 0x97d   :  { %v6196_v13 = vpop.permute.xlu0 %6195 }
 0x97e   :  { %v6198_v24 = vadd.f32 %v6196_v13, %v629_v30  ;;  %v17582_v13 = vld [vmem:[#allocation27_spill] sm:$0xff] }
 0x980   :  { %v12766_v59 = vmul.f32 -1.442695, %v6198_v24  ;;  %v17583_v24 = vld [vmem:[#allocation14_spill] sm:$0xff] }
 0x99a   :  { %v6693_v48 = vpop.permute.xlu1 %6692 }
 0x99b   :  { %v6695_v50 = vadd.f32 %v6693_v48, %v629_v30  ;;  %v17579_v48 = vld [vmem:[#allocation23_spill] sm:$0xff] }
 0x99d   :  { %15192 = vtanh.f32 %v6695_v50  ;;  %v17580_v50 = vld [vmem:[#allocation25_spill] sm:$0xff] }
 0x99e   :  { %15194 = vpow2.f32 %v12766_v59  ;;  %v17584_v59 = vld [vmem:[#allocation28_spill] sm:$0xff] }
 0x9aa   :  { %v15193_v26 = vpop.eup %15192 }
 0x9ab   :  { %6699 = vrot.lane.b32.xlu1 %v15193_v26, %s15359_s21  ;;  %v15195_v44 = vpop.eup %15194  ;;  %v17581_v26 = vld [vmem:[#allocation13_spill] sm:$0xff] }
 0x9ac   :  { %v6202_v56 = vadd.f32 1.0, %v15195_v44  ;;  %v17585_v44 = vld [vmem:[#allocation15_spill] sm:$0xff] }
 0x9ae   :  { %15196 = vrcp.f32 %v6202_v56  ;;  %v17586_v56 = vld [vmem:[#allocation16_spill] sm:$0xff] }
 0x9bb   :  { %v15197_v47 = vpop.eup %15196 }
 0x9bc   :  { %v6697_v18 = vsub.f32 1.0, %v15197_v47  ;;  %v6703_v15 = vmul.f32 %v15197_v47, %v16339_v55 }
 0xa1d   :  { %v6700_v19 = vpop.permute.xlu1 %6699 }
 0xa1e   :  { %v6702_v52 = vmul.f32 %v6700_v19, %v6697_v18 }
 0xa20   :  { %v16563_v45 = vadd.f32 %v6703_v15, %v6702_v52 }
 0xa22   :  { %v6712_v51 = vrot.slane %v16563_v45, %v15862_v32 }
 0xa24   :  { %6713 = vrot.lane.b32.xlu0 %v6712_v51, %s15359_s21 }
 0xa96   :  { %v6714_v35 = vpop.permute.xlu0 %6713 }
 0xa97   :  { %v6715_v30 = vsel %vm675_vm1, %v6714_v35, 0 }
 0xa98   :  { %v16569_v34 = vand.u32 4294901760, %v6715_v30 }
 0xa9a   :  { %v16572_v29 = vsub.f32 %v6715_v30, %v16569_v34  ;;  %14373 = vmatmul.mubr.f32.vlgmr.msra.gmra.mxu1 %v16569_v34 }
 0xa9b   :  { %14387 = vmatpush3.msra.mxu1 %v15463_v27  ;;  %14394 = vmatprep.mubr.msk.f32.mxu1 %vm15355_vm2, %v17531_v53 }
 0xa9c   :  { %14388 = vmatprep.subr.mxu1 %v17531_v53  ;;  %v16580_v55 = vand.u32 4294901760, %v16572_v29 }
 0xa9d   :  { %14389 = vmatpush3.msra.mxu1 %v15467_v31 }
 0xa9e   :  { %14390 = vmatprep.subr.mxu1 %v17531_v53  ;;  %v6789_v57 = vsub.f32 %v16572_v29, %v16580_v55 }
 0xa9f   :  { %14391 = vmatpush3.msra.mxu1 %v15480_v36 }
 0xaa0   :  { %14392 = vmatprep.subr.mxu1 %v17531_v53  ;;  %v16588_v20 = vand.u32 4294901760, %v6789_v57 }
 0xaa1   :  { %14393 = vmatpush3.msra.mxu1 %v15487_v38 }
 0xaa2   :  { %14395 = vmatmul.mubr.f32.vlgmr.msra.gmra.mxu1 %v16580_v55  ;;  %14408 = vmatprep.subr.mxu1 %v17531_v53 }
 0xaa3   :  { %14362 = vmatmul.mubr.f32.vlgmr.msra.gmra.mxu0 %v16588_v20  ;;  %14409 = vmatpush3.msra.mxu1 %v15463_v27 }
 0xaa4   :  { %14376 = vmatpush3.msra.mxu0 %v15473_v33  ;;  %14410 = vmatprep.subr.mxu1 %v17531_v53 }
 0xaa5   :  { %14377 = vmatprep.subr.mxu0 %v17531_v53  ;;  %14411 = vmatpush3.msra.mxu1 %v15467_v31 }
 0xaa6   :  { %14378 = vmatpush3.msra.mxu0 %v15484_v37  ;;  %14412 = vmatprep.subr.mxu1 %v17531_v53 }
 0xaa7   :  { %14379 = vmatprep.subr.mxu0 %v17531_v53  ;;  %14413 = vmatpush3.msra.mxu1 %v15480_v36 }
 0xaa8   :  { %14380 = vmatpush3.msra.mxu0 %v15497_v41  ;;  %14414 = vmatprep.subr.mxu1 %v17531_v53 }
 0xaa9   :  { %14381 = vmatprep.subr.mxu0 %v17531_v53  ;;  %14383 = vmatprep.mubr.msk.f32.mxu0 %vm15355_vm2, %v17531_v53 }
 0xaaa   :  { %14382 = vmatpush3.msra.mxu0 %v15505_v43  ;;  %14415 = vmatpush3.msra.mxu1 %v15487_v38 }
 0xaab   :  { %14416 = vmatprep.mubr.msk.f32.mxu1 %vm15355_vm2, %v17531_v53  ;;  %14384 = vmatmul.mubr.f32.vlgmr.msra.gmra.mxu0 %v16572_v29 }
 0xaac   :  { %14397 = vmatprep.subr.mxu0 %v17531_v53  ;;  %14417 = vmatmul.mubr.f32.vlgmr.msra.gmra.mxu1 %v16569_v34 }
 0xaad   :  { %14430 = vmatprep.subr.mxu1 %v17531_v53  ;;  %14398 = vmatpush3.msra.mxu0 %v15491_v39 }
 0xaae   :  { %14431 = vmatpush3.msra.mxu1 %v15644_v12  ;;  %14399 = vmatprep.subr.mxu0 %v17531_v53 }
 0xaaf   :  { %14432 = vmatprep.subr.mxu1 %v17531_v53  ;;  %14400 = vmatpush3.msra.mxu0 %v15501_v42 }
 0xab0   :  { %14433 = vmatpush3.msra.mxu1 %v15653_v14  ;;  %14401 = vmatprep.subr.mxu0 %v17531_v53 }
 0xab1   :  { %14434 = vmatprep.subr.mxu1 %v17531_v53  ;;  %14402 = vmatpush3.msra.mxu0 %v15514_v46 }
 0xab2   :  { %14435 = vmatpush3.msra.mxu1 %v15663_v16  ;;  %14403 = vmatprep.subr.mxu0 %v17531_v53 }
 0xab3   :  { %14436 = vmatprep.subr.mxu1 %v17531_v53  ;;  %14404 = vmatpush3.msra.mxu0 %v15523_v49 }
 0xab4   :  { %14405 = vmatprep.mubr.msk.f32.mxu0 %vm15355_vm2, %v17531_v53  ;;  %14437 = vmatpush3.msra.mxu1 %v15670_v17 }
 0xab5   :  { %14438 = vmatprep.mubr.msk.f32.mxu1 %vm15355_vm2, %v17531_v53  ;;  %14406 = vmatmul.mubr.f32.vlgmr.msra.gmra.mxu0 %v16569_v34 }
 0xab6   :  { %14419 = vmatprep.subr.mxu0 %v17531_v53  ;;  %14439 = vmatmul.mubr.f32.vlgmr.msra.gmra.mxu1 %v16569_v34 }
 0xab7   :  { %14452 = vmatprep.subr.mxu1 %v17531_v53  ;;  %14420 = vmatpush3.msra.mxu0 %v15573_v60 }
 0xab8   :  { %14453 = vmatpush3.msra.mxu1 %v15573_v60  ;;  %14421 = vmatprep.subr.mxu0 %v17531_v53 }
 0xab9   :  { %14454 = vmatprep.subr.mxu1 %v17531_v53  ;;  %14422 = vmatpush3.msra.mxu0 %v15579_v61 }
 0xaba   :  { %14455 = vmatpush3.msra.mxu1 %v15579_v61  ;;  %14423 = vmatprep.subr.mxu0 %v17531_v53 }
 0xabb   :  { %14456 = vmatprep.subr.mxu1 %v17531_v53  ;;  %14424 = vmatpush3.msra.mxu0 %v15591_v1 }
 0xabc   :  { %14457 = vmatpush3.msra.mxu1 %v15591_v1  ;;  %14425 = vmatprep.subr.mxu0 %v17531_v53 }
 0xabd   :  { %14458 = vmatprep.subr.mxu1 %v17531_v53  ;;  %14426 = vmatpush3.msra.mxu0 %v15601_v3 }
 0xabe   :  { %14427 = vmatprep.mubr.msk.f32.mxu0 %vm15355_vm2, %v17531_v53  ;;  %14459 = vmatpush3.msra.mxu1 %v15601_v3 }
 0xabf   :  { %14460 = vmatprep.mubr.msk.f32.mxu1 %vm15355_vm2, %v17531_v53  ;;  %14428 = vmatmul.mubr.f32.vlgmr.msra.gmra.mxu0 %v16588_v20 }
 0xac0   :  { %14441 = vmatprep.subr.mxu0 %v17531_v53  ;;  %14461 = vmatmul.mubr.f32.vlgmr.msra.gmra.mxu1 %v16580_v55 }
 0xac1   :  { %14474 = vmatprep.subr.mxu1 %v17531_v53  ;;  %14442 = vmatpush3.msra.mxu0 %v15587_v63 }
 0xac2   :  { %14475 = vmatpush3.msra.mxu1 %v15573_v60  ;;  %14443 = vmatprep.subr.mxu0 %v17531_v53 }
 0xac3   :  { %14476 = vmatprep.subr.mxu1 %v17531_v53  ;;  %14444 = vmatpush3.msra.mxu0 %v15596_v2 }
 0xac4   :  { %14477 = vmatpush3.msra.mxu1 %v15579_v61  ;;  %14445 = vmatprep.subr.mxu0 %v17531_v53 }
 0xac5   :  { %14478 = vmatprep.subr.mxu1 %v17531_v53  ;;  %14446 = vmatpush3.msra.mxu0 %v15611_v5 }
 0xac6   :  { %14479 = vmatpush3.msra.mxu1 %v15591_v1  ;;  %14447 = vmatprep.subr.mxu0 %v17531_v53 }
 0xac7   :  { %14480 = vmatprep.subr.mxu1 %v17531_v53  ;;  %14448 = vmatpush3.msra.mxu0 %v15621_v7 }
 0xac8   :  { %14449 = vmatprep.mubr.msk.f32.mxu0 %vm15355_vm2, %v17531_v53  ;;  %14481 = vmatpush3.msra.mxu1 %v15601_v3 }
 0xac9   :  { %14482 = vmatprep.mubr.msk.f32.mxu1 %vm15355_vm2, %v17531_v53  ;;  %14450 = vmatmul.mubr.f32.vlgmr.msra.gmra.mxu0 %v16572_v29 }
 0xaca   :  { %14463 = vmatprep.subr.mxu0 %v17531_v53  ;;  %14483 = vmatmul.mubr.f32.vlgmr.msra.gmra.mxu1 %v16569_v34 }
 0xacb   :  { %14496 = vmatprep.subr.mxu1 %v17531_v53  ;;  %14464 = vmatpush3.msra.mxu0 %v15606_v4 }
 0xacc   :  { %14497 = vmatpush3.msra.mxu1 %v15758_v58  ;;  %14465 = vmatprep.subr.mxu0 %v17531_v53 }
 0xacd   :  { %14498 = vmatprep.subr.mxu1 %v17531_v53  ;;  %14466 = vmatpush3.msra.mxu0 %v15616_v6 }
 0xace   :  { %14499 = vmatpush3.msra.mxu1 %v15767_v62  ;;  %14467 = vmatprep.subr.mxu0 %v17531_v53 }
 0xacf   :  { %14500 = vmatprep.subr.mxu1 %v17531_v53  ;;  %14468 = vmatpush3.msra.mxu0 %v15631_v9 }
 0xad0   :  { %14501 = vmatpush3.msra.mxu1 %v15777_v8  ;;  %14469 = vmatprep.subr.mxu0 %v17531_v53 }
 0xad1   :  { %14502 = vmatprep.subr.mxu1 %v17531_v53  ;;  %14470 = vmatpush3.msra.mxu0 %v15640_v11 }
 0xad2   :  { %14471 = vmatprep.mubr.msk.f32.mxu0 %vm15355_vm2, %v17531_v53  ;;  %14503 = vmatpush3.msra.mxu1 %v15784_v10 }
 0xad3   :  { %14504 = vmatprep.mubr.msk.f32.mxu1 %vm15355_vm2, %v17531_v53  ;;  %14472 = vmatmul.mubr.f32.vlgmr.msra.gmra.mxu0 %v16569_v34 }
 0xad4   :  { %14485 = vmatprep.subr.mxu0 %v17531_v53  ;;  %14505 = vmatmul.mubr.f32.vlgmr.msra.gmra.mxu1 %v16569_v34 }
 0xad5   :  { %14518 = vmatprep.subr.mxu1 %v17531_v53  ;;  %14486 = vmatpush3.msra.mxu0 %v17532_v22 }
 0xad6   :  { %14519 = vmatpush3.msra.mxu1 %v17532_v22  ;;  %14487 = vmatprep.subr.mxu0 %v17531_v53 }
 0xad7   :  { %14520 = vmatprep.subr.mxu1 %v17531_v53  ;;  %14488 = vmatpush3.msra.mxu0 %v17533_v23 }
 0xad8   :  { %14521 = vmatpush3.msra.mxu1 %v17533_v23  ;;  %14489 = vmatprep.subr.mxu0 %v17531_v53 }
 0xad9   :  { %14522 = vmatprep.subr.mxu1 %v17531_v53  ;;  %14490 = vmatpush3.msra.mxu0 %v17573_v21 }
 0xada   :  { %14523 = vmatpush3.msra.mxu1 %v17573_v21  ;;  %14491 = vmatprep.subr.mxu0 %v17531_v53 }
 0xadb   :  { %14524 = vmatprep.subr.mxu1 %v17531_v53  ;;  %14492 = vmatpush3.msra.mxu0 %v17574_v0 }
 0xadc   :  { %14493 = vmatprep.mubr.msk.f32.mxu0 %vm15355_vm2, %v17531_v53  ;;  %14525 = vmatpush3.msra.mxu1 %v17574_v0 }
 0xadd   :  { %14526 = vmatprep.mubr.msk.f32.mxu1 %vm15355_vm2, %v17531_v53  ;;  %14494 = vmatmul.mubr.f32.vlgmr.msra.gmra.mxu0 %v16588_v20 }
 0xade   :  { %14507 = vmatprep.subr.mxu0 %v17531_v53  ;;  %14527 = vmatmul.mubr.f32.vlgmr.msra.gmra.mxu1 %v16580_v55 }
 0xadf   :  { %14540 = vmatprep.subr.mxu1 %v17531_v53  ;;  %14508 = vmatpush3.msra.mxu0 %v17575_v54 }
 0xae0   :  { %14541 = vmatpush3.msra.mxu1 %v17532_v22  ;;  %14509 = vmatprep.subr.mxu0 %v17531_v53 }
 0xae1   :  { %14542 = vmatprep.subr.mxu1 %v17531_v53  ;;  %14510 = vmatpush3.msra.mxu0 %v17576_v25 }
 0xae2   :  { %14543 = vmatpush3.msra.mxu1 %v17533_v23  ;;  %14511 = vmatprep.subr.mxu0 %v17531_v53 }
 0xae3   :  { %14544 = vmatprep.subr.mxu1 %v17531_v53  ;;  %14512 = vmatpush3.msra.mxu0 %v17577_v40 }
 0xae4   :  { %14545 = vmatpush3.msra.mxu1 %v17573_v21  ;;  %14513 = vmatprep.subr.mxu0 %v17531_v53 }
 0xae5   :  { %14546 = vmatprep.subr.mxu1 %v17531_v53  ;;  %14514 = vmatpush3.msra.mxu0 %v17578_v28 }
 0xae6   :  { %14515 = vmatprep.mubr.msk.f32.mxu0 %vm15355_vm2, %v17531_v53  ;;  %14547 = vmatpush3.msra.mxu1 %v17574_v0 }
 0xae7   :  { %14548 = vmatprep.mubr.msk.f32.mxu1 %vm15355_vm2, %v17531_v53  ;;  %14516 = vmatmul.mubr.f32.vlgmr.msra.gmra.mxu0 %v16572_v29 }
 0xae8   :  { %14529 = vmatprep.subr.mxu0 %v17531_v53  ;;  %14549 = vmatmul.mubr.f32.vlgmr.msra.gmra.mxu1 %v16569_v34 }
 0xae9   :  { %14530 = vmatpush3.msra.mxu0 %v17579_v48  ;;  %14537 = vmatprep.mubr.msk.f32.mxu0 %vm15355_vm2, %v17531_v53 }
 0xaea   :  { %14531 = vmatprep.subr.mxu0 %v17531_v53  ;;  %14562 = vmatprep.subr.mxu1 %v17531_v53 }
 0xaeb   :  { %14532 = vmatpush3.msra.mxu0 %v17580_v50  ;;  %14563 = vmatpush3.msra.mxu1 %v17581_v26 }
 0xaec   :  { %14533 = vmatprep.subr.mxu0 %v17531_v53  ;;  %14564 = vmatprep.subr.mxu1 %v17531_v53 }
 0xaed   :  { %14534 = vmatpush3.msra.mxu0 %v17582_v13  ;;  %14565 = vmatpush3.msra.mxu1 %v17583_v24 }
 0xaee   :  { %14535 = vmatprep.subr.mxu0 %v17531_v53  ;;  %14566 = vmatprep.subr.mxu1 %v17531_v53 }
 0xaef   :  { %14536 = vmatpush3.msra.mxu0 %v17584_v59  ;;  %14567 = vmatpush3.msra.mxu1 %v17585_v44 }
 0xaf0   :  { %14538 = vmatmul.mubr.f32.vlgmr.msra.gmra.mxu0 %v16569_v34  ;;  %14568 = vmatprep.subr.mxu1 %v17531_v53 }
 0xaf1   :  { %14569 = vmatpush3.msra.mxu1 %v17586_v56  ;;  %14551 = vmatprep.subr.mxu0 %v17531_v53 }
 0xaf2   :  { %14570 = vmatprep.mubr.msk.f32.mxu1 %vm15355_vm2, %v17531_v53  ;;  %14584 = vmatprep.subr.mxu1 %v17531_v53 }
 0xaf3   :  { %14552 = vmatpush3.msra.mxu0 %v15463_v27  ;;  %14559 = vmatprep.mubr.msk.f32.mxu0 %vm15355_vm2, %v17531_v53 }
 0xaf4   :  { %14553 = vmatprep.subr.mxu0 %v17531_v53 }
 0xaf5   :  { %14554 = vmatpush3.msra.mxu0 %v15467_v31 }
 0xaf6   :  { %14555 = vmatprep.subr.mxu0 %v17531_v53 }
 0xaf7   :  { %14556 = vmatpush3.msra.mxu0 %v15480_v36 }
 0xaf8   :  { %14557 = vmatprep.subr.mxu0 %v17531_v53 }
 0xaf9   :  { %14558 = vmatpush3.msra.mxu0 %v15487_v38 }
 0xafa   :  { %14573 = vmatprep.subr.mxu0 %v17531_v53 }
 0xb5a   :  { %v6883_v47 = vpop.f32.mrf.mxu1 }
 0xb5c   :  { %v14374_v18 = vpop.f32.mrf.mxu1 }
 0xb62   :  { %v7040_v19 = vpop.f32.mrf.mxu1 }
 0xb63   :  { %v6792_v15 = vpop.f32.mrf.mxu0 }
 0xb64   :  { %v14396_v52 = vpop.f32.mrf.mxu1  ;;  %v6884_v44 = vadd.f32 %v6883_v47, %v6792_v15 }
 0xb65   :  { %v14363_v51 = vpop.f32.mrf.mxu0  ;;  %v17587_v52 = vld [vmem:[#allocation29_spill] sm:$0xff] }
 0xb66   :  { %v16781_v51 = vrot.slane %v17587_v52, %v15862_v32 }
 0xb6b   :  { %v6963_v35 = vpop.f32.mrf.mxu0 }
 0xb6c   :  { %v7198_v30 = vpop.f32.mrf.mxu1  ;;  %v6964_v59 = vadd.f32 %v6963_v35, %v6884_v44 }
 0xb6d   :  { %v14385_v34 = vpop.f32.mrf.mxu0 }
 0xb6e   :  { %v14418_v29 = vpop.f32.mrf.mxu1  ;;  %v7041_v26 = vadd.f32 %v7040_v19, %v6964_v59 }
 0xb75   :  { %v7123_v55 = vpop.f32.mrf.mxu0 }
 0xb76   :  { %v7368_v57 = vpop.f32.mrf.mxu1  ;;  %v7124_v18 = vadd.f32 %v7123_v55, %v7041_v26 }
 0xb77   :  { %v14407_v20 = vpop.f32.mrf.mxu0 }
 0xb78   :  { %v14440_v56 = vpop.f32.mrf.mxu1  ;;  %v7199_v28 = vadd.f32 %v7198_v30, %v7124_v18 }
 0xb7a   :  { %v7687_v29 = vadd.f32 %v7199_v28, %v16781_v51 }
 0xb7c   :  { %v12767_v44 = vmul.f32 -1.442695, %v7687_v29 }
 0xb7e   :  { %15198 = vpow2.f32 %v12767_v44 }
 0xb7f   :  { %v7277_v24 = vpop.f32.mrf.mxu0 }
 0xb80   :  { %v7525_v13 = vpop.f32.mrf.mxu1  ;;  %v7369_v20 = vadd.f32 %v7368_v57, %v7277_v24 }
 0xb81   :  { %v14429_v50 = vpop.f32.mrf.mxu0 }
 0xb82   :  { %v14462_v48 = vpop.f32.mrf.mxu1 }
 0xb89   :  { %v7448_v40 = vpop.f32.mrf.mxu0 }
 0xb8a   :  { %v7683_v34 = vpop.f32.mrf.mxu1  ;;  %v7449_v47 = vadd.f32 %v7448_v40, %v7369_v20  ;;  %v16786_v40 = vld [vmem:[#allocation9] ss:$0 sm:$0xff] }
 0xb8b   :  { %v14451_v25 = vpop.f32.mrf.mxu0 }
 0xb8c   :  { %v14484_v56 = vpop.f32.mrf.mxu1  ;;  %v7526_v15 = vadd.f32 %v7525_v13, %v7449_v47  ;;  %v15199_v25 = vpop.eup %15198 }
 0xb8d   :  { %v7691_v57 = vadd.f32 1.0, %v15199_v25 }
 0xb8f   :  { %15200 = vrcp.f32 %v7691_v57 }
 0xb93   :  { %v7608_v59 = vpop.f32.mrf.mxu0 }
 0xb94   :  { %v7609_v50 = vadd.f32 %v7608_v59, %v7526_v15  ;;  %v7878_v48 = vpop.f32.mrf.mxu1 }
 0xb95   :  { %v14473_v26 = vpop.f32.mrf.mxu0 }
 0xb96   :  { %v7684_v19 = vadd.f32 %v7683_v34, %v7609_v50  ;;  %v14506_v35 = vpop.f32.mrf.mxu1 }
 0xb98   :  { %v7701_v30 = vrot.slane %v7684_v19, %v15862_v32 }
 0xb9a   :  { %7702 = vrot.lane.b32.xlu0 %v7701_v30, %s15358_s4 }
 0xb9c   :  { %v15201_v35 = vpop.eup %15200 }
 0xb9d   :  { %v7787_v55 = vpop.f32.mrf.mxu0 }
 0xb9e   :  { %v8035_v18 = vpop.f32.mrf.mxu1  ;;  %v7788_v13 = vadd.f32 %v16786_v40, %v7787_v55 }
 0xb9f   :  { %v14495_v28 = vpop.f32.mrf.mxu0 }
 0xba0   :  { %v14528_v24 = vpop.f32.mrf.mxu1  ;;  %v7879_v56 = vadd.f32 %v7878_v48, %v7788_v13 }
 0xba7   :  { %v7958_v29 = vpop.f32.mrf.mxu0 }
 0xba8   :  { %v8193_v20 = vpop.f32.mrf.mxu1  ;;  %v7959_v44 = vadd.f32 %v7958_v29, %v7879_v56 }
 0xba9   :  { %v14517_v34 = vpop.f32.mrf.mxu0 }
 0xbaa   :  { %v14550_v47 = vpop.f32.mrf.mxu1  ;;  %v8036_v15 = vadd.f32 %v8035_v18, %v7959_v44 }
 0xbb0   :  { %v8118_v59 = vpop.f32.mrf.mxu0 }
 0xbb1   :  { %v8119_v50 = vadd.f32 %v8118_v59, %v8036_v15 }
 0xbb2   :  { %v14539_v26 = vpop.f32.mrf.mxu0 }
 0xbb3   :  { %v8194_v19 = vadd.f32 %v8193_v20, %v8119_v50 }
 0xbb5   :  { %v8197_v30 = vmul.f32 %v15201_v35, %v8194_v19 }
 0xbb7   :  { %8199 = vrot.lane.b32.xlu1 %v8197_v30, %s15357_s3 }
 0xc0c   :  { %v7703_v48 = vpop.permute.xlu0 %7702 }
 0xc0d   :  { %v7705_v24 = vadd.f32 %v7703_v48, %v16781_v51  ;;  %v17591_v48 = vld [vmem:[#allocation23_spill] sm:$0xff] }
 0xc0f   :  { %v12768_v57 = vmul.f32 -1.442695, %v7705_v24  ;;  %v17592_v24 = vld [vmem:[#allocation25_spill] sm:$0xff] }
 0xc29   :  { %v8200_v28 = vpop.permute.xlu1 %8199 }
 0xc2a   :  { %v8202_v25 = vadd.f32 %v8200_v28, %v16781_v51  ;;  %v17588_v28 = vld [vmem:[#allocation21_spill] sm:$0xff] }
 0xc2c   :  { %15202 = vtanh.f32 %v8202_v25  ;;  %v17589_v25 = vld [vmem:[#allocation24_spill] sm:$0xff] }
 0xc2d   :  { %15204 = vpow2.f32 %v12768_v57  ;;  %v17593_v57 = vld [vmem:[#allocation13_spill] sm:$0xff] }
 0xc39   :  { %v15203_v55 = vpop.eup %15202 }
 0xc3a   :  { %8206 = vrot.lane.b32.xlu1 %v15203_v55, %s15359_s21  ;;  %v15205_v18 = vpop.eup %15204  ;;  %v17590_v55 = vld [vmem:[#allocation26_spill] sm:$0xff] }
 0xc3b   :  { %v7709_v13 = vadd.f32 1.0, %v15205_v18  ;;  %v17594_v18 = vld [vmem:[#allocation27_spill] sm:$0xff] }
 0xc3d   :  { %15206 = vrcp.f32 %v7709_v13  ;;  %v17595_v13 = vld [vmem:[#allocation14_spill] sm:$0xff] }
 0xc4a   :  { %v15207_v29 = vpop.eup %15206 }
 0xc4b   :  { %v8204_v20 = vsub.f32 1.0, %v15207_v29  ;;  %v8210_v34 = vmul.f32 %v15207_v29, %v16563_v45  ;;  %v17596_v29 = vld [vmem:[#allocation28_spill] sm:$0xff] }
 0xcac   :  { %v8207_v56 = vpop.permute.xlu1 %8206 }
 0xcad   :  { %v8209_v47 = vmul.f32 %v8207_v56, %v8204_v20  ;;  %v17597_v20 = vld [vmem:[#allocation15_spill] sm:$0xff]  ;;  %v17598_v56 = vld [vmem:[#allocation16_spill] sm:$0xff] }
 0xcaf   :  { %v16794_v44 = vadd.f32 %v8210_v34, %v8209_v47 }
 0xcb1   :  { %v8219_v15 = vrot.slane %v16794_v44, %v15862_v32 }
 0xcb3   :  { %8220 = vrot.lane.b32.xlu0 %v8219_v15, %s15359_s21 }
 0xd25   :  { %v8221_v59 = vpop.permute.xlu0 %8220 }
 0xd26   :  { %v8222_v50 = vsel %vm675_vm1, %v8221_v59, 0 }
 0xd27   :  { %v16800_v26 = vand.u32 4294901760, %v8222_v50 }
 0xd29   :  { %v16803_v19 = vsub.f32 %v8222_v50, %v16800_v26  ;;  %14571 = vmatmul.mubr.f32.vlgmr.msra.gmra.mxu1 %v16800_v26 }
 0xd2a   :  { %14585 = vmatpush3.msra.mxu1 %v15463_v27  ;;  %14592 = vmatprep.mubr.msk.f32.mxu1 %vm15355_vm2, %v17531_v53 }
 0xd2b   :  { %14586 = vmatprep.subr.mxu1 %v17531_v53  ;;  %v16811_v45 = vand.u32 4294901760, %v16803_v19 }
 0xd2c   :  { %14587 = vmatpush3.msra.mxu1 %v15467_v31 }
 0xd2d   :  { %14588 = vmatprep.subr.mxu1 %v17531_v53  ;;  %v8296_v35 = vsub.f32 %v16803_v19, %v16811_v45 }
 0xd2e   :  { %14589 = vmatpush3.msra.mxu1 %v15480_v36 }
 0xd2f   :  { %14590 = vmatprep.subr.mxu1 %v17531_v53  ;;  %v16819_v30 = vand.u32 4294901760, %v8296_v35 }
 0xd30   :  { %14591 = vmatpush3.msra.mxu1 %v15487_v38 }
 0xd31   :  { %14593 = vmatmul.mubr.f32.vlgmr.msra.gmra.mxu1 %v16811_v45  ;;  %14606 = vmatprep.subr.mxu1 %v17531_v53 }
 0xd32   :  { %14560 = vmatmul.mubr.f32.vlgmr.msra.gmra.mxu0 %v16819_v30  ;;  %14607 = vmatpush3.msra.mxu1 %v15463_v27 }
 0xd33   :  { %14574 = vmatpush3.msra.mxu0 %v15473_v33  ;;  %14608 = vmatprep.subr.mxu1 %v17531_v53 }
 0xd34   :  { %14575 = vmatprep.subr.mxu0 %v17531_v53  ;;  %14609 = vmatpush3.msra.mxu1 %v15467_v31 }
 0xd35   :  { %14576 = vmatpush3.msra.mxu0 %v15484_v37  ;;  %14610 = vmatprep.subr.mxu1 %v17531_v53 }
 0xd36   :  { %14577 = vmatprep.subr.mxu0 %v17531_v53  ;;  %14611 = vmatpush3.msra.mxu1 %v15480_v36 }
 0xd37   :  { %14578 = vmatpush3.msra.mxu0 %v15497_v41  ;;  %14612 = vmatprep.subr.mxu1 %v17531_v53 }
 0xd38   :  { %14579 = vmatprep.subr.mxu0 %v17531_v53  ;;  %14581 = vmatprep.mubr.msk.f32.mxu0 %vm15355_vm2, %v17531_v53 }
 0xd39   :  { %14580 = vmatpush3.msra.mxu0 %v15505_v43  ;;  %14613 = vmatpush3.msra.mxu1 %v15487_v38 }
 0xd3a   :  { %14614 = vmatprep.mubr.msk.f32.mxu1 %vm15355_vm2, %v17531_v53  ;;  %14582 = vmatmul.mubr.f32.vlgmr.msra.gmra.mxu0 %v16803_v19 }
 0xd3b   :  { %14595 = vmatprep.subr.mxu0 %v17531_v53  ;;  %14615 = vmatmul.mubr.f32.vlgmr.msra.gmra.mxu1 %v16800_v26 }
 0xd3c   :  { %14628 = vmatprep.subr.mxu1 %v17531_v53  ;;  %14596 = vmatpush3.msra.mxu0 %v15491_v39 }
 0xd3d   :  { %14629 = vmatpush3.msra.mxu1 %v15644_v12  ;;  %14597 = vmatprep.subr.mxu0 %v17531_v53 }
 0xd3e   :  { %14630 = vmatprep.subr.mxu1 %v17531_v53  ;;  %14598 = vmatpush3.msra.mxu0 %v15501_v42 }
 0xd3f   :  { %14631 = vmatpush3.msra.mxu1 %v15653_v14  ;;  %14599 = vmatprep.subr.mxu0 %v17531_v53 }
 0xd40   :  { %14632 = vmatprep.subr.mxu1 %v17531_v53  ;;  %14600 = vmatpush3.msra.mxu0 %v15514_v46 }
 0xd41   :  { %14633 = vmatpush3.msra.mxu1 %v15663_v16  ;;  %14601 = vmatprep.subr.mxu0 %v17531_v53 }
 0xd42   :  { %14634 = vmatprep.subr.mxu1 %v17531_v53  ;;  %14602 = vmatpush3.msra.mxu0 %v15523_v49 }
 0xd43   :  { %14603 = vmatprep.mubr.msk.f32.mxu0 %vm15355_vm2, %v17531_v53  ;;  %14635 = vmatpush3.msra.mxu1 %v15670_v17 }
 0xd44   :  { %14636 = vmatprep.mubr.msk.f32.mxu1 %vm15355_vm2, %v17531_v53  ;;  %14604 = vmatmul.mubr.f32.vlgmr.msra.gmra.mxu0 %v16800_v26 }
 0xd45   :  { %14617 = vmatprep.subr.mxu0 %v17531_v53  ;;  %14637 = vmatmul.mubr.f32.vlgmr.msra.gmra.mxu1 %v16800_v26 }
 0xd46   :  { %14650 = vmatprep.subr.mxu1 %v17531_v53  ;;  %14618 = vmatpush3.msra.mxu0 %v15573_v60 }
 0xd47   :  { %14651 = vmatpush3.msra.mxu1 %v15573_v60  ;;  %14619 = vmatprep.subr.mxu0 %v17531_v53 }
 0xd48   :  { %14652 = vmatprep.subr.mxu1 %v17531_v53  ;;  %14620 = vmatpush3.msra.mxu0 %v15579_v61 }
 0xd49   :  { %14653 = vmatpush3.msra.mxu1 %v15579_v61  ;;  %14621 = vmatprep.subr.mxu0 %v17531_v53 }
 0xd4a   :  { %14654 = vmatprep.subr.mxu1 %v17531_v53  ;;  %14622 = vmatpush3.msra.mxu0 %v15591_v1 }
 0xd4b   :  { %14655 = vmatpush3.msra.mxu1 %v15591_v1  ;;  %14623 = vmatprep.subr.mxu0 %v17531_v53 }
 0xd4c   :  { %14656 = vmatprep.subr.mxu1 %v17531_v53  ;;  %14624 = vmatpush3.msra.mxu0 %v15601_v3 }
 0xd4d   :  { %14625 = vmatprep.mubr.msk.f32.mxu0 %vm15355_vm2, %v17531_v53  ;;  %14657 = vmatpush3.msra.mxu1 %v15601_v3 }
 0xd4e   :  { %14658 = vmatprep.mubr.msk.f32.mxu1 %vm15355_vm2, %v17531_v53  ;;  %14626 = vmatmul.mubr.f32.vlgmr.msra.gmra.mxu0 %v16819_v30 }
 0xd4f   :  { %14639 = vmatprep.subr.mxu0 %v17531_v53  ;;  %14659 = vmatmul.mubr.f32.vlgmr.msra.gmra.mxu1 %v16811_v45 }
 0xd50   :  { %14672 = vmatprep.subr.mxu1 %v17531_v53  ;;  %14640 = vmatpush3.msra.mxu0 %v15587_v63 }
 0xd51   :  { %14673 = vmatpush3.msra.mxu1 %v15573_v60  ;;  %14641 = vmatprep.subr.mxu0 %v17531_v53 }
 0xd52   :  { %14674 = vmatprep.subr.mxu1 %v17531_v53  ;;  %14642 = vmatpush3.msra.mxu0 %v15596_v2 }
 0xd53   :  { %14675 = vmatpush3.msra.mxu1 %v15579_v61  ;;  %14643 = vmatprep.subr.mxu0 %v17531_v53 }
 0xd54   :  { %14676 = vmatprep.subr.mxu1 %v17531_v53  ;;  %14644 = vmatpush3.msra.mxu0 %v15611_v5 }
 0xd55   :  { %14677 = vmatpush3.msra.mxu1 %v15591_v1  ;;  %14645 = vmatprep.subr.mxu0 %v17531_v53 }
 0xd56   :  { %14678 = vmatprep.subr.mxu1 %v17531_v53  ;;  %14646 = vmatpush3.msra.mxu0 %v15621_v7 }
 0xd57   :  { %14647 = vmatprep.mubr.msk.f32.mxu0 %vm15355_vm2, %v17531_v53  ;;  %14679 = vmatpush3.msra.mxu1 %v15601_v3 }
 0xd58   :  { %14680 = vmatprep.mubr.msk.f32.mxu1 %vm15355_vm2, %v17531_v53  ;;  %14648 = vmatmul.mubr.f32.vlgmr.msra.gmra.mxu0 %v16803_v19 }
 0xd59   :  { %14661 = vmatprep.subr.mxu0 %v17531_v53  ;;  %14681 = vmatmul.mubr.f32.vlgmr.msra.gmra.mxu1 %v16800_v26 }
 0xd5a   :  { %14694 = vmatprep.subr.mxu1 %v17531_v53  ;;  %14662 = vmatpush3.msra.mxu0 %v15606_v4 }
 0xd5b   :  { %14695 = vmatpush3.msra.mxu1 %v15758_v58  ;;  %14663 = vmatprep.subr.mxu0 %v17531_v53 }
 0xd5c   :  { %14696 = vmatprep.subr.mxu1 %v17531_v53  ;;  %14664 = vmatpush3.msra.mxu0 %v15616_v6 }
 0xd5d   :  { %14697 = vmatpush3.msra.mxu1 %v15767_v62  ;;  %14665 = vmatprep.subr.mxu0 %v17531_v53 }
 0xd5e   :  { %14698 = vmatprep.subr.mxu1 %v17531_v53  ;;  %14666 = vmatpush3.msra.mxu0 %v15631_v9 }
 0xd5f   :  { %14699 = vmatpush3.msra.mxu1 %v15777_v8  ;;  %14667 = vmatprep.subr.mxu0 %v17531_v53 }
 0xd60   :  { %14700 = vmatprep.subr.mxu1 %v17531_v53  ;;  %14668 = vmatpush3.msra.mxu0 %v15640_v11 }
 0xd61   :  { %14669 = vmatprep.mubr.msk.f32.mxu0 %vm15355_vm2, %v17531_v53  ;;  %14701 = vmatpush3.msra.mxu1 %v15784_v10 }
 0xd62   :  { %14702 = vmatprep.mubr.msk.f32.mxu1 %vm15355_vm2, %v17531_v53  ;;  %14670 = vmatmul.mubr.f32.vlgmr.msra.gmra.mxu0 %v16800_v26 }
 0xd63   :  { %14683 = vmatprep.subr.mxu0 %v17531_v53  ;;  %14703 = vmatmul.mubr.f32.vlgmr.msra.gmra.mxu1 %v16800_v26 }
 0xd64   :  { %14716 = vmatprep.subr.mxu1 %v17531_v53  ;;  %14684 = vmatpush3.msra.mxu0 %v17532_v22 }
 0xd65   :  { %14717 = vmatpush3.msra.mxu1 %v17532_v22  ;;  %14685 = vmatprep.subr.mxu0 %v17531_v53 }
 0xd66   :  { %14718 = vmatprep.subr.mxu1 %v17531_v53  ;;  %14686 = vmatpush3.msra.mxu0 %v17533_v23 }
 0xd67   :  { %14719 = vmatpush3.msra.mxu1 %v17533_v23  ;;  %14687 = vmatprep.subr.mxu0 %v17531_v53 }
 0xd68   :  { %14720 = vmatprep.subr.mxu1 %v17531_v53  ;;  %14688 = vmatpush3.msra.mxu0 %v17573_v21 }
 0xd69   :  { %14721 = vmatpush3.msra.mxu1 %v17573_v21  ;;  %14689 = vmatprep.subr.mxu0 %v17531_v53 }
 0xd6a   :  { %14722 = vmatprep.subr.mxu1 %v17531_v53  ;;  %14690 = vmatpush3.msra.mxu0 %v17574_v0 }
 0xd6b   :  { %14691 = vmatprep.mubr.msk.f32.mxu0 %vm15355_vm2, %v17531_v53  ;;  %14723 = vmatpush3.msra.mxu1 %v17574_v0 }
 0xd6c   :  { %14724 = vmatprep.mubr.msk.f32.mxu1 %vm15355_vm2, %v17531_v53  ;;  %14692 = vmatmul.mubr.f32.vlgmr.msra.gmra.mxu0 %v16819_v30 }
 0xd6d   :  { %14705 = vmatprep.subr.mxu0 %v17531_v53  ;;  %14725 = vmatmul.mubr.f32.vlgmr.msra.gmra.mxu1 %v16811_v45 }
 0xd6e   :  { %14738 = vmatprep.subr.mxu1 %v17531_v53  ;;  %14706 = vmatpush3.msra.mxu0 %v17575_v54 }
 0xd6f   :  { %14739 = vmatpush3.msra.mxu1 %v17532_v22  ;;  %14707 = vmatprep.subr.mxu0 %v17531_v53 }
 0xd70   :  { %14740 = vmatprep.subr.mxu1 %v17531_v53  ;;  %14708 = vmatpush3.msra.mxu0 %v17588_v28 }
 0xd71   :  { %14741 = vmatpush3.msra.mxu1 %v17533_v23  ;;  %14709 = vmatprep.subr.mxu0 %v17531_v53 }
 0xd72   :  { %14742 = vmatprep.subr.mxu1 %v17531_v53  ;;  %14710 = vmatpush3.msra.mxu0 %v17589_v25 }
 0xd73   :  { %14743 = vmatpush3.msra.mxu1 %v17573_v21  ;;  %14711 = vmatprep.subr.mxu0 %v17531_v53 }
 0xd74   :  { %14744 = vmatprep.subr.mxu1 %v17531_v53  ;;  %14712 = vmatpush3.msra.mxu0 %v17590_v55 }
 0xd75   :  { %14713 = vmatprep.mubr.msk.f32.mxu0 %vm15355_vm2, %v17531_v53  ;;  %14745 = vmatpush3.msra.mxu1 %v17574_v0 }
 0xd76   :  { %14746 = vmatprep.mubr.msk.f32.mxu1 %vm15355_vm2, %v17531_v53  ;;  %14714 = vmatmul.mubr.f32.vlgmr.msra.gmra.mxu0 %v16803_v19 }
 0xd77   :  { %14727 = vmatprep.subr.mxu0 %v17531_v53  ;;  %14747 = vmatmul.mubr.f32.vlgmr.msra.gmra.mxu1 %v16800_v26 }
 0xd78   :  { %14728 = vmatpush3.msra.mxu0 %v17591_v48  ;;  %14735 = vmatprep.mubr.msk.f32.mxu0 %vm15355_vm2, %v17531_v53 }
 0xd79   :  { %14729 = vmatprep.subr.mxu0 %v17531_v53  ;;  %14760 = vmatprep.subr.mxu1 %v17531_v53 }
 0xd7a   :  { %14730 = vmatpush3.msra.mxu0 %v17592_v24  ;;  %14761 = vmatpush3.msra.mxu1 %v17593_v57 }
 0xd7b   :  { %14731 = vmatprep.subr.mxu0 %v17531_v53  ;;  %14762 = vmatprep.subr.mxu1 %v17531_v53 }
 0xd7c   :  { %14732 = vmatpush3.msra.mxu0 %v17594_v18  ;;  %14763 = vmatpush3.msra.mxu1 %v17595_v13 }
 0xd7d   :  { %14733 = vmatprep.subr.mxu0 %v17531_v53  ;;  %14764 = vmatprep.subr.mxu1 %v17531_v53 }
 0xd7e   :  { %14734 = vmatpush3.msra.mxu0 %v17596_v29  ;;  %14765 = vmatpush3.msra.mxu1 %v17597_v20 }
 0xd7f   :  { %14736 = vmatmul.mubr.f32.vlgmr.msra.gmra.mxu0 %v16800_v26  ;;  %14766 = vmatprep.subr.mxu1 %v17531_v53 }
 0xd80   :  { %14767 = vmatpush3.msra.mxu1 %v17598_v56  ;;  %14749 = vmatprep.subr.mxu0 %v17531_v53 }
 0xd81   :  { %14768 = vmatprep.mubr.msk.f32.mxu1 %vm15355_vm2, %v17531_v53  ;;  %14782 = vmatprep.subr.mxu1 %v17531_v53 }
 0xd82   :  { %14750 = vmatpush3.msra.mxu0 %v15463_v27  ;;  %14757 = vmatprep.mubr.msk.f32.mxu0 %vm15355_vm2, %v17531_v53 }
 0xd83   :  { %14751 = vmatprep.subr.mxu0 %v17531_v53 }
 0xd84   :  { %14752 = vmatpush3.msra.mxu0 %v15467_v31 }
 0xd85   :  { %14753 = vmatprep.subr.mxu0 %v17531_v53 }
 0xd86   :  { %14754 = vmatpush3.msra.mxu0 %v15480_v36 }
 0xd87   :  { %14755 = vmatprep.subr.mxu0 %v17531_v53 }
 0xd88   :  { %14756 = vmatpush3.msra.mxu0 %v15487_v38 }
 0xd89   :  { %14771 = vmatprep.subr.mxu0 %v17531_v53 }
 0xde9   :  { %v8390_v34 = vpop.f32.mrf.mxu1 }
 0xdeb   :  { %v14572_v47 = vpop.f32.mrf.mxu1 }
 0xdf1   :  { %v8547_v15 = vpop.f32.mrf.mxu1 }
 0xdf2   :  { %v8299_v59 = vpop.f32.mrf.mxu0 }
 0xdf3   :  { %v14594_v50 = vpop.f32.mrf.mxu1  ;;  %v8391_v13 = vadd.f32 %v8390_v34, %v8299_v59 }
 0xdf4   :  { %v14561_v26 = vpop.f32.mrf.mxu0  ;;  %v645_v50 = vcombine.high %v16781_v51, %v16781_v51 }
 0xdfa   :  { %v8470_v19 = vpop.f32.mrf.mxu0 }
 0xdfb   :  { %v8705_v45 = vpop.f32.mrf.mxu1  ;;  %v8471_v18 = vadd.f32 %v8470_v19, %v8391_v13 }
 0xdfc   :  { %v14583_v35 = vpop.f32.mrf.mxu0 }
 0xdfd   :  { %v14616_v30 = vpop.f32.mrf.mxu1  ;;  %v8548_v48 = vadd.f32 %v8547_v15, %v8471_v18 }
 0xe04   :  { %v8630_v52 = vpop.f32.mrf.mxu0 }
 0xe05   :  { %v8875_v56 = vpop.f32.mrf.mxu1  ;;  %v8631_v47 = vadd.f32 %v8630_v52, %v8548_v48 }
 0xe06   :  { %v14605_v20 = vpop.f32.mrf.mxu0 }
 0xe07   :  { %v14638_v29 = vpop.f32.mrf.mxu1  ;;  %v8706_v28 = vadd.f32 %v8705_v45, %v8631_v47 }
 0xe09   :  { %v9194_v35 = vadd.f32 %v8706_v28, %v645_v50 }
 0xe0b   :  { %v12769_v29 = vmul.f32 -1.442695, %v9194_v35 }
 0xe0d   :  { %15208 = vpow2.f32 %v12769_v29 }
 0xe0e   :  { %v8784_v57 = vpop.f32.mrf.mxu0 }
 0xe0f   :  { %v9032_v24 = vpop.f32.mrf.mxu1  ;;  %v8876_v0 = vadd.f32 %v8875_v56, %v8784_v57 }
 0xe10   :  { %v14627_v55 = vpop.f32.mrf.mxu0 }
 0xe11   :  { %v14660_v25 = vpop.f32.mrf.mxu1 }
 0xe18   :  { %v8955_v26 = vpop.f32.mrf.mxu0 }
 0xe19   :  { %v9190_v54 = vpop.f32.mrf.mxu1  ;;  %v8956_v20 = vadd.f32 %v8955_v26, %v8876_v0 }
 0xe1a   :  { %v14649_v30 = vpop.f32.mrf.mxu0  ;;  %v15209_v19 = vpop.eup %15208 }
 0xe1b   :  { %v14682_v21 = vpop.f32.mrf.mxu1  ;;  %v9033_v34 = vadd.f32 %v9032_v24, %v8956_v20 }
 0xe1c   :  { %v9198_v21 = vadd.f32 1.0, %v15209_v19 }
 0xe1e   :  { %15210 = vrcp.f32 %v9198_v21 }
 0xe22   :  { %v9115_v13 = vpop.f32.mrf.mxu0 }
 0xe23   :  { %v9116_v59 = vadd.f32 %v9115_v13, %v9033_v34  ;;  %v9385_v18 = vpop.f32.mrf.mxu1 }
 0xe24   :  { %v14671_v55 = vpop.f32.mrf.mxu0 }
 0xe25   :  { %v9191_v25 = vadd.f32 %v9190_v54, %v9116_v59  ;;  %v14704_v52 = vpop.f32.mrf.mxu1 }
 0xe27   :  { %v9208_v48 = vrot.slane %v9191_v25, %v15862_v32 }
 0xe29   :  { %9209 = vrot.lane.b32.xlu0 %v9208_v48, %s15358_s4 }
 0xe2b   :  { %v15211_v13 = vpop.eup %15210 }
 0xe2c   :  { %v9294_v51 = vpop.f32.mrf.mxu0 }
 0xe2d   :  { %v9542_v15 = vpop.f32.mrf.mxu1  ;;  %v9295_v0 = vadd.f32 %v16786_v40, %v9294_v51 }
 0xe2e   :  { %v14693_v28 = vpop.f32.mrf.mxu0 }
 0xe2f   :  { %v14726_v57 = vpop.f32.mrf.mxu1  ;;  %v9386_v45 = vadd.f32 %v9385_v18, %v9295_v0 }
 0xe36   :  { %v9465_v24 = vpop.f32.mrf.mxu0 }
 0xe37   :  { %v9700_v56 = vpop.f32.mrf.mxu1  ;;  %v9466_v54 = vadd.f32 %v9465_v24, %v9386_v45 }
 0xe38   :  { %v14715_v47 = vpop.f32.mrf.mxu0 }
 0xe39   :  { %v14748_v26 = vpop.f32.mrf.mxu1  ;;  %v9543_v35 = vadd.f32 %v9542_v15, %v9466_v54 }
 0xe3f   :  { %v9625_v30 = vpop.f32.mrf.mxu0 }
 0xe40   :  { %v9626_v20 = vadd.f32 %v9625_v30, %v9543_v35  ;;  %v17599_v30 = vld [vmem:[#allocation20_spill] sm:$0xff] }
 0xe41   :  { %v14737_v29 = vpop.f32.mrf.mxu0 }
 0xe42   :  { %v9701_v34 = vadd.f32 %v9700_v56, %v9626_v20  ;;  %v17600_v20 = vld [vmem:[#allocation22_spill] sm:$0xff]  ;;  %v17601_v29 = vld [vmem:[#allocation19_spill] sm:$0xff] }
 0xe44   :  { %v9704_v59 = vmul.f32 %v15211_v13, %v9701_v34  ;;  %v17602_v34 = vld [vmem:[#allocation21_spill] sm:$0xff]  ;;  %v17603_v13 = vld [vmem:[#allocation24_spill] sm:$0xff] }
 0xe46   :  { %9706 = vrot.lane.b32.xlu1 %v9704_v59, %s15357_s3  ;;  %v17604_v59 = vld [vmem:[#allocation26_spill] sm:$0xff] }
 0xe9b   :  { %v9210_v52 = vpop.permute.xlu0 %9209 }
 0xe9c   :  { %v9212_v18 = vadd.f32 %v9210_v52, %v645_v50  ;;  %v17608_v52 = vld [vmem:[#allocation27_spill] sm:$0xff] }
 0xe9e   :  { %v12770_v48 = vmul.f32 -1.442695, %v9212_v18  ;;  %v17609_v18 = vld [vmem:[#allocation14_spill] sm:$0xff] }
 0xeb8   :  { %v9707_v55 = vpop.permute.xlu1 %9706 }
 0xeb9   :  { %v9709_v25 = vadd.f32 %v9707_v55, %v645_v50  ;;  %v17605_v55 = vld [vmem:[#allocation23_spill] sm:$0xff] }
 0xebb   :  { %15212 = vtanh.f32 %v9709_v25  ;;  %v17606_v25 = vld [vmem:[#allocation25_spill] sm:$0xff] }
 0xebc   :  { %15214 = vpow2.f32 %v12770_v48  ;;  %v17610_v48 = vld [vmem:[#allocation28_spill] sm:$0xff] }
 0xec8   :  { %v15213_v40 = vpop.eup %15212 }
 0xec9   :  { %9713 = vrot.lane.b32.xlu1 %v15213_v40, %s15359_s21  ;;  %v15215_v51 = vpop.eup %15214  ;;  %v17607_v40 = vld [vmem:[#allocation13_spill] sm:$0xff] }
 0xeca   :  { %v9216_v15 = vadd.f32 1.0, %v15215_v51  ;;  %v17611_v51 = vld [vmem:[#allocation15_spill] sm:$0xff] }
 0xecc   :  { %15216 = vrcp.f32 %v9216_v15  ;;  %v17612_v15 = vld [vmem:[#allocation16_spill] sm:$0xff] }
 0xed9   :  { %v15217_v28 = vpop.eup %15216 }
 0xeda   :  { %v9711_v19 = vsub.f32 1.0, %v15217_v28  ;;  %v9717_v21 = vmul.f32 %v15217_v28, %v16794_v44 }
 0xf3b   :  { %v9714_v57 = vpop.permute.xlu1 %9713 }
 0xf3c   :  { %v9716_v0 = vmul.f32 %v9714_v57, %v9711_v19 }
 0xf3e   :  { %v17018_v24 = vadd.f32 %v9717_v21, %v9716_v0 }
 0xf40   :  { %v9726_v56 = vrot.slane %v17018_v24, %v15862_v32 }
 0xf42   :  { %9727 = vrot.lane.b32.xlu0 %v9726_v56, %s15359_s21 }
 0xfb4   :  { %v9728_v45 = vpop.permute.xlu0 %9727 }
 0xfb5   :  { %v9729_v50 = vsel %vm675_vm1, %v9728_v45, 0 }
 0xfb6   :  { %v17024_v47 = vand.u32 4294901760, %v9729_v50 }
 0xfb8   :  { %v17027_v26 = vsub.f32 %v9729_v50, %v17024_v47  ;;  %14769 = vmatmul.mubr.f32.vlgmr.msra.gmra.mxu1 %v17024_v47 }
 0xfb9   :  { %14783 = vmatpush3.msra.mxu1 %v15463_v27  ;;  %14790 = vmatprep.mubr.msk.f32.mxu1 %vm15355_vm2, %v17531_v53 }
 0xfba   :  { %14784 = vmatprep.subr.mxu1 %v17531_v53  ;;  %v17035_v44 = vand.u32 4294901760, %v17027_v26 }
 0xfbb   :  { %14785 = vmatpush3.msra.mxu1 %v15467_v31 }
 0xfbc   :  { %14786 = vmatprep.subr.mxu1 %v17531_v53  ;;  %v9803_v54 = vsub.f32 %v17027_v26, %v17035_v44 }
 0xfbd   :  { %14787 = vmatpush3.msra.mxu1 %v15480_v36 }
 0xfbe   :  { %14788 = vmatprep.subr.mxu1 %v17531_v53  ;;  %v17043_v35 = vand.u32 4294901760, %v9803_v54 }
 0xfbf   :  { %14789 = vmatpush3.msra.mxu1 %v15487_v38 }
 0xfc0   :  { %14791 = vmatmul.mubr.f32.vlgmr.msra.gmra.mxu1 %v17035_v44  ;;  %14804 = vmatprep.subr.mxu1 %v17531_v53 }
 0xfc1   :  { %14758 = vmatmul.mubr.f32.vlgmr.msra.gmra.mxu0 %v17043_v35  ;;  %14805 = vmatpush3.msra.mxu1 %v15463_v27 }
 0xfc2   :  { %14772 = vmatpush3.msra.mxu0 %v15473_v33  ;;  %14806 = vmatprep.subr.mxu1 %v17531_v53 }
 0xfc3   :  { %14773 = vmatprep.subr.mxu0 %v17531_v53  ;;  %14807 = vmatpush3.msra.mxu1 %v15467_v31 }
 0xfc4   :  { %14774 = vmatpush3.msra.mxu0 %v15484_v37  ;;  %14808 = vmatprep.subr.mxu1 %v17531_v53 }
 0xfc5   :  { %14775 = vmatprep.subr.mxu0 %v17531_v53  ;;  %14809 = vmatpush3.msra.mxu1 %v15480_v36 }
 0xfc6   :  { %14776 = vmatpush3.msra.mxu0 %v15497_v41  ;;  %14810 = vmatprep.subr.mxu1 %v17531_v53 }
 0xfc7   :  { %14777 = vmatprep.subr.mxu0 %v17531_v53  ;;  %14779 = vmatprep.mubr.msk.f32.mxu0 %vm15355_vm2, %v17531_v53 }
 0xfc8   :  { %14778 = vmatpush3.msra.mxu0 %v15505_v43  ;;  %14811 = vmatpush3.msra.mxu1 %v15487_v38 }
 0xfc9   :  { %14812 = vmatprep.mubr.msk.f32.mxu1 %vm15355_vm2, %v17531_v53  ;;  %14780 = vmatmul.mubr.f32.vlgmr.msra.gmra.mxu0 %v17027_v26 }
 0xfca   :  { %14793 = vmatprep.subr.mxu0 %v17531_v53  ;;  %14813 = vmatmul.mubr.f32.vlgmr.msra.gmra.mxu1 %v17024_v47 }
 0xfcb   :  { %14826 = vmatprep.subr.mxu1 %v17531_v53  ;;  %14794 = vmatpush3.msra.mxu0 %v15491_v39 }
 0xfcc   :  { %14827 = vmatpush3.msra.mxu1 %v15644_v12  ;;  %14795 = vmatprep.subr.mxu0 %v17531_v53 }
 0xfcd   :  { %14828 = vmatprep.subr.mxu1 %v17531_v53  ;;  %14796 = vmatpush3.msra.mxu0 %v15501_v42 }
 0xfce   :  { %14829 = vmatpush3.msra.mxu1 %v15653_v14  ;;  %14797 = vmatprep.subr.mxu0 %v17531_v53 }
 0xfcf   :  { %14830 = vmatprep.subr.mxu1 %v17531_v53  ;;  %14798 = vmatpush3.msra.mxu0 %v15514_v46 }
 0xfd0   :  { %14831 = vmatpush3.msra.mxu1 %v15663_v16  ;;  %14799 = vmatprep.subr.mxu0 %v17531_v53 }
 0xfd1   :  { %14832 = vmatprep.subr.mxu1 %v17531_v53  ;;  %14800 = vmatpush3.msra.mxu0 %v15523_v49 }
 0xfd2   :  { %14801 = vmatprep.mubr.msk.f32.mxu0 %vm15355_vm2, %v17531_v53  ;;  %14833 = vmatpush3.msra.mxu1 %v15670_v17 }
 0xfd3   :  { %14834 = vmatprep.mubr.msk.f32.mxu1 %vm15355_vm2, %v17531_v53  ;;  %14802 = vmatmul.mubr.f32.vlgmr.msra.gmra.mxu0 %v17024_v47 }
 0xfd4   :  { %14815 = vmatprep.subr.mxu0 %v17531_v53  ;;  %14835 = vmatmul.mubr.f32.vlgmr.msra.gmra.mxu1 %v17024_v47 }
 0xfd5   :  { %14848 = vmatprep.subr.mxu1 %v17531_v53  ;;  %14816 = vmatpush3.msra.mxu0 %v15573_v60 }
 0xfd6   :  { %14849 = vmatpush3.msra.mxu1 %v15573_v60  ;;  %14817 = vmatprep.subr.mxu0 %v17531_v53 }
 0xfd7   :  { %14850 = vmatprep.subr.mxu1 %v17531_v53  ;;  %14818 = vmatpush3.msra.mxu0 %v15579_v61 }
 0xfd8   :  { %14851 = vmatpush3.msra.mxu1 %v15579_v61  ;;  %14819 = vmatprep.subr.mxu0 %v17531_v53 }
 0xfd9   :  { %14852 = vmatprep.subr.mxu1 %v17531_v53  ;;  %14820 = vmatpush3.msra.mxu0 %v15591_v1 }
 0xfda   :  { %14853 = vmatpush3.msra.mxu1 %v15591_v1  ;;  %14821 = vmatprep.subr.mxu0 %v17531_v53 }
 0xfdb   :  { %14854 = vmatprep.subr.mxu1 %v17531_v53  ;;  %14822 = vmatpush3.msra.mxu0 %v15601_v3 }
 0xfdc   :  { %14823 = vmatprep.mubr.msk.f32.mxu0 %vm15355_vm2, %v17531_v53  ;;  %14855 = vmatpush3.msra.mxu1 %v15601_v3 }
 0xfdd   :  { %14856 = vmatprep.mubr.msk.f32.mxu1 %vm15355_vm2, %v17531_v53  ;;  %14824 = vmatmul.mubr.f32.vlgmr.msra.gmra.mxu0 %v17043_v35 }
 0xfde   :  { %14837 = vmatprep.subr.mxu0 %v17531_v53  ;;  %14857 = vmatmul.mubr.f32.vlgmr.msra.gmra.mxu1 %v17035_v44 }
 0xfdf   :  { %14870 = vmatprep.subr.mxu1 %v17531_v53  ;;  %14838 = vmatpush3.msra.mxu0 %v15587_v63 }
 0xfe0   :  { %14871 = vmatpush3.msra.mxu1 %v15573_v60  ;;  %14839 = vmatprep.subr.mxu0 %v17531_v53 }
 0xfe1   :  { %14872 = vmatprep.subr.mxu1 %v17531_v53  ;;  %14840 = vmatpush3.msra.mxu0 %v15596_v2 }
 0xfe2   :  { %14873 = vmatpush3.msra.mxu1 %v15579_v61  ;;  %14841 = vmatprep.subr.mxu0 %v17531_v53 }
 0xfe3   :  { %14874 = vmatprep.subr.mxu1 %v17531_v53  ;;  %14842 = vmatpush3.msra.mxu0 %v15611_v5 }
 0xfe4   :  { %14875 = vmatpush3.msra.mxu1 %v15591_v1  ;;  %14843 = vmatprep.subr.mxu0 %v17531_v53 }
 0xfe5   :  { %14876 = vmatprep.subr.mxu1 %v17531_v53  ;;  %14844 = vmatpush3.msra.mxu0 %v15621_v7 }
 0xfe6   :  { %14845 = vmatprep.mubr.msk.f32.mxu0 %vm15355_vm2, %v17531_v53  ;;  %14877 = vmatpush3.msra.mxu1 %v15601_v3 }
 0xfe7   :  { %14878 = vmatprep.mubr.msk.f32.mxu1 %vm15355_vm2, %v17531_v53  ;;  %14846 = vmatmul.mubr.f32.vlgmr.msra.gmra.mxu0 %v17027_v26 }
 0xfe8   :  { %14859 = vmatprep.subr.mxu0 %v17531_v53  ;;  %14879 = vmatmul.mubr.f32.vlgmr.msra.gmra.mxu1 %v17024_v47 }
 0xfe9   :  { %14892 = vmatprep.subr.mxu1 %v17531_v53  ;;  %14860 = vmatpush3.msra.mxu0 %v15606_v4 }
 0xfea   :  { %14893 = vmatpush3.msra.mxu1 %v15758_v58  ;;  %14861 = vmatprep.subr.mxu0 %v17531_v53 }
 0xfeb   :  { %14894 = vmatprep.subr.mxu1 %v17531_v53  ;;  %14862 = vmatpush3.msra.mxu0 %v15616_v6 }
 0xfec   :  { %14895 = vmatpush3.msra.mxu1 %v15767_v62  ;;  %14863 = vmatprep.subr.mxu0 %v17531_v53 }
 0xfed   :  { %14896 = vmatprep.subr.mxu1 %v17531_v53  ;;  %14864 = vmatpush3.msra.mxu0 %v15631_v9 }
 0xfee   :  { %14897 = vmatpush3.msra.mxu1 %v15777_v8  ;;  %14865 = vmatprep.subr.mxu0 %v17531_v53 }
 0xfef   :  { %14898 = vmatprep.subr.mxu1 %v17531_v53  ;;  %14866 = vmatpush3.msra.mxu0 %v15640_v11 }
 0xff0   :  { %14867 = vmatprep.mubr.msk.f32.mxu0 %vm15355_vm2, %v17531_v53  ;;  %14899 = vmatpush3.msra.mxu1 %v15784_v10 }
 0xff1   :  { %14900 = vmatprep.mubr.msk.f32.mxu1 %vm15355_vm2, %v17531_v53  ;;  %14868 = vmatmul.mubr.f32.vlgmr.msra.gmra.mxu0 %v17024_v47 }
 0xff2   :  { %14881 = vmatprep.subr.mxu0 %v17531_v53  ;;  %14901 = vmatmul.mubr.f32.vlgmr.msra.gmra.mxu1 %v17024_v47 }
 0xff3   :  { %14914 = vmatprep.subr.mxu1 %v17531_v53  ;;  %14882 = vmatpush3.msra.mxu0 %v17532_v22 }
 0xff4   :  { %14915 = vmatpush3.msra.mxu1 %v17532_v22  ;;  %14883 = vmatprep.subr.mxu0 %v17531_v53 }
 0xff5   :  { %14916 = vmatprep.subr.mxu1 %v17531_v53  ;;  %14884 = vmatpush3.msra.mxu0 %v17533_v23 }
 0xff6   :  { %14917 = vmatpush3.msra.mxu1 %v17533_v23  ;;  %14885 = vmatprep.subr.mxu0 %v17531_v53 }
 0xff7   :  { %14918 = vmatprep.subr.mxu1 %v17531_v53  ;;  %14886 = vmatpush3.msra.mxu0 %v17599_v30 }
 0xff8   :  { %14919 = vmatpush3.msra.mxu1 %v17599_v30  ;;  %14887 = vmatprep.subr.mxu0 %v17531_v53 }
 0xff9   :  { %14920 = vmatprep.subr.mxu1 %v17531_v53  ;;  %14888 = vmatpush3.msra.mxu0 %v17600_v20 }
 0xffa   :  { %14889 = vmatprep.mubr.msk.f32.mxu0 %vm15355_vm2, %v17531_v53  ;;  %14921 = vmatpush3.msra.mxu1 %v17600_v20 }
 0xffb   :  { %14922 = vmatprep.mubr.msk.f32.mxu1 %vm15355_vm2, %v17531_v53  ;;  %14890 = vmatmul.mubr.f32.vlgmr.msra.gmra.mxu0 %v17043_v35 }
 0xffc   :  { %14903 = vmatprep.subr.mxu0 %v17531_v53  ;;  %14923 = vmatmul.mubr.f32.vlgmr.msra.gmra.mxu1 %v17035_v44 }
 0xffd   :  { %14936 = vmatprep.subr.mxu1 %v17531_v53  ;;  %14904 = vmatpush3.msra.mxu0 %v17601_v29 }
 0xffe   :  { %14937 = vmatpush3.msra.mxu1 %v17532_v22  ;;  %14905 = vmatprep.subr.mxu0 %v17531_v53 }
 0xfff   :  { %14938 = vmatprep.subr.mxu1 %v17531_v53  ;;  %14906 = vmatpush3.msra.mxu0 %v17602_v34 }
0x1000   :  { %14939 = vmatpush3.msra.mxu1 %v17533_v23  ;;  %14907 = vmatprep.subr.mxu0 %v17531_v53 }
0x1001   :  { %14940 = vmatprep.subr.mxu1 %v17531_v53  ;;  %14908 = vmatpush3.msra.mxu0 %v17603_v13 }
0x1002   :  { %14941 = vmatpush3.msra.mxu1 %v17599_v30  ;;  %14909 = vmatprep.subr.mxu0 %v17531_v53 }
0x1003   :  { %14942 = vmatprep.subr.mxu1 %v17531_v53  ;;  %14910 = vmatpush3.msra.mxu0 %v17604_v59  ;;  %v17613_v59 = vld [vmem:[#allocation29_spill] sm:$0xff] }
0x1004   :  { %14911 = vmatprep.mubr.msk.f32.mxu0 %vm15355_vm2, %v17531_v53  ;;  %14943 = vmatpush3.msra.mxu1 %v17600_v20 }
0x1005   :  { %14944 = vmatprep.mubr.msk.f32.mxu1 %vm15355_vm2, %v17531_v53  ;;  %14912 = vmatmul.mubr.f32.vlgmr.msra.gmra.mxu0 %v17027_v26 }
0x1006   :  { %14925 = vmatprep.subr.mxu0 %v17531_v53  ;;  %14945 = vmatmul.mubr.f32.vlgmr.msra.gmra.mxu1 %v17024_v47 }
0x1007   :  { %14926 = vmatpush3.msra.mxu0 %v17605_v55  ;;  %14933 = vmatprep.mubr.msk.f32.mxu0 %vm15355_vm2, %v17531_v53 }
0x1008   :  { %14927 = vmatprep.subr.mxu0 %v17531_v53  ;;  %14958 = vmatprep.subr.mxu1 %v17531_v53 }
0x1009   :  { %14928 = vmatpush3.msra.mxu0 %v17606_v25  ;;  %14959 = vmatpush3.msra.mxu1 %v17607_v40 }
0x100a   :  { %14929 = vmatprep.subr.mxu0 %v17531_v53  ;;  %14960 = vmatprep.subr.mxu1 %v17531_v53 }
0x100b   :  { %14930 = vmatpush3.msra.mxu0 %v17608_v52  ;;  %14961 = vmatpush3.msra.mxu1 %v17609_v18 }
0x100c   :  { %14931 = vmatprep.subr.mxu0 %v17531_v53  ;;  %14962 = vmatprep.subr.mxu1 %v17531_v53 }
0x100d   :  { %14932 = vmatpush3.msra.mxu0 %v17610_v48  ;;  %14963 = vmatpush3.msra.mxu1 %v17611_v51 }
0x100e   :  { %14934 = vmatmul.mubr.f32.vlgmr.msra.gmra.mxu0 %v17024_v47  ;;  %14964 = vmatprep.subr.mxu1 %v17531_v53 }
0x100f   :  { %14965 = vmatpush3.msra.mxu1 %v17612_v15  ;;  %14947 = vmatprep.subr.mxu0 %v17531_v53 }
0x1010   :  { %14966 = vmatprep.mubr.msk.f32.mxu1 %vm15355_vm2, %v17531_v53  ;;  %14980 = vmatprep.subr.mxu1 %v17531_v53 }
0x1011   :  { %14948 = vmatpush3.msra.mxu0 %v15463_v27  ;;  %14955 = vmatprep.mubr.msk.f32.mxu0 %vm15355_vm2, %v17531_v53 }
0x1012   :  { %14949 = vmatprep.subr.mxu0 %v17531_v53 }
0x1013   :  { %14950 = vmatpush3.msra.mxu0 %v15467_v31 }
0x1014   :  { %14951 = vmatprep.subr.mxu0 %v17531_v53 }
0x1015   :  { %14952 = vmatpush3.msra.mxu0 %v15480_v36 }
0x1016   :  { %14953 = vmatprep.subr.mxu0 %v17531_v53 }
0x1017   :  { %14954 = vmatpush3.msra.mxu0 %v15487_v38 }
0x1018   :  { %14969 = vmatprep.subr.mxu0 %v17531_v53 }
0x1078   :  { %v9897_v28 = vpop.f32.mrf.mxu1 }
0x107a   :  { %v14770_v19 = vpop.f32.mrf.mxu1 }
0x1080   :  { %v10054_v57 = vpop.f32.mrf.mxu1 }
0x1081   :  { %v9806_v21 = vpop.f32.mrf.mxu0 }
0x1082   :  { %v14792_v0 = vpop.f32.mrf.mxu1  ;;  %v9898_v18 = vadd.f32 %v9897_v28, %v9806_v21 }
0x1083   :  { %v14759_v56 = vpop.f32.mrf.mxu0  ;;  %v630_v0 = vcombine.high %v17613_v59, %v17613_v59 }
0x1085   :  { %v17237_v13 = vrot.slane %v630_v0, %v15862_v32 }
0x1089   :  { %v9977_v45 = vpop.f32.mrf.mxu0 }
0x108a   :  { %v10212_v50 = vpop.f32.mrf.mxu1  ;;  %v9978_v51 = vadd.f32 %v9977_v45, %v9898_v18 }
0x108b   :  { %v14781_v47 = vpop.f32.mrf.mxu0 }
0x108c   :  { %v14814_v26 = vpop.f32.mrf.mxu1  ;;  %v10055_v52 = vadd.f32 %v10054_v57, %v9978_v51 }
0x1093   :  { %v10137_v44 = vpop.f32.mrf.mxu0 }
0x1094   :  { %v10382_v54 = vpop.f32.mrf.mxu1  ;;  %v10138_v19 = vadd.f32 %v10137_v44, %v10055_v52 }
0x1095   :  { %v14803_v35 = vpop.f32.mrf.mxu0 }
0x1096   :  { %v14836_v40 = vpop.f32.mrf.mxu1  ;;  %v10213_v56 = vadd.f32 %v10212_v50, %v10138_v19 }
0x1098   :  { %v10701_v35 = vadd.f32 %v10213_v56, %v17237_v13 }
0x109a   :  { %v12771_v18 = vmul.f32 -1.442695, %v10701_v35 }
0x109c   :  { %15218 = vpow2.f32 %v12771_v18 }
0x109d   :  { %v10291_v15 = vpop.f32.mrf.mxu0 }
0x109e   :  { %v10539_v48 = vpop.f32.mrf.mxu1  ;;  %v10383_v28 = vadd.f32 %v10382_v54, %v10291_v15 }
0x109f   :  { %v14825_v25 = vpop.f32.mrf.mxu0 }
0x10a0   :  { %v14858_v55 = vpop.f32.mrf.mxu1 }
0x10a7   :  { %v10462_v47 = vpop.f32.mrf.mxu0 }
0x10a8   :  { %v10697_v26 = vpop.f32.mrf.mxu1  ;;  %v10463_v45 = vadd.f32 %v10462_v47, %v10383_v28  ;;  %v17242_v47 = vld [vmem:[#allocation9] ss:$0 sm:$0xff] }
0x10a9   :  { %v14847_v40 = vpop.f32.mrf.mxu0 }
0x10aa   :  { %v14880_v21 = vpop.f32.mrf.mxu1  ;;  %v10540_v57 = vadd.f32 %v10539_v48, %v10463_v45  ;;  %v15219_v40 = vpop.eup %15218 }
0x10ab   :  { %v10705_v15 = vadd.f32 1.0, %v15219_v40 }
0x10ad   :  { %15220 = vrcp.f32 %v10705_v15 }
0x10b1   :  { %v10622_v55 = vpop.f32.mrf.mxu0 }
0x10b2   :  { %v10623_v25 = vadd.f32 %v10622_v55, %v10540_v57  ;;  %v10892_v52 = vpop.f32.mrf.mxu1 }
0x10b3   :  { %v14869_v44 = vpop.f32.mrf.mxu0 }
0x10b4   :  { %v10698_v59 = vadd.f32 %v10697_v26, %v10623_v25  ;;  %v14902_v50 = vpop.f32.mrf.mxu1 }
0x10b6   :  { %v10715_v51 = vrot.slane %v10698_v59, %v15862_v32 }
0x10b8   :  { %10716 = vrot.lane.b32.xlu0 %v10715_v51, %s15358_s4 }
0x10ba   :  { %v15221_v50 = vpop.eup %15220 }
0x10bb   :  { %v10801_v19 = vpop.f32.mrf.mxu0 }
0x10bc   :  { %v11049_v0 = vpop.f32.mrf.mxu1  ;;  %v10802_v48 = vadd.f32 %v17242_v47, %v10801_v19 }
0x10bd   :  { %v14891_v56 = vpop.f32.mrf.mxu0 }
0x10be   :  { %v14924_v54 = vpop.f32.mrf.mxu1  ;;  %v10893_v21 = vadd.f32 %v10892_v52, %v10802_v48 }
0x10c5   :  { %v10972_v35 = vpop.f32.mrf.mxu0 }
0x10c6   :  { %v11207_v28 = vpop.f32.mrf.mxu1  ;;  %v10973_v18 = vadd.f32 %v10972_v35, %v10893_v21 }
0x10c7   :  { %v14913_v26 = vpop.f32.mrf.mxu0 }
0x10c8   :  { %v14946_v45 = vpop.f32.mrf.mxu1  ;;  %v11050_v57 = vadd.f32 %v11049_v0, %v10973_v18 }
0x10ce   :  { %v11132_v55 = vpop.f32.mrf.mxu0 }
0x10cf   :  { %v11133_v25 = vadd.f32 %v11132_v55, %v11050_v57 }
0x10d0   :  { %v14935_v44 = vpop.f32.mrf.mxu0 }
0x10d1   :  { %v11208_v59 = vadd.f32 %v11207_v28, %v11133_v25 }
0x10d3   :  { %v11211_v51 = vmul.f32 %v15221_v50, %v11208_v59 }
0x10d5   :  { %11213 = vrot.lane.b32.xlu1 %v11211_v51, %s15357_s3 }
0x112a   :  { %v10717_v52 = vpop.permute.xlu0 %10716 }
0x112b   :  { %v10719_v54 = vadd.f32 %v10717_v52, %v17237_v13 }
0x112d   :  { %v12772_v15 = vmul.f32 -1.442695, %v10719_v54 }
0x1147   :  { %v11214_v56 = vpop.permute.xlu1 %11213 }
0x1148   :  { %v11216_v40 = vadd.f32 %v11214_v56, %v17237_v13 }
0x114a   :  { %15222 = vtanh.f32 %v11216_v40 }
0x114b   :  { %15224 = vpow2.f32 %v12772_v15 }
0x1157   :  { %v15223_v19 = vpop.eup %15222 }
0x1158   :  { %11220 = vrot.lane.b32.xlu1 %v15223_v19, %s15359_s21  ;;  %v15225_v0 = vpop.eup %15224 }
0x1159   :  { %v10723_v48 = vadd.f32 1.0, %v15225_v0 }
0x115b   :  { %15226 = vrcp.f32 %v10723_v48 }
0x1168   :  { %v15227_v35 = vpop.eup %15226 }
0x1169   :  { %v11218_v28 = vsub.f32 1.0, %v15227_v35  ;;  %v11224_v26 = vmul.f32 %v15227_v35, %v17018_v24 }
0x11ca   :  { %v11221_v21 = vpop.permute.xlu1 %11220 }
0x11cb   :  { %v11223_v45 = vmul.f32 %v11221_v21, %v11218_v28 }
0x11cd   :  { %v17250_v18 = vadd.f32 %v11224_v26, %v11223_v45 }
0x11cf   :  { %v11233_v57 = vrot.slane %v17250_v18, %v15862_v32 }
0x11d1   :  { %11234 = vrot.lane.b32.xlu0 %v11233_v57, %s15359_s21 }
0x1243   :  { %v11235_v55 = vpop.permute.xlu0 %11234 }
0x1244   :  { %v11236_v25 = vsel %vm675_vm1, %v11235_v55, 0 }
0x1245   :  { %v17256_v44 = vand.u32 4294901760, %v11236_v25 }
0x1247   :  { %v17259_v59 = vsub.f32 %v11236_v25, %v17256_v44  ;;  %14967 = vmatmul.mubr.f32.vlgmr.msra.gmra.mxu1 %v17256_v44 }
0x1248   :  { %14981 = vmatpush3.msra.mxu1 %v15463_v27  ;;  %14988 = vmatprep.mubr.msk.f32.mxu1 %vm15355_vm2, %v17531_v53 }
0x1249   :  { %14982 = vmatprep.subr.mxu1 %v17531_v53  ;;  %v17267_v24 = vand.u32 4294901760, %v17259_v59 }
0x124a   :  { %14983 = vmatpush3.msra.mxu1 %v15467_v31 }
0x124b   :  { %14984 = vmatprep.subr.mxu1 %v17531_v53  ;;  %v11310_v50 = vsub.f32 %v17259_v59, %v17267_v24 }
0x124c   :  { %14985 = vmatpush3.msra.mxu1 %v15480_v36 }
0x124d   :  { %14986 = vmatprep.subr.mxu1 %v17531_v53  ;;  %v17275_v51 = vand.u32 4294901760, %v11310_v50 }
0x124e   :  { %14987 = vmatpush3.msra.mxu1 %v15487_v38 }
0x124f   :  { %14989 = vmatmul.mubr.f32.vlgmr.msra.gmra.mxu1 %v17267_v24  ;;  %15002 = vmatprep.subr.mxu1 %v17531_v53 }
0x1250   :  { %14956 = vmatmul.mubr.f32.vlgmr.msra.gmra.mxu0 %v17275_v51  ;;  %15003 = vmatpush3.msra.mxu1 %v15463_v27  ;;  %v17614_v27 = vld [vmem:[#allocation24_spill] sm:$0xff] }
0x1251   :  { %14970 = vmatpush3.msra.mxu0 %v15473_v33  ;;  %15004 = vmatprep.subr.mxu1 %v17531_v53  ;;  %v17616_v33 = vld [vmem:[#allocation23_spill] sm:$0xff] }
0x1252   :  { %14971 = vmatprep.subr.mxu0 %v17531_v53  ;;  %15005 = vmatpush3.msra.mxu1 %v15467_v31  ;;  %v17615_v31 = vld [vmem:[#allocation26_spill] sm:$0xff] }
0x1253   :  { %14972 = vmatpush3.msra.mxu0 %v15484_v37  ;;  %15006 = vmatprep.subr.mxu1 %v17531_v53  ;;  %v17618_v37 = vld [vmem:[#allocation27_spill] sm:$0xff] }
0x1254   :  { %14973 = vmatprep.subr.mxu0 %v17531_v53  ;;  %15007 = vmatpush3.msra.mxu1 %v15480_v36  ;;  %v17617_v36 = vld [vmem:[#allocation25_spill] sm:$0xff] }
0x1255   :  { %14974 = vmatpush3.msra.mxu0 %v15497_v41  ;;  %15008 = vmatprep.subr.mxu1 %v17531_v53 }
0x1256   :  { %14975 = vmatprep.subr.mxu0 %v17531_v53  ;;  %14977 = vmatprep.mubr.msk.f32.mxu0 %vm15355_vm2, %v17531_v53 }
0x1257   :  { %14976 = vmatpush3.msra.mxu0 %v15505_v43  ;;  %15009 = vmatpush3.msra.mxu1 %v15487_v38  ;;  %v17619_v38 = vld [vmem:[#allocation28_spill] sm:$0xff] }
0x1258   :  { %15010 = vmatprep.mubr.msk.f32.mxu1 %vm15355_vm2, %v17531_v53  ;;  %14978 = vmatmul.mubr.f32.vlgmr.msra.gmra.mxu0 %v17259_v59 }
0x1259   :  { %14991 = vmatprep.subr.mxu0 %v17531_v53  ;;  %15011 = vmatmul.mubr.f32.vlgmr.msra.gmra.mxu1 %v17256_v44 }
0x125a   :  { %15024 = vmatprep.subr.mxu1 %v17531_v53  ;;  %14992 = vmatpush3.msra.mxu0 %v15491_v39 }
0x125b   :  { %15025 = vmatpush3.msra.mxu1 %v15644_v12  ;;  %14993 = vmatprep.subr.mxu0 %v17531_v53 }
0x125c   :  { %15026 = vmatprep.subr.mxu1 %v17531_v53  ;;  %14994 = vmatpush3.msra.mxu0 %v15501_v42 }
0x125d   :  { %15027 = vmatpush3.msra.mxu1 %v15653_v14  ;;  %14995 = vmatprep.subr.mxu0 %v17531_v53 }
0x125e   :  { %15028 = vmatprep.subr.mxu1 %v17531_v53  ;;  %14996 = vmatpush3.msra.mxu0 %v15514_v46 }
0x125f   :  { %15029 = vmatpush3.msra.mxu1 %v15663_v16  ;;  %14997 = vmatprep.subr.mxu0 %v17531_v53 }
0x1260   :  { %15030 = vmatprep.subr.mxu1 %v17531_v53  ;;  %14998 = vmatpush3.msra.mxu0 %v15523_v49 }
0x1261   :  { %14999 = vmatprep.mubr.msk.f32.mxu0 %vm15355_vm2, %v17531_v53  ;;  %15031 = vmatpush3.msra.mxu1 %v15670_v17 }
0x1262   :  { %15032 = vmatprep.mubr.msk.f32.mxu1 %vm15355_vm2, %v17531_v53  ;;  %15000 = vmatmul.mubr.f32.vlgmr.msra.gmra.mxu0 %v17256_v44 }
0x1263   :  { %15013 = vmatprep.subr.mxu0 %v17531_v53  ;;  %15033 = vmatmul.mubr.f32.vlgmr.msra.gmra.mxu1 %v17256_v44 }
0x1264   :  { %15046 = vmatprep.subr.mxu1 %v17531_v53  ;;  %15014 = vmatpush3.msra.mxu0 %v15573_v60 }
0x1265   :  { %15047 = vmatpush3.msra.mxu1 %v15573_v60  ;;  %15015 = vmatprep.subr.mxu0 %v17531_v53 }
0x1266   :  { %15048 = vmatprep.subr.mxu1 %v17531_v53  ;;  %15016 = vmatpush3.msra.mxu0 %v15579_v61 }
0x1267   :  { %15049 = vmatpush3.msra.mxu1 %v15579_v61  ;;  %15017 = vmatprep.subr.mxu0 %v17531_v53 }
0x1268   :  { %15050 = vmatprep.subr.mxu1 %v17531_v53  ;;  %15018 = vmatpush3.msra.mxu0 %v15591_v1 }
0x1269   :  { %15051 = vmatpush3.msra.mxu1 %v15591_v1  ;;  %15019 = vmatprep.subr.mxu0 %v17531_v53 }
0x126a   :  { %15052 = vmatprep.subr.mxu1 %v17531_v53  ;;  %15020 = vmatpush3.msra.mxu0 %v15601_v3 }
0x126b   :  { %15021 = vmatprep.mubr.msk.f32.mxu0 %vm15355_vm2, %v17531_v53  ;;  %15053 = vmatpush3.msra.mxu1 %v15601_v3 }
0x126c   :  { %15054 = vmatprep.mubr.msk.f32.mxu1 %vm15355_vm2, %v17531_v53  ;;  %15022 = vmatmul.mubr.f32.vlgmr.msra.gmra.mxu0 %v17275_v51 }
0x126d   :  { %15035 = vmatprep.subr.mxu0 %v17531_v53  ;;  %15055 = vmatmul.mubr.f32.vlgmr.msra.gmra.mxu1 %v17267_v24 }
0x126e   :  { %15068 = vmatprep.subr.mxu1 %v17531_v53  ;;  %15036 = vmatpush3.msra.mxu0 %v15587_v63 }
0x126f   :  { %15069 = vmatpush3.msra.mxu1 %v15573_v60  ;;  %15037 = vmatprep.subr.mxu0 %v17531_v53 }
0x1270   :  { %15070 = vmatprep.subr.mxu1 %v17531_v53  ;;  %15038 = vmatpush3.msra.mxu0 %v15596_v2 }
0x1271   :  { %15071 = vmatpush3.msra.mxu1 %v15579_v61  ;;  %15039 = vmatprep.subr.mxu0 %v17531_v53 }
0x1272   :  { %15072 = vmatprep.subr.mxu1 %v17531_v53  ;;  %15040 = vmatpush3.msra.mxu0 %v15611_v5 }
0x1273   :  { %15073 = vmatpush3.msra.mxu1 %v15591_v1  ;;  %15041 = vmatprep.subr.mxu0 %v17531_v53 }
0x1274   :  { %15074 = vmatprep.subr.mxu1 %v17531_v53  ;;  %15042 = vmatpush3.msra.mxu0 %v15621_v7 }
0x1275   :  { %15043 = vmatprep.mubr.msk.f32.mxu0 %vm15355_vm2, %v17531_v53  ;;  %15075 = vmatpush3.msra.mxu1 %v15601_v3 }
0x1276   :  { %15076 = vmatprep.mubr.msk.f32.mxu1 %vm15355_vm2, %v17531_v53  ;;  %15044 = vmatmul.mubr.f32.vlgmr.msra.gmra.mxu0 %v17259_v59 }
0x1277   :  { %15057 = vmatprep.subr.mxu0 %v17531_v53  ;;  %15077 = vmatmul.mubr.f32.vlgmr.msra.gmra.mxu1 %v17256_v44 }
0x1278   :  { %15090 = vmatprep.subr.mxu1 %v17531_v53  ;;  %15058 = vmatpush3.msra.mxu0 %v15606_v4 }
0x1279   :  { %15091 = vmatpush3.msra.mxu1 %v15758_v58  ;;  %15059 = vmatprep.subr.mxu0 %v17531_v53 }
0x127a   :  { %15092 = vmatprep.subr.mxu1 %v17531_v53  ;;  %15060 = vmatpush3.msra.mxu0 %v15616_v6 }
0x127b   :  { %15093 = vmatpush3.msra.mxu1 %v15767_v62  ;;  %15061 = vmatprep.subr.mxu0 %v17531_v53  ;;  %v646_v62 = vcombine.high %v17237_v13, %v17237_v13 }
0x127c   :  { %15094 = vmatprep.subr.mxu1 %v17531_v53  ;;  %15062 = vmatpush3.msra.mxu0 %v15631_v9 }
0x127d   :  { %15095 = vmatpush3.msra.mxu1 %v15777_v8  ;;  %15063 = vmatprep.subr.mxu0 %v17531_v53 }
0x127e   :  { %15096 = vmatprep.subr.mxu1 %v17531_v53  ;;  %15064 = vmatpush3.msra.mxu0 %v15640_v11 }
0x127f   :  { %15065 = vmatprep.mubr.msk.f32.mxu0 %vm15355_vm2, %v17531_v53  ;;  %15097 = vmatpush3.msra.mxu1 %v15784_v10 }
0x1280   :  { %15098 = vmatprep.mubr.msk.f32.mxu1 %vm15355_vm2, %v17531_v53  ;;  %15066 = vmatmul.mubr.f32.vlgmr.msra.gmra.mxu0 %v17256_v44 }
0x1281   :  { %15079 = vmatprep.subr.mxu0 %v17531_v53  ;;  %15099 = vmatmul.mubr.f32.vlgmr.msra.gmra.mxu1 %v17256_v44 }
0x1282   :  { %15112 = vmatprep.subr.mxu1 %v17531_v53  ;;  %15080 = vmatpush3.msra.mxu0 %v17532_v22 }
0x1283   :  { %15113 = vmatpush3.msra.mxu1 %v17532_v22  ;;  %15081 = vmatprep.subr.mxu0 %v17531_v53 }
0x1284   :  { %15114 = vmatprep.subr.mxu1 %v17531_v53  ;;  %15082 = vmatpush3.msra.mxu0 %v17533_v23 }
0x1285   :  { %15115 = vmatpush3.msra.mxu1 %v17533_v23  ;;  %15083 = vmatprep.subr.mxu0 %v17531_v53 }
0x1286   :  { %15116 = vmatprep.subr.mxu1 %v17531_v53  ;;  %15084 = vmatpush3.msra.mxu0 %v17599_v30 }
0x1287   :  { %15117 = vmatpush3.msra.mxu1 %v17599_v30  ;;  %15085 = vmatprep.subr.mxu0 %v17531_v53 }
0x1288   :  { %15118 = vmatprep.subr.mxu1 %v17531_v53  ;;  %15086 = vmatpush3.msra.mxu0 %v17600_v20 }
0x1289   :  { %15087 = vmatprep.mubr.msk.f32.mxu0 %vm15355_vm2, %v17531_v53  ;;  %15119 = vmatpush3.msra.mxu1 %v17600_v20 }
0x128a   :  { %15120 = vmatprep.mubr.msk.f32.mxu1 %vm15355_vm2, %v17531_v53  ;;  %15088 = vmatmul.mubr.f32.vlgmr.msra.gmra.mxu0 %v17275_v51 }
0x128b   :  { %15101 = vmatprep.subr.mxu0 %v17531_v53  ;;  %15121 = vmatmul.mubr.f32.vlgmr.msra.gmra.mxu1 %v17267_v24 }
0x128c   :  { %15134 = vmatprep.subr.mxu1 %v17531_v53  ;;  %15102 = vmatpush3.msra.mxu0 %v17601_v29 }
0x128d   :  { %15135 = vmatpush3.msra.mxu1 %v17532_v22  ;;  %15103 = vmatprep.subr.mxu0 %v17531_v53 }
0x128e   :  { %15136 = vmatprep.subr.mxu1 %v17531_v53  ;;  %15104 = vmatpush3.msra.mxu0 %v17602_v34 }
0x128f   :  { %15137 = vmatpush3.msra.mxu1 %v17533_v23  ;;  %15105 = vmatprep.subr.mxu0 %v17531_v53 }
0x1290   :  { %15138 = vmatprep.subr.mxu1 %v17531_v53  ;;  %15106 = vmatpush3.msra.mxu0 %v17614_v27 }
0x1291   :  { %15139 = vmatpush3.msra.mxu1 %v17599_v30  ;;  %15107 = vmatprep.subr.mxu0 %v17531_v53 }
0x1292   :  { %15140 = vmatprep.subr.mxu1 %v17531_v53  ;;  %15108 = vmatpush3.msra.mxu0 %v17615_v31 }
0x1293   :  { %15109 = vmatprep.mubr.msk.f32.mxu0 %vm15355_vm2, %v17531_v53  ;;  %15141 = vmatpush3.msra.mxu1 %v17600_v20 }
0x1294   :  { %15142 = vmatprep.mubr.msk.f32.mxu1 %vm15355_vm2, %v17531_v53  ;;  %15110 = vmatmul.mubr.f32.vlgmr.msra.gmra.mxu0 %v17259_v59 }
0x1295   :  { %15123 = vmatprep.subr.mxu0 %v17531_v53  ;;  %15143 = vmatmul.mubr.f32.vlgmr.msra.gmra.mxu1 %v17256_v44 }
0x1296   :  { %15124 = vmatpush3.msra.mxu0 %v17616_v33  ;;  %15131 = vmatprep.mubr.msk.f32.mxu0 %vm15355_vm2, %v17531_v53 }
0x1297   :  { %15125 = vmatprep.subr.mxu0 %v17531_v53 }
0x1298   :  { %15126 = vmatpush3.msra.mxu0 %v17617_v36 }
0x1299   :  { %15127 = vmatprep.subr.mxu0 %v17531_v53 }
0x129a   :  { %15128 = vmatpush3.msra.mxu0 %v17618_v37 }
0x129b   :  { %15129 = vmatprep.subr.mxu0 %v17531_v53 }
0x129c   :  { %15130 = vmatpush3.msra.mxu0 %v17619_v38 }
0x129d   :  { %15132 = vmatmul.mubr.f32.vlgmr.msra.gmra.mxu0 %v17256_v44 }
0x1307   :  { %v11404_v39 = vpop.f32.mrf.mxu1 }
0x1309   :  { %v14968_v41 = vpop.f32.mrf.mxu1 }
0x130f   :  { %v11561_v42 = vpop.f32.mrf.mxu1 }
0x1310   :  { %v11313_v43 = vpop.f32.mrf.mxu0 }
0x1311   :  { %v14990_v46 = vpop.f32.mrf.mxu1  ;;  %v11405_v6 = vadd.f32 %v11404_v39, %v11313_v43 }
0x1312   :  { %v14957_v49 = vpop.f32.mrf.mxu0 }
0x1318   :  { %v11484_v60 = vpop.f32.mrf.mxu0 }
0x1319   :  { %v11719_v61 = vpop.f32.mrf.mxu1  ;;  %v11485_v7 = vadd.f32 %v11484_v60, %v11405_v6 }
0x131a   :  { %v14979_v63 = vpop.f32.mrf.mxu0 }
0x131b   :  { %v15012_v1 = vpop.f32.mrf.mxu1  ;;  %v11562_v12 = vadd.f32 %v11561_v42, %v11485_v7 }
0x1322   :  { %v11644_v2 = vpop.f32.mrf.mxu0 }
0x1323   :  { %v11889_v3 = vpop.f32.mrf.mxu1  ;;  %v11645_v17 = vadd.f32 %v11644_v2, %v11562_v12 }
0x1324   :  { %v15001_v4 = vpop.f32.mrf.mxu0 }
0x1325   :  { %v15034_v5 = vpop.f32.mrf.mxu1  ;;  %v11720_v58 = vadd.f32 %v11719_v61, %v11645_v17 }
0x1327   :  { %v12208_v53 = vadd.f32 %v11720_v58, %v646_v62 }
0x1329   :  { %v12773_v29 = vmul.f32 -1.442695, %v12208_v53 }
0x132b   :  { %15228 = vpow2.f32 %v12773_v29 }
0x132c   :  { %v11798_v9 = vpop.f32.mrf.mxu0 }
0x132d   :  { %v12046_v11 = vpop.f32.mrf.mxu1  ;;  %v11890_v23 = vadd.f32 %v11889_v3, %v11798_v9 }
0x132e   :  { %v15023_v14 = vpop.f32.mrf.mxu0 }
0x132f   :  { %v15056_v16 = vpop.f32.mrf.mxu1 }
0x1336   :  { %v11969_v8 = vpop.f32.mrf.mxu0 }
0x1337   :  { %v12204_v10 = vpop.f32.mrf.mxu1  ;;  %v11970_v20 = vadd.f32 %v11969_v8, %v11890_v23 }
0x1338   :  { %v15045_v22 = vpop.f32.mrf.mxu0  ;;  %v15229_v28 = vpop.eup %15228 }
0x1339   :  { %v15078_v30 = vpop.f32.mrf.mxu1  ;;  %v12047_v34 = vadd.f32 %v12046_v11, %v11970_v20  ;;  %v12212_v26 = vadd.f32 1.0, %v15229_v28 }
0x133b   :  { %15230 = vrcp.f32 %v12212_v26 }
0x1340   :  { %v12129_v56 = vpop.f32.mrf.mxu0 }
0x1341   :  { %v12130_v40 = vadd.f32 %v12129_v56, %v12047_v34  ;;  %v12399_v19 = vpop.f32.mrf.mxu1 }
0x1342   :  { %v15067_v52 = vpop.f32.mrf.mxu0 }
0x1343   :  { %v12205_v54 = vadd.f32 %v12204_v10, %v12130_v40  ;;  %v15100_v15 = vpop.f32.mrf.mxu1 }
0x1345   :  { %v12222_v0 = vrot.slane %v12205_v54, %v15862_v32 }
0x1347   :  { %12223 = vrot.lane.b32.xlu0 %v12222_v0, %s15358_s4 }
0x1348   :  { %v15231_v36 = vpop.eup %15230 }
0x134a   :  { %v12308_v13 = vpop.f32.mrf.mxu0 }
0x134b   :  { %v12556_v48 = vpop.f32.mrf.mxu1  ;;  %v12309_v45 = vadd.f32 %v17242_v47, %v12308_v13 }
0x134c   :  { %v15089_v35 = vpop.f32.mrf.mxu0 }
0x134d   :  { %v15122_v21 = vpop.f32.mrf.mxu1  ;;  %v12400_v25 = vadd.f32 %v12399_v19, %v12309_v45 }
0x1354   :  { %v12479_v57 = vpop.f32.mrf.mxu0 }
0x1355   :  { %v12714_v55 = vpop.f32.mrf.mxu1  ;;  %v12480_v24 = vadd.f32 %v12479_v57, %v12400_v25 }
0x1356   :  { %v15111_v44 = vpop.f32.mrf.mxu0 }
0x1357   :  { %v15144_v59 = vpop.f32.mrf.mxu1  ;;  %v12557_v50 = vadd.f32 %v12556_v48, %v12480_v24 }
0x135d   :  { %v12639_v51 = vpop.f32.mrf.mxu0 }
0x135e   :  { %v12640_v27 = vadd.f32 %v12639_v51, %v12557_v50 }
0x135f   :  { %v15133_v31 = vpop.f32.mrf.mxu0 }
0x1360   :  { %v12715_v33 = vadd.f32 %v12714_v55, %v12640_v27 }
0x1362   :  { %v12718_v37 = vmul.f32 %v15231_v36, %v12715_v33 }
0x1364   :  { %12720 = vrot.lane.b32.xlu1 %v12718_v37, %s15357_s3 }
0x13b9   :  { %v12224_v38 = vpop.permute.xlu0 %12223 }
0x13ba   :  { %v12226_v39 = vadd.f32 %v12224_v38, %v646_v62 }
0x13bc   :  { %v12774_v41 = vmul.f32 -1.442695, %v12226_v39 }
0x13be   :  { %15232 = vpow2.f32 %v12774_v41 }
0x13cb   :  { %v15233_v47 = vpop.eup %15232 }
0x13cc   :  { %v12230_v42 = vadd.f32 1.0, %v15233_v47 }
0x13ce   :  { %15234 = vrcp.f32 %v12230_v42 }
0x13d6   :  { %v12721_v43 = vpop.permute.xlu1 %12720 }
0x13d7   :  { %v12723_v46 = vadd.f32 %v12721_v43, %v646_v62 }
0x13d9   :  { %15236 = vtanh.f32 %v12723_v46 }
0x13db   :  { %v15235_v49 = vpop.eup %15234 }
0x13dc   :  { %v12744_v61 = vsel %vm675_vm1, %v15231_v36, %v15235_v49  ;;  %v12725_v1 = vsub.f32 1.0, %v15235_v49  ;;  %v12731_v3 = vmul.f32 %v15235_v49, %v17250_v18 }
0x13e6   :  { %v15237_v60 = vpop.eup %15236 }
0x13e7   :  { %12727 = vrot.lane.b32.xlu1 %v15237_v60, %s15359_s21  ;;  %v12746_v63 = vsel %vm12745_vm3, %v12744_v61, %v15237_v60 }
0x1459   :  { %v12728_v2 = vpop.permute.xlu1 %12727 }
0x145a   :  { %v12730_v4 = vmul.f32 %v12728_v2, %v12725_v1 }
0x145c   :  { %v12732_v5 = vadd.f32 %v12731_v3, %v12730_v4 }
0x145e   :  { %v12740_v6 = vrot.slane %v12732_v5, %v15862_v32 }
0x1460   :  { %12741 = vrot.lane.b32.xlu0 %v12740_v6, %s15357_s3 }
0x14d2   :  { %v12742_v7 = vpop.permute.xlu0 %12741 }
0x14d3   :  { %v12748_v9 = vsel %vm12747_vm4, %v12746_v63, %v12742_v7 }
0x14d4   :  { %12749 = vst [vmem:[%s17466_s8] sm:$0x3] %v12748_v9 }
0x14d5   :  { %12754 = vsyncpa [#allocation3], 1 }
0x14d6   :  { %12755 = vsyncpa [#allocation5], 1 }
0x14d7   :  { %12756 = vsyncpa [#allocation8], 1 }

</bundles_post_ra>
